<compile_context>
chip_gen: v7x
topology: tpu7x:2x2x1
jax: 0.10.0
libtpu: 0.0.40
codegen_flags: <defaults>
</compile_context>

<pallas_src>
import functools
import math

import jax
import jax.numpy as jnp
from jax import lax
from jax.experimental import pallas as pl
from jax.experimental.pallas import tpu as pltpu

NEG_SLOPE = 0.01   # F.leaky_relu default
LN_EPS = 1e-5      # nn.LayerNorm default


def _leaky(y):
    return jnp.where(y > 0, y, NEG_SLOPE * y)


def _layernorm(y, g, b):
    mu = jnp.mean(y, axis=-1, keepdims=True)
    var = jnp.mean(jnp.square(y - mu), axis=-1, keepdims=True)
    return (y - mu) * lax.rsqrt(var + LN_EPS) * g + b


# ----------------------------- fused kernel ---------------------------------

def _encoder_kernel(x_ref, wqkv_ref, bqkv_ref, wo_ref, bo_ref,
                    w1_ref, b1_ref, w2_ref, b2_ref,
                    g1_ref, be1_ref, g2_ref, be2_ref,
                    o_ref, attn_scr, *, n_layers, n_heads):
    """Whole nn.TransformerEncoder (post-norm, relu FFN) + final leaky_relu.

    x_ref:   (B, L, D)
    wqkv:    (Nl, D, 3D)   bqkv: (Nl, 1, 3D)
    wo:      (Nl, D, D)    bo:   (Nl, 1, D)
    w1:      (Nl, D, 8D)   b1:   (Nl, 1, 8D)
    w2:      (Nl, 8D, D)   b2:   (Nl, 1, D)
    g*/be*:  (Nl, 1, D)    LayerNorm scale / bias
    attn_scr: VMEM scratch (B*L, D) used to assemble per-head outputs.
    """
    B, L, D = x_ref.shape
    dh = D // n_heads
    scale = 1.0 / math.sqrt(dh)

    x = x_ref[...].astype(jnp.float32).reshape(B * L, D)

    for l in range(n_layers):                       # static, tiny (2 layers)
        # ---- fused QKV projection: one (B*L, D) x (D, 3D) matmul ----
        qkv = jnp.dot(x, wqkv_ref[l], preferred_element_type=jnp.float32) + bqkv_ref[l]
        qkv3 = qkv.reshape(B, L, 3 * D)

        # ---- multi-head attention (heads are contiguous dh-wide slices) ----
        for h in range(n_heads):                    # static, tiny (4 heads)
            qh = qkv3[:, :, h * dh:(h + 1) * dh] * scale
            kh = qkv3[:, :, D + h * dh:D + (h + 1) * dh]
            vh = qkv3[:, :, 2 * D + h * dh:2 * D + (h + 1) * dh]
            s = jnp.einsum("bqd,bkd->bqk", qh, kh,
                           preferred_element_type=jnp.float32)
            m = jnp.max(s, axis=-1, keepdims=True)
            p = jnp.exp(s - m)
            p = p * pl.reciprocal(jnp.sum(p, axis=-1, keepdims=True), approx=True)
            oh = jnp.einsum("bqk,bkd->bqd", p, vh,
                            preferred_element_type=jnp.float32)
            attn_scr[:, h * dh:(h + 1) * dh] = oh.reshape(B * L, dh)

        # ---- output projection + residual + LayerNorm1 (post-norm) ----
        attn = jnp.dot(attn_scr[...], wo_ref[l],
                       preferred_element_type=jnp.float32) + bo_ref[l]
        x = _layernorm(x + attn, g1_ref[l], be1_ref[l])

        # ---- FFN (relu) + residual + LayerNorm2 ----
        f = jnp.dot(x, w1_ref[l], preferred_element_type=jnp.float32) + b1_ref[l]
        f = jnp.maximum(f, 0.0)
        f = jnp.dot(f, w2_ref[l], preferred_element_type=jnp.float32) + b2_ref[l]
        x = _layernorm(x + f, g2_ref[l], be2_ref[l])

    # final F.leaky_relu of the module's forward
    o_ref[...] = _leaky(x).reshape(B, L, D).astype(o_ref.dtype)


# ----------------------------- wrapper ---------------------------------------

def transformer_encoder(x, params, *, n_heads):
    B, L, D = x.shape
    n_layers = params["wqkv"].shape[0]
    kernel = functools.partial(_encoder_kernel, n_layers=n_layers, n_heads=n_heads)
    args = (x,
            params["wqkv"], params["bqkv"], params["wo"], params["bo"],
            params["w1"], params["b1"], params["w2"], params["b2"],
            params["ln1_g"], params["ln1_b"], params["ln2_g"], params["ln2_b"])
    return pl.pallas_call(
        kernel,
        out_shape=jax.ShapeDtypeStruct((B, L, D), jnp.float32),
        in_specs=[pl.BlockSpec(memory_space=pltpu.MemorySpace.VMEM)] * len(args),
        out_specs=pl.BlockSpec(memory_space=pltpu.MemorySpace.VMEM),
        scratch_shapes=[pltpu.VMEM((B * L, D), jnp.float32)],
    )(*args)


# ----------------------------- pure-JAX reference ----------------------------

def _reference(x, params, n_heads):
    B, L, D = x.shape
    dh = D // n_heads
    scale = 1.0 / math.sqrt(dh)
    n_layers = params["wqkv"].shape[0]
    h = x.astype(jnp.float32).reshape(B * L, D)
    for l in range(n_layers):
        qkv = h @ params["wqkv"][l] + params["bqkv"][l]
        qkv3 = qkv.reshape(B, L, 3 * D)
        heads = []
        for hh in range(n_heads):
            q = qkv3[:, :, hh * dh:(hh + 1) * dh] * scale
            k = qkv3[:, :, D + hh * dh:D + (hh + 1) * dh]
            v = qkv3[:, :, 2 * D + hh * dh:2 * D + (hh + 1) * dh]
            s = jnp.einsum("bqd,bkd->bqk", q, k)
            p = jax.nn.softmax(s, axis=-1)
            heads.append(jnp.einsum("bqk,bkd->bqd", p, v))
        attn = jnp.concatenate(heads, axis=-1).reshape(B * L, D)
        attn = attn @ params["wo"][l] + params["bo"][l]
        h = _layernorm(h + attn, params["ln1_g"][l], params["ln1_b"][l])
        f = jnp.maximum(h @ params["w1"][l] + params["b1"][l], 0.0)
        f = f @ params["w2"][l] + params["b2"][l]
        h = _layernorm(h + f, params["ln2_g"][l], params["ln2_b"][l])
    return _leaky(h).reshape(B, L, D)


# ----------------------------- init ------------------------------------------

def init_params(key, *, d_model, n_layers, ff_mult):
    keys = iter(jax.random.split(key, 64))

    def rnd(shape, scale=0.1):
        return (scale * jax.random.normal(next(keys), shape)).astype(jnp.float32)

    d = d_model
    ff = d * ff_mult
    return dict(
        wqkv=rnd((n_layers, d, 3 * d)), bqkv=rnd((n_layers, 1, 3 * d)),
        wo=rnd((n_layers, d, d)),       bo=rnd((n_layers, 1, d)),
        w1=rnd((n_layers, d, ff)),      b1=rnd((n_layers, 1, ff)),
        w2=rnd((n_layers, ff, d)),      b2=rnd((n_layers, 1, d)),
        ln1_g=jnp.ones((n_layers, 1, d), jnp.float32),
        ln1_b=jnp.zeros((n_layers, 1, d), jnp.float32),
        ln2_g=jnp.ones((n_layers, 1, d), jnp.float32),
        ln2_b=jnp.zeros((n_layers, 1, d), jnp.float32),
    )


# ----------------------------- main -------------------------------------------

if __name__ == "__main__":
    # features: (batch, seq, in_dim), batch_first=True
    B, L, D = 4, 16, 32
    N_HEADS, N_LAYERS, FF_MULT = 4, 2, 8

    key = jax.random.PRNGKey(0)
    kx, kp = jax.random.split(key)
    x = jax.random.normal(kx, (B, L, D), jnp.float32)
    params = init_params(kp, d_model=D, n_layers=N_LAYERS, ff_mult=FF_MULT)

    fwd = jax.jit(functools.partial(transformer_encoder, n_heads=N_HEADS))
    out = jax.block_until_ready(fwd(x, params))

    assert out.shape == (B, L, D), out.shape
    assert bool(jnp.all(jnp.isfinite(out)))

    ref = _reference(x, params, N_HEADS)
    max_err = float(jnp.max(jnp.abs(out - ref)))
    assert max_err < 5e-2, f"mismatch vs reference: {max_err}"

    print("KERNEL_OK")
</pallas_src>

<mosaic_0001>
module attributes {stable_mosaic.version = 11 : i64} {
  func.func @_encoder_kernel(%arg0: memref<4x16x32xf32, #tpu.memory_space<vmem>>, %arg1: memref<2x32x96xf32, #tpu.memory_space<vmem>>, %arg2: memref<2x1x96xf32, #tpu.memory_space<vmem>>, %arg3: memref<2x32x32xf32, #tpu.memory_space<vmem>>, %arg4: memref<2x1x32xf32, #tpu.memory_space<vmem>>, %arg5: memref<2x32x256xf32, #tpu.memory_space<vmem>>, %arg6: memref<2x1x256xf32, #tpu.memory_space<vmem>>, %arg7: memref<2x256x32xf32, #tpu.memory_space<vmem>>, %arg8: memref<2x1x32xf32, #tpu.memory_space<vmem>>, %arg9: memref<2x1x32xf32, #tpu.memory_space<vmem>>, %arg10: memref<2x1x32xf32, #tpu.memory_space<vmem>>, %arg11: memref<2x1x32xf32, #tpu.memory_space<vmem>>, %arg12: memref<2x1x32xf32, #tpu.memory_space<vmem>>, %arg13: memref<4x16x32xf32, #tpu.memory_space<vmem>>, %arg14: memref<64x32xf32, #tpu.memory_space<vmem>>) attributes {dimension_semantics = [], scalar_prefetch = 0 : i64, scratch_operands = 1 : i64, tpu.core_type = #tpu.core_type<tc>} {
    %c0 = arith.constant 0 : index
    %c0_0 = arith.constant 0 : index
    %c0_1 = arith.constant 0 : index
    %0 = vector.load %arg0[%c0, %c0_0, %c0_1] : memref<4x16x32xf32, #tpu.memory_space<vmem>>, vector<4x16x32xf32>
    %1 = vector.shape_cast %0 : vector<4x16x32xf32> to vector<64x32xf32>
    %c0_2 = arith.constant 0 : index
    %c0_3 = arith.constant 0 : index
    %c0_4 = arith.constant 0 : index
    %2 = vector.load %arg1[%c0_2, %c0_3, %c0_4] : memref<2x32x96xf32, #tpu.memory_space<vmem>>, vector<1x32x96xf32>
    %3 = vector.shape_cast %2 : vector<1x32x96xf32> to vector<32x96xf32>
    %cst = arith.constant dense<0.000000e+00> : vector<64x96xf32>
    %4 = tpu.matmul %1, %3, %cst {dimension_numbers = #tpu.dot_dimension_numbers<[1], [0], [0], [1], [0, 0, 1, 1], [], []>} : vector<64x32xf32>, vector<32x96xf32>, vector<64x96xf32> -> vector<64x96xf32>
    %c0_5 = arith.constant 0 : index
    %c0_6 = arith.constant 0 : index
    %c0_7 = arith.constant 0 : index
    %5 = vector.load %arg2[%c0_5, %c0_6, %c0_7] : memref<2x1x96xf32, #tpu.memory_space<vmem>>, vector<1x1x96xf32>
    %6 = vector.shape_cast %5 : vector<1x1x96xf32> to vector<1x96xf32>
    %7 = vector.broadcast %6 : vector<1x96xf32> to vector<64x96xf32>
    %8 = arith.addf %4, %7 : vector<64x96xf32>
    %9 = vector.shape_cast %8 : vector<64x96xf32> to vector<4x16x96xf32>
    %10 = vector.extract_strided_slice %9 {offsets = [0, 0, 0], sizes = [4, 16, 8], strides = [1, 1, 1]} : vector<4x16x96xf32> to vector<4x16x8xf32>
    %cst_8 = arith.constant 0.353553385 : f32
    %11 = vector.broadcast %cst_8 : f32 to vector<4x16x8xf32>
    %12 = arith.mulf %10, %11 : vector<4x16x8xf32>
    %13 = vector.extract_strided_slice %9 {offsets = [0, 0, 32], sizes = [4, 16, 8], strides = [1, 1, 1]} : vector<4x16x96xf32> to vector<4x16x8xf32>
    %14 = vector.extract_strided_slice %9 {offsets = [0, 0, 64], sizes = [4, 16, 8], strides = [1, 1, 1]} : vector<4x16x96xf32> to vector<4x16x8xf32>
    "tpu.trace_start"() <{level = 10 : i32, message = "bqd,bkd->bqk"}> : () -> ()
    %cst_9 = arith.constant dense<0.000000e+00> : vector<4x16x16xf32>
    %15 = tpu.matmul %12, %13, %cst_9 {dimension_numbers = #tpu.dot_dimension_numbers<[2], [2], [1], [1], [0, 0, 0, 1, 1, 1], [0], [0]>} : vector<4x16x8xf32>, vector<4x16x8xf32>, vector<4x16x16xf32> -> vector<4x16x16xf32>
    "tpu.trace_stop"() : () -> ()
    %cst_10 = arith.constant dense<0xFF800000> : vector<4x16xf32>
    %16 = vector.multi_reduction <maximumf>, %15, %cst_10 [2] : vector<4x16x16xf32> to vector<4x16xf32>
    %17 = vector.shape_cast %16 : vector<4x16xf32> to vector<4x16x1xf32>
    %18 = vector.broadcast %17 : vector<4x16x1xf32> to vector<4x16x16xf32>
    %19 = arith.subf %15, %18 : vector<4x16x16xf32>
    %20 = math.exp %19 : vector<4x16x16xf32>
    %cst_11 = arith.constant dense<0.000000e+00> : vector<4x16xf32>
    %21 = vector.multi_reduction <add>, %20, %cst_11 [2] : vector<4x16x16xf32> to vector<4x16xf32>
    %22 = vector.shape_cast %21 : vector<4x16xf32> to vector<4x16x1xf32>
    %23 = tpu.reciprocal %22 {approx = true} : vector<4x16x1xf32> -> vector<4x16x1xf32>
    %24 = vector.broadcast %23 : vector<4x16x1xf32> to vector<4x16x16xf32>
    %25 = arith.mulf %20, %24 : vector<4x16x16xf32>
    "tpu.trace_start"() <{level = 10 : i32, message = "bqk,bkd->bqd"}> : () -> ()
    %cst_12 = arith.constant dense<0.000000e+00> : vector<4x16x8xf32>
    %26 = tpu.matmul %25, %14, %cst_12 {dimension_numbers = #tpu.dot_dimension_numbers<[2], [1], [1], [2], [0, 0, 0, 1, 1, 2], [0], [0]>} : vector<4x16x16xf32>, vector<4x16x8xf32>, vector<4x16x8xf32> -> vector<4x16x8xf32>
    "tpu.trace_stop"() : () -> ()
    %27 = vector.shape_cast %26 : vector<4x16x8xf32> to vector<64x8xf32>
    %c0_13 = arith.constant 0 : index
    %c0_14 = arith.constant 0 : index
    %28 = vector.load %arg14[%c0_13, %c0_14] : memref<64x32xf32, #tpu.memory_space<vmem>>, vector<64x8xf32>
    tpu.vector_store %arg14[%c0_13, %c0_14], %27 {strides = array<i32>} : memref<64x32xf32, #tpu.memory_space<vmem>>, vector<64x8xf32>,
    %29 = vector.extract_strided_slice %9 {offsets = [0, 0, 8], sizes = [4, 16, 8], strides = [1, 1, 1]} : vector<4x16x96xf32> to vector<4x16x8xf32>
    %cst_15 = arith.constant 0.353553385 : f32
    %30 = vector.broadcast %cst_15 : f32 to vector<4x16x8xf32>
    %31 = arith.mulf %29, %30 : vector<4x16x8xf32>
    %32 = vector.extract_strided_slice %9 {offsets = [0, 0, 40], sizes = [4, 16, 8], strides = [1, 1, 1]} : vector<4x16x96xf32> to vector<4x16x8xf32>
    %33 = vector.extract_strided_slice %9 {offsets = [0, 0, 72], sizes = [4, 16, 8], strides = [1, 1, 1]} : vector<4x16x96xf32> to vector<4x16x8xf32>
    "tpu.trace_start"() <{level = 10 : i32, message = "bqd,bkd->bqk"}> : () -> ()
    %cst_16 = arith.constant dense<0.000000e+00> : vector<4x16x16xf32>
    %34 = tpu.matmul %31, %32, %cst_16 {dimension_numbers = #tpu.dot_dimension_numbers<[2], [2], [1], [1], [0, 0, 0, 1, 1, 1], [0], [0]>} : vector<4x16x8xf32>, vector<4x16x8xf32>, vector<4x16x16xf32> -> vector<4x16x16xf32>
    "tpu.trace_stop"() : () -> ()
    %cst_17 = arith.constant dense<0xFF800000> : vector<4x16xf32>
    %35 = vector.multi_reduction <maximumf>, %34, %cst_17 [2] : vector<4x16x16xf32> to vector<4x16xf32>
    %36 = vector.shape_cast %35 : vector<4x16xf32> to vector<4x16x1xf32>
    %37 = vector.broadcast %36 : vector<4x16x1xf32> to vector<4x16x16xf32>
    %38 = arith.subf %34, %37 : vector<4x16x16xf32>
    %39 = math.exp %38 : vector<4x16x16xf32>
    %cst_18 = arith.constant dense<0.000000e+00> : vector<4x16xf32>
    %40 = vector.multi_reduction <add>, %39, %cst_18 [2] : vector<4x16x16xf32> to vector<4x16xf32>
    %41 = vector.shape_cast %40 : vector<4x16xf32> to vector<4x16x1xf32>
    %42 = tpu.reciprocal %41 {approx = true} : vector<4x16x1xf32> -> vector<4x16x1xf32>
    %43 = vector.broadcast %42 : vector<4x16x1xf32> to vector<4x16x16xf32>
    %44 = arith.mulf %39, %43 : vector<4x16x16xf32>
    "tpu.trace_start"() <{level = 10 : i32, message = "bqk,bkd->bqd"}> : () -> ()
    %cst_19 = arith.constant dense<0.000000e+00> : vector<4x16x8xf32>
    %45 = tpu.matmul %44, %33, %cst_19 {dimension_numbers = #tpu.dot_dimension_numbers<[2], [1], [1], [2], [0, 0, 0, 1, 1, 2], [0], [0]>} : vector<4x16x16xf32>, vector<4x16x8xf32>, vector<4x16x8xf32> -> vector<4x16x8xf32>
    "tpu.trace_stop"() : () -> ()
    %46 = vector.shape_cast %45 : vector<4x16x8xf32> to vector<64x8xf32>
    %c0_20 = arith.constant 0 : index
    %c8 = arith.constant 8 : index
    %47 = vector.load %arg14[%c0_20, %c8] : memref<64x32xf32, #tpu.memory_space<vmem>>, vector<64x8xf32>
    tpu.vector_store %arg14[%c0_20, %c8], %46 {strides = array<i32>} : memref<64x32xf32, #tpu.memory_space<vmem>>, vector<64x8xf32>,
    %48 = vector.extract_strided_slice %9 {offsets = [0, 0, 16], sizes = [4, 16, 8], strides = [1, 1, 1]} : vector<4x16x96xf32> to vector<4x16x8xf32>
    %cst_21 = arith.constant 0.353553385 : f32
    %49 = vector.broadcast %cst_21 : f32 to vector<4x16x8xf32>
    %50 = arith.mulf %48, %49 : vector<4x16x8xf32>
    %51 = vector.extract_strided_slice %9 {offsets = [0, 0, 48], sizes = [4, 16, 8], strides = [1, 1, 1]} : vector<4x16x96xf32> to vector<4x16x8xf32>
    %52 = vector.extract_strided_slice %9 {offsets = [0, 0, 80], sizes = [4, 16, 8], strides = [1, 1, 1]} : vector<4x16x96xf32> to vector<4x16x8xf32>
    "tpu.trace_start"() <{level = 10 : i32, message = "bqd,bkd->bqk"}> : () -> ()
    %cst_22 = arith.constant dense<0.000000e+00> : vector<4x16x16xf32>
    %53 = tpu.matmul %50, %51, %cst_22 {dimension_numbers = #tpu.dot_dimension_numbers<[2], [2], [1], [1], [0, 0, 0, 1, 1, 1], [0], [0]>} : vector<4x16x8xf32>, vector<4x16x8xf32>, vector<4x16x16xf32> -> vector<4x16x16xf32>
    "tpu.trace_stop"() : () -> ()
    %cst_23 = arith.constant dense<0xFF800000> : vector<4x16xf32>
    %54 = vector.multi_reduction <maximumf>, %53, %cst_23 [2] : vector<4x16x16xf32> to vector<4x16xf32>
    %55 = vector.shape_cast %54 : vector<4x16xf32> to vector<4x16x1xf32>
    %56 = vector.broadcast %55 : vector<4x16x1xf32> to vector<4x16x16xf32>
    %57 = arith.subf %53, %56 : vector<4x16x16xf32>
    %58 = math.exp %57 : vector<4x16x16xf32>
    %cst_24 = arith.constant dense<0.000000e+00> : vector<4x16xf32>
    %59 = vector.multi_reduction <add>, %58, %cst_24 [2] : vector<4x16x16xf32> to vector<4x16xf32>
    %60 = vector.shape_cast %59 : vector<4x16xf32> to vector<4x16x1xf32>
    %61 = tpu.reciprocal %60 {approx = true} : vector<4x16x1xf32> -> vector<4x16x1xf32>
    %62 = vector.broadcast %61 : vector<4x16x1xf32> to vector<4x16x16xf32>
    %63 = arith.mulf %58, %62 : vector<4x16x16xf32>
    "tpu.trace_start"() <{level = 10 : i32, message = "bqk,bkd->bqd"}> : () -> ()
    %cst_25 = arith.constant dense<0.000000e+00> : vector<4x16x8xf32>
    %64 = tpu.matmul %63, %52, %cst_25 {dimension_numbers = #tpu.dot_dimension_numbers<[2], [1], [1], [2], [0, 0, 0, 1, 1, 2], [0], [0]>} : vector<4x16x16xf32>, vector<4x16x8xf32>, vector<4x16x8xf32> -> vector<4x16x8xf32>
    "tpu.trace_stop"() : () -> ()
    %65 = vector.shape_cast %64 : vector<4x16x8xf32> to vector<64x8xf32>
    %c0_26 = arith.constant 0 : index
    %c16 = arith.constant 16 : index
    %66 = vector.load %arg14[%c0_26, %c16] : memref<64x32xf32, #tpu.memory_space<vmem>>, vector<64x8xf32>
    tpu.vector_store %arg14[%c0_26, %c16], %65 {strides = array<i32>} : memref<64x32xf32, #tpu.memory_space<vmem>>, vector<64x8xf32>,
    %67 = vector.extract_strided_slice %9 {offsets = [0, 0, 24], sizes = [4, 16, 8], strides = [1, 1, 1]} : vector<4x16x96xf32> to vector<4x16x8xf32>
    %cst_27 = arith.constant 0.353553385 : f32
    %68 = vector.broadcast %cst_27 : f32 to vector<4x16x8xf32>
    %69 = arith.mulf %67, %68 : vector<4x16x8xf32>
    %70 = vector.extract_strided_slice %9 {offsets = [0, 0, 56], sizes = [4, 16, 8], strides = [1, 1, 1]} : vector<4x16x96xf32> to vector<4x16x8xf32>
    %71 = vector.extract_strided_slice %9 {offsets = [0, 0, 88], sizes = [4, 16, 8], strides = [1, 1, 1]} : vector<4x16x96xf32> to vector<4x16x8xf32>
    "tpu.trace_start"() <{level = 10 : i32, message = "bqd,bkd->bqk"}> : () -> ()
    %cst_28 = arith.constant dense<0.000000e+00> : vector<4x16x16xf32>
    %72 = tpu.matmul %69, %70, %cst_28 {dimension_numbers = #tpu.dot_dimension_numbers<[2], [2], [1], [1], [0, 0, 0, 1, 1, 1], [0], [0]>} : vector<4x16x8xf32>, vector<4x16x8xf32>, vector<4x16x16xf32> -> vector<4x16x16xf32>
    "tpu.trace_stop"() : () -> ()
    %cst_29 = arith.constant dense<0xFF800000> : vector<4x16xf32>
    %73 = vector.multi_reduction <maximumf>, %72, %cst_29 [2] : vector<4x16x16xf32> to vector<4x16xf32>
    %74 = vector.shape_cast %73 : vector<4x16xf32> to vector<4x16x1xf32>
    %75 = vector.broadcast %74 : vector<4x16x1xf32> to vector<4x16x16xf32>
    %76 = arith.subf %72, %75 : vector<4x16x16xf32>
    %77 = math.exp %76 : vector<4x16x16xf32>
    %cst_30 = arith.constant dense<0.000000e+00> : vector<4x16xf32>
    %78 = vector.multi_reduction <add>, %77, %cst_30 [2] : vector<4x16x16xf32> to vector<4x16xf32>
    %79 = vector.shape_cast %78 : vector<4x16xf32> to vector<4x16x1xf32>
    %80 = tpu.reciprocal %79 {approx = true} : vector<4x16x1xf32> -> vector<4x16x1xf32>
    %81 = vector.broadcast %80 : vector<4x16x1xf32> to vector<4x16x16xf32>
    %82 = arith.mulf %77, %81 : vector<4x16x16xf32>
    "tpu.trace_start"() <{level = 10 : i32, message = "bqk,bkd->bqd"}> : () -> ()
    %cst_31 = arith.constant dense<0.000000e+00> : vector<4x16x8xf32>
    %83 = tpu.matmul %82, %71, %cst_31 {dimension_numbers = #tpu.dot_dimension_numbers<[2], [1], [1], [2], [0, 0, 0, 1, 1, 2], [0], [0]>} : vector<4x16x16xf32>, vector<4x16x8xf32>, vector<4x16x8xf32> -> vector<4x16x8xf32>
    "tpu.trace_stop"() : () -> ()
    %84 = vector.shape_cast %83 : vector<4x16x8xf32> to vector<64x8xf32>
    %c0_32 = arith.constant 0 : index
    %c24 = arith.constant 24 : index
    %85 = vector.load %arg14[%c0_32, %c24] : memref<64x32xf32, #tpu.memory_space<vmem>>, vector<64x8xf32>
    tpu.vector_store %arg14[%c0_32, %c24], %84 {strides = array<i32>} : memref<64x32xf32, #tpu.memory_space<vmem>>, vector<64x8xf32>,
    %c0_33 = arith.constant 0 : index
    %c0_34 = arith.constant 0 : index
    %86 = vector.load %arg14[%c0_33, %c0_34] : memref<64x32xf32, #tpu.memory_space<vmem>>, vector<64x32xf32>
    %c0_35 = arith.constant 0 : index
    %c0_36 = arith.constant 0 : index
    %c0_37 = arith.constant 0 : index
    %87 = vector.load %arg3[%c0_35, %c0_36, %c0_37] : memref<2x32x32xf32, #tpu.memory_space<vmem>>, vector<1x32x32xf32>
    %88 = vector.shape_cast %87 : vector<1x32x32xf32> to vector<32x32xf32>
    %cst_38 = arith.constant dense<0.000000e+00> : vector<64x32xf32>
    %89 = tpu.matmul %86, %88, %cst_38 {dimension_numbers = #tpu.dot_dimension_numbers<[1], [0], [0], [1], [0, 0, 1, 1], [], []>} : vector<64x32xf32>, vector<32x32xf32>, vector<64x32xf32> -> vector<64x32xf32>
    %c0_39 = arith.constant 0 : index
    %c0_40 = arith.constant 0 : index
    %c0_41 = arith.constant 0 : index
    %90 = vector.load %arg4[%c0_39, %c0_40, %c0_41] : memref<2x1x32xf32, #tpu.memory_space<vmem>>, vector<1x1x32xf32>
    %91 = vector.shape_cast %90 : vector<1x1x32xf32> to vector<1x32xf32>
    %92 = vector.broadcast %91 : vector<1x32xf32> to vector<64x32xf32>
    %93 = arith.addf %89, %92 : vector<64x32xf32>
    %94 = arith.addf %1, %93 : vector<64x32xf32>
    %c0_42 = arith.constant 0 : index
    %c0_43 = arith.constant 0 : index
    %c0_44 = arith.constant 0 : index
    %95 = vector.load %arg9[%c0_42, %c0_43, %c0_44] : memref<2x1x32xf32, #tpu.memory_space<vmem>>, vector<1x1x32xf32>
    %96 = vector.shape_cast %95 : vector<1x1x32xf32> to vector<1x32xf32>
    %c0_45 = arith.constant 0 : index
    %c0_46 = arith.constant 0 : index
    %c0_47 = arith.constant 0 : index
    %97 = vector.load %arg10[%c0_45, %c0_46, %c0_47] : memref<2x1x32xf32, #tpu.memory_space<vmem>>, vector<1x1x32xf32>
    %98 = vector.shape_cast %97 : vector<1x1x32xf32> to vector<1x32xf32>
    %cst_48 = arith.constant dense<0.000000e+00> : vector<64xf32>
    %99 = vector.multi_reduction <add>, %94, %cst_48 [1] : vector<64x32xf32> to vector<64xf32>
    %100 = vector.shape_cast %99 : vector<64xf32> to vector<64x1xf32>
    %cst_49 = arith.constant 3.200000e+01 : f32
    %101 = vector.broadcast %cst_49 : f32 to vector<64x1xf32>
    %102 = arith.divf %100, %101 : vector<64x1xf32>
    %103 = vector.broadcast %102 : vector<64x1xf32> to vector<64x32xf32>
    %104 = arith.subf %94, %103 : vector<64x32xf32>
    %105 = arith.mulf %104, %104 : vector<64x32xf32>
    %cst_50 = arith.constant dense<0.000000e+00> : vector<64xf32>
    %106 = vector.multi_reduction <add>, %105, %cst_50 [1] : vector<64x32xf32> to vector<64xf32>
    %107 = vector.shape_cast %106 : vector<64xf32> to vector<64x1xf32>
    %cst_51 = arith.constant 3.200000e+01 : f32
    %108 = vector.broadcast %cst_51 : f32 to vector<64x1xf32>
    %109 = arith.divf %107, %108 : vector<64x1xf32>
    %110 = vector.broadcast %102 : vector<64x1xf32> to vector<64x32xf32>
    %111 = arith.subf %94, %110 : vector<64x32xf32>
    %cst_52 = arith.constant 9.99999974E-6 : f32
    %112 = vector.broadcast %cst_52 : f32 to vector<64x1xf32>
    %113 = arith.addf %109, %112 : vector<64x1xf32>
    %114 = math.rsqrt %113 : vector<64x1xf32>
    %115 = vector.broadcast %114 : vector<64x1xf32> to vector<64x32xf32>
    %116 = arith.mulf %111, %115 : vector<64x32xf32>
    %117 = vector.broadcast %96 : vector<1x32xf32> to vector<64x32xf32>
    %118 = arith.mulf %116, %117 : vector<64x32xf32>
    %119 = vector.broadcast %98 : vector<1x32xf32> to vector<64x32xf32>
    %120 = arith.addf %118, %119 : vector<64x32xf32>
    %c0_53 = arith.constant 0 : index
    %c0_54 = arith.constant 0 : index
    %c0_55 = arith.constant 0 : index
    %121 = vector.load %arg5[%c0_53, %c0_54, %c0_55] : memref<2x32x256xf32, #tpu.memory_space<vmem>>, vector<1x32x256xf32>
    %122 = vector.shape_cast %121 : vector<1x32x256xf32> to vector<32x256xf32>
    %cst_56 = arith.constant dense<0.000000e+00> : vector<64x256xf32>
    %123 = tpu.matmul %120, %122, %cst_56 {dimension_numbers = #tpu.dot_dimension_numbers<[1], [0], [0], [1], [0, 0, 1, 1], [], []>} : vector<64x32xf32>, vector<32x256xf32>, vector<64x256xf32> -> vector<64x256xf32>
    %c0_57 = arith.constant 0 : index
    %c0_58 = arith.constant 0 : index
    %c0_59 = arith.constant 0 : index
    %124 = vector.load %arg6[%c0_57, %c0_58, %c0_59] : memref<2x1x256xf32, #tpu.memory_space<vmem>>, vector<1x1x256xf32>
    %125 = vector.shape_cast %124 : vector<1x1x256xf32> to vector<1x256xf32>
    %126 = vector.broadcast %125 : vector<1x256xf32> to vector<64x256xf32>
    %127 = arith.addf %123, %126 : vector<64x256xf32>
    %cst_60 = arith.constant 0.000000e+00 : f32
    %128 = vector.broadcast %cst_60 : f32 to vector<64x256xf32>
    %129 = arith.maximumf %127, %128 : vector<64x256xf32>
    %c0_61 = arith.constant 0 : index
    %c0_62 = arith.constant 0 : index
    %c0_63 = arith.constant 0 : index
    %130 = vector.load %arg7[%c0_61, %c0_62, %c0_63] : memref<2x256x32xf32, #tpu.memory_space<vmem>>, vector<1x256x32xf32>
    %131 = vector.shape_cast %130 : vector<1x256x32xf32> to vector<256x32xf32>
    %cst_64 = arith.constant dense<0.000000e+00> : vector<64x32xf32>
    %132 = tpu.matmul %129, %131, %cst_64 {dimension_numbers = #tpu.dot_dimension_numbers<[1], [0], [0], [1], [0, 0, 1, 1], [], []>} : vector<64x256xf32>, vector<256x32xf32>, vector<64x32xf32> -> vector<64x32xf32>
    %c0_65 = arith.constant 0 : index
    %c0_66 = arith.constant 0 : index
    %c0_67 = arith.constant 0 : index
    %133 = vector.load %arg8[%c0_65, %c0_66, %c0_67] : memref<2x1x32xf32, #tpu.memory_space<vmem>>, vector<1x1x32xf32>
    %134 = vector.shape_cast %133 : vector<1x1x32xf32> to vector<1x32xf32>
    %135 = vector.broadcast %134 : vector<1x32xf32> to vector<64x32xf32>
    %136 = arith.addf %132, %135 : vector<64x32xf32>
    %137 = arith.addf %120, %136 : vector<64x32xf32>
    %c0_68 = arith.constant 0 : index
    %c0_69 = arith.constant 0 : index
    %c0_70 = arith.constant 0 : index
    %138 = vector.load %arg11[%c0_68, %c0_69, %c0_70] : memref<2x1x32xf32, #tpu.memory_space<vmem>>, vector<1x1x32xf32>
    %139 = vector.shape_cast %138 : vector<1x1x32xf32> to vector<1x32xf32>
    %c0_71 = arith.constant 0 : index
    %c0_72 = arith.constant 0 : index
    %c0_73 = arith.constant 0 : index
    %140 = vector.load %arg12[%c0_71, %c0_72, %c0_73] : memref<2x1x32xf32, #tpu.memory_space<vmem>>, vector<1x1x32xf32>
    %141 = vector.shape_cast %140 : vector<1x1x32xf32> to vector<1x32xf32>
    %cst_74 = arith.constant dense<0.000000e+00> : vector<64xf32>
    %142 = vector.multi_reduction <add>, %137, %cst_74 [1] : vector<64x32xf32> to vector<64xf32>
    %143 = vector.shape_cast %142 : vector<64xf32> to vector<64x1xf32>
    %cst_75 = arith.constant 3.200000e+01 : f32
    %144 = vector.broadcast %cst_75 : f32 to vector<64x1xf32>
    %145 = arith.divf %143, %144 : vector<64x1xf32>
    %146 = vector.broadcast %145 : vector<64x1xf32> to vector<64x32xf32>
    %147 = arith.subf %137, %146 : vector<64x32xf32>
    %148 = arith.mulf %147, %147 : vector<64x32xf32>
    %cst_76 = arith.constant dense<0.000000e+00> : vector<64xf32>
    %149 = vector.multi_reduction <add>, %148, %cst_76 [1] : vector<64x32xf32> to vector<64xf32>
    %150 = vector.shape_cast %149 : vector<64xf32> to vector<64x1xf32>
    %cst_77 = arith.constant 3.200000e+01 : f32
    %151 = vector.broadcast %cst_77 : f32 to vector<64x1xf32>
    %152 = arith.divf %150, %151 : vector<64x1xf32>
    %153 = vector.broadcast %145 : vector<64x1xf32> to vector<64x32xf32>
    %154 = arith.subf %137, %153 : vector<64x32xf32>
    %cst_78 = arith.constant 9.99999974E-6 : f32
    %155 = vector.broadcast %cst_78 : f32 to vector<64x1xf32>
    %156 = arith.addf %152, %155 : vector<64x1xf32>
    %157 = math.rsqrt %156 : vector<64x1xf32>
    %158 = vector.broadcast %157 : vector<64x1xf32> to vector<64x32xf32>
    %159 = arith.mulf %154, %158 : vector<64x32xf32>
    %160 = vector.broadcast %139 : vector<1x32xf32> to vector<64x32xf32>
    %161 = arith.mulf %159, %160 : vector<64x32xf32>
    %162 = vector.broadcast %141 : vector<1x32xf32> to vector<64x32xf32>
    %163 = arith.addf %161, %162 : vector<64x32xf32>
    %c1 = arith.constant 1 : index
    %c0_79 = arith.constant 0 : index
    %c0_80 = arith.constant 0 : index
    %164 = vector.load %arg1[%c1, %c0_79, %c0_80] : memref<2x32x96xf32, #tpu.memory_space<vmem>>, vector<1x32x96xf32>
    %165 = vector.shape_cast %164 : vector<1x32x96xf32> to vector<32x96xf32>
    %cst_81 = arith.constant dense<0.000000e+00> : vector<64x96xf32>
    %166 = tpu.matmul %163, %165, %cst_81 {dimension_numbers = #tpu.dot_dimension_numbers<[1], [0], [0], [1], [0, 0, 1, 1], [], []>} : vector<64x32xf32>, vector<32x96xf32>, vector<64x96xf32> -> vector<64x96xf32>
    %c1_82 = arith.constant 1 : index
    %c0_83 = arith.constant 0 : index
    %c0_84 = arith.constant 0 : index
    %167 = vector.load %arg2[%c1_82, %c0_83, %c0_84] : memref<2x1x96xf32, #tpu.memory_space<vmem>>, vector<1x1x96xf32>
    %168 = vector.shape_cast %167 : vector<1x1x96xf32> to vector<1x96xf32>
    %169 = vector.broadcast %168 : vector<1x96xf32> to vector<64x96xf32>
    %170 = arith.addf %166, %169 : vector<64x96xf32>
    %171 = vector.shape_cast %170 : vector<64x96xf32> to vector<4x16x96xf32>
    %172 = vector.extract_strided_slice %171 {offsets = [0, 0, 0], sizes = [4, 16, 8], strides = [1, 1, 1]} : vector<4x16x96xf32> to vector<4x16x8xf32>
    %cst_85 = arith.constant 0.353553385 : f32
    %173 = vector.broadcast %cst_85 : f32 to vector<4x16x8xf32>
    %174 = arith.mulf %172, %173 : vector<4x16x8xf32>
    %175 = vector.extract_strided_slice %171 {offsets = [0, 0, 32], sizes = [4, 16, 8], strides = [1, 1, 1]} : vector<4x16x96xf32> to vector<4x16x8xf32>
    %176 = vector.extract_strided_slice %171 {offsets = [0, 0, 64], sizes = [4, 16, 8], strides = [1, 1, 1]} : vector<4x16x96xf32> to vector<4x16x8xf32>
    "tpu.trace_start"() <{level = 10 : i32, message = "bqd,bkd->bqk"}> : () -> ()
    %cst_86 = arith.constant dense<0.000000e+00> : vector<4x16x16xf32>
    %177 = tpu.matmul %174, %175, %cst_86 {dimension_numbers = #tpu.dot_dimension_numbers<[2], [2], [1], [1], [0, 0, 0, 1, 1, 1], [0], [0]>} : vector<4x16x8xf32>, vector<4x16x8xf32>, vector<4x16x16xf32> -> vector<4x16x16xf32>
    "tpu.trace_stop"() : () -> ()
    %cst_87 = arith.constant dense<0xFF800000> : vector<4x16xf32>
    %178 = vector.multi_reduction <maximumf>, %177, %cst_87 [2] : vector<4x16x16xf32> to vector<4x16xf32>
    %179 = vector.shape_cast %178 : vector<4x16xf32> to vector<4x16x1xf32>
    %180 = vector.broadcast %179 : vector<4x16x1xf32> to vector<4x16x16xf32>
    %181 = arith.subf %177, %180 : vector<4x16x16xf32>
    %182 = math.exp %181 : vector<4x16x16xf32>
    %cst_88 = arith.constant dense<0.000000e+00> : vector<4x16xf32>
    %183 = vector.multi_reduction <add>, %182, %cst_88 [2] : vector<4x16x16xf32> to vector<4x16xf32>
    %184 = vector.shape_cast %183 : vector<4x16xf32> to vector<4x16x1xf32>
    %185 = tpu.reciprocal %184 {approx = true} : vector<4x16x1xf32> -> vector<4x16x1xf32>
    %186 = vector.broadcast %185 : vector<4x16x1xf32> to vector<4x16x16xf32>
    %187 = arith.mulf %182, %186 : vector<4x16x16xf32>
    "tpu.trace_start"() <{level = 10 : i32, message = "bqk,bkd->bqd"}> : () -> ()
    %cst_89 = arith.constant dense<0.000000e+00> : vector<4x16x8xf32>
    %188 = tpu.matmul %187, %176, %cst_89 {dimension_numbers = #tpu.dot_dimension_numbers<[2], [1], [1], [2], [0, 0, 0, 1, 1, 2], [0], [0]>} : vector<4x16x16xf32>, vector<4x16x8xf32>, vector<4x16x8xf32> -> vector<4x16x8xf32>
    "tpu.trace_stop"() : () -> ()
    %189 = vector.shape_cast %188 : vector<4x16x8xf32> to vector<64x8xf32>
    %c0_90 = arith.constant 0 : index
    %c0_91 = arith.constant 0 : index
    %190 = vector.load %arg14[%c0_90, %c0_91] : memref<64x32xf32, #tpu.memory_space<vmem>>, vector<64x8xf32>
    tpu.vector_store %arg14[%c0_90, %c0_91], %189 {strides = array<i32>} : memref<64x32xf32, #tpu.memory_space<vmem>>, vector<64x8xf32>,
    %191 = vector.extract_strided_slice %171 {offsets = [0, 0, 8], sizes = [4, 16, 8], strides = [1, 1, 1]} : vector<4x16x96xf32> to vector<4x16x8xf32>
    %cst_92 = arith.constant 0.353553385 : f32
    %192 = vector.broadcast %cst_92 : f32 to vector<4x16x8xf32>
    %193 = arith.mulf %191, %192 : vector<4x16x8xf32>
    %194 = vector.extract_strided_slice %171 {offsets = [0, 0, 40], sizes = [4, 16, 8], strides = [1, 1, 1]} : vector<4x16x96xf32> to vector<4x16x8xf32>
    %195 = vector.extract_strided_slice %171 {offsets = [0, 0, 72], sizes = [4, 16, 8], strides = [1, 1, 1]} : vector<4x16x96xf32> to vector<4x16x8xf32>
    "tpu.trace_start"() <{level = 10 : i32, message = "bqd,bkd->bqk"}> : () -> ()
    %cst_93 = arith.constant dense<0.000000e+00> : vector<4x16x16xf32>
    %196 = tpu.matmul %193, %194, %cst_93 {dimension_numbers = #tpu.dot_dimension_numbers<[2], [2], [1], [1], [0, 0, 0, 1, 1, 1], [0], [0]>} : vector<4x16x8xf32>, vector<4x16x8xf32>, vector<4x16x16xf32> -> vector<4x16x16xf32>
    "tpu.trace_stop"() : () -> ()
    %cst_94 = arith.constant dense<0xFF800000> : vector<4x16xf32>
    %197 = vector.multi_reduction <maximumf>, %196, %cst_94 [2] : vector<4x16x16xf32> to vector<4x16xf32>
    %198 = vector.shape_cast %197 : vector<4x16xf32> to vector<4x16x1xf32>
    %199 = vector.broadcast %198 : vector<4x16x1xf32> to vector<4x16x16xf32>
    %200 = arith.subf %196, %199 : vector<4x16x16xf32>
    %201 = math.exp %200 : vector<4x16x16xf32>
    %cst_95 = arith.constant dense<0.000000e+00> : vector<4x16xf32>
    %202 = vector.multi_reduction <add>, %201, %cst_95 [2] : vector<4x16x16xf32> to vector<4x16xf32>
    %203 = vector.shape_cast %202 : vector<4x16xf32> to vector<4x16x1xf32>
    %204 = tpu.reciprocal %203 {approx = true} : vector<4x16x1xf32> -> vector<4x16x1xf32>
    %205 = vector.broadcast %204 : vector<4x16x1xf32> to vector<4x16x16xf32>
    %206 = arith.mulf %201, %205 : vector<4x16x16xf32>
    "tpu.trace_start"() <{level = 10 : i32, message = "bqk,bkd->bqd"}> : () -> ()
    %cst_96 = arith.constant dense<0.000000e+00> : vector<4x16x8xf32>
    %207 = tpu.matmul %206, %195, %cst_96 {dimension_numbers = #tpu.dot_dimension_numbers<[2], [1], [1], [2], [0, 0, 0, 1, 1, 2], [0], [0]>} : vector<4x16x16xf32>, vector<4x16x8xf32>, vector<4x16x8xf32> -> vector<4x16x8xf32>
    "tpu.trace_stop"() : () -> ()
    %208 = vector.shape_cast %207 : vector<4x16x8xf32> to vector<64x8xf32>
    %c0_97 = arith.constant 0 : index
    %c8_98 = arith.constant 8 : index
    %209 = vector.load %arg14[%c0_97, %c8_98] : memref<64x32xf32, #tpu.memory_space<vmem>>, vector<64x8xf32>
    tpu.vector_store %arg14[%c0_97, %c8_98], %208 {strides = array<i32>} : memref<64x32xf32, #tpu.memory_space<vmem>>, vector<64x8xf32>,
    %210 = vector.extract_strided_slice %171 {offsets = [0, 0, 16], sizes = [4, 16, 8], strides = [1, 1, 1]} : vector<4x16x96xf32> to vector<4x16x8xf32>
    %cst_99 = arith.constant 0.353553385 : f32
    %211 = vector.broadcast %cst_99 : f32 to vector<4x16x8xf32>
    %212 = arith.mulf %210, %211 : vector<4x16x8xf32>
    %213 = vector.extract_strided_slice %171 {offsets = [0, 0, 48], sizes = [4, 16, 8], strides = [1, 1, 1]} : vector<4x16x96xf32> to vector<4x16x8xf32>
    %214 = vector.extract_strided_slice %171 {offsets = [0, 0, 80], sizes = [4, 16, 8], strides = [1, 1, 1]} : vector<4x16x96xf32> to vector<4x16x8xf32>
    "tpu.trace_start"() <{level = 10 : i32, message = "bqd,bkd->bqk"}> : () -> ()
    %cst_100 = arith.constant dense<0.000000e+00> : vector<4x16x16xf32>
    %215 = tpu.matmul %212, %213, %cst_100 {dimension_numbers = #tpu.dot_dimension_numbers<[2], [2], [1], [1], [0, 0, 0, 1, 1, 1], [0], [0]>} : vector<4x16x8xf32>, vector<4x16x8xf32>, vector<4x16x16xf32> -> vector<4x16x16xf32>
    "tpu.trace_stop"() : () -> ()
    %cst_101 = arith.constant dense<0xFF800000> : vector<4x16xf32>
    %216 = vector.multi_reduction <maximumf>, %215, %cst_101 [2] : vector<4x16x16xf32> to vector<4x16xf32>
    %217 = vector.shape_cast %216 : vector<4x16xf32> to vector<4x16x1xf32>
    %218 = vector.broadcast %217 : vector<4x16x1xf32> to vector<4x16x16xf32>
    %219 = arith.subf %215, %218 : vector<4x16x16xf32>
    %220 = math.exp %219 : vector<4x16x16xf32>
    %cst_102 = arith.constant dense<0.000000e+00> : vector<4x16xf32>
    %221 = vector.multi_reduction <add>, %220, %cst_102 [2] : vector<4x16x16xf32> to vector<4x16xf32>
    %222 = vector.shape_cast %221 : vector<4x16xf32> to vector<4x16x1xf32>
    %223 = tpu.reciprocal %222 {approx = true} : vector<4x16x1xf32> -> vector<4x16x1xf32>
    %224 = vector.broadcast %223 : vector<4x16x1xf32> to vector<4x16x16xf32>
    %225 = arith.mulf %220, %224 : vector<4x16x16xf32>
    "tpu.trace_start"() <{level = 10 : i32, message = "bqk,bkd->bqd"}> : () -> ()
    %cst_103 = arith.constant dense<0.000000e+00> : vector<4x16x8xf32>
    %226 = tpu.matmul %225, %214, %cst_103 {dimension_numbers = #tpu.dot_dimension_numbers<[2], [1], [1], [2], [0, 0, 0, 1, 1, 2], [0], [0]>} : vector<4x16x16xf32>, vector<4x16x8xf32>, vector<4x16x8xf32> -> vector<4x16x8xf32>
    "tpu.trace_stop"() : () -> ()
    %227 = vector.shape_cast %226 : vector<4x16x8xf32> to vector<64x8xf32>
    %c0_104 = arith.constant 0 : index
    %c16_105 = arith.constant 16 : index
    %228 = vector.load %arg14[%c0_104, %c16_105] : memref<64x32xf32, #tpu.memory_space<vmem>>, vector<64x8xf32>
    tpu.vector_store %arg14[%c0_104, %c16_105], %227 {strides = array<i32>} : memref<64x32xf32, #tpu.memory_space<vmem>>, vector<64x8xf32>,
    %229 = vector.extract_strided_slice %171 {offsets = [0, 0, 24], sizes = [4, 16, 8], strides = [1, 1, 1]} : vector<4x16x96xf32> to vector<4x16x8xf32>
    %cst_106 = arith.constant 0.353553385 : f32
    %230 = vector.broadcast %cst_106 : f32 to vector<4x16x8xf32>
    %231 = arith.mulf %229, %230 : vector<4x16x8xf32>
    %232 = vector.extract_strided_slice %171 {offsets = [0, 0, 56], sizes = [4, 16, 8], strides = [1, 1, 1]} : vector<4x16x96xf32> to vector<4x16x8xf32>
    %233 = vector.extract_strided_slice %171 {offsets = [0, 0, 88], sizes = [4, 16, 8], strides = [1, 1, 1]} : vector<4x16x96xf32> to vector<4x16x8xf32>
    "tpu.trace_start"() <{level = 10 : i32, message = "bqd,bkd->bqk"}> : () -> ()
    %cst_107 = arith.constant dense<0.000000e+00> : vector<4x16x16xf32>
    %234 = tpu.matmul %231, %232, %cst_107 {dimension_numbers = #tpu.dot_dimension_numbers<[2], [2], [1], [1], [0, 0, 0, 1, 1, 1], [0], [0]>} : vector<4x16x8xf32>, vector<4x16x8xf32>, vector<4x16x16xf32> -> vector<4x16x16xf32>
    "tpu.trace_stop"() : () -> ()
    %cst_108 = arith.constant dense<0xFF800000> : vector<4x16xf32>
    %235 = vector.multi_reduction <maximumf>, %234, %cst_108 [2] : vector<4x16x16xf32> to vector<4x16xf32>
    %236 = vector.shape_cast %235 : vector<4x16xf32> to vector<4x16x1xf32>
    %237 = vector.broadcast %236 : vector<4x16x1xf32> to vector<4x16x16xf32>
    %238 = arith.subf %234, %237 : vector<4x16x16xf32>
    %239 = math.exp %238 : vector<4x16x16xf32>
    %cst_109 = arith.constant dense<0.000000e+00> : vector<4x16xf32>
    %240 = vector.multi_reduction <add>, %239, %cst_109 [2] : vector<4x16x16xf32> to vector<4x16xf32>
    %241 = vector.shape_cast %240 : vector<4x16xf32> to vector<4x16x1xf32>
    %242 = tpu.reciprocal %241 {approx = true} : vector<4x16x1xf32> -> vector<4x16x1xf32>
    %243 = vector.broadcast %242 : vector<4x16x1xf32> to vector<4x16x16xf32>
    %244 = arith.mulf %239, %243 : vector<4x16x16xf32>
    "tpu.trace_start"() <{level = 10 : i32, message = "bqk,bkd->bqd"}> : () -> ()
    %cst_110 = arith.constant dense<0.000000e+00> : vector<4x16x8xf32>
    %245 = tpu.matmul %244, %233, %cst_110 {dimension_numbers = #tpu.dot_dimension_numbers<[2], [1], [1], [2], [0, 0, 0, 1, 1, 2], [0], [0]>} : vector<4x16x16xf32>, vector<4x16x8xf32>, vector<4x16x8xf32> -> vector<4x16x8xf32>
    "tpu.trace_stop"() : () -> ()
    %246 = vector.shape_cast %245 : vector<4x16x8xf32> to vector<64x8xf32>
    %c0_111 = arith.constant 0 : index
    %c24_112 = arith.constant 24 : index
    %247 = vector.load %arg14[%c0_111, %c24_112] : memref<64x32xf32, #tpu.memory_space<vmem>>, vector<64x8xf32>
    tpu.vector_store %arg14[%c0_111, %c24_112], %246 {strides = array<i32>} : memref<64x32xf32, #tpu.memory_space<vmem>>, vector<64x8xf32>,
    %c0_113 = arith.constant 0 : index
    %c0_114 = arith.constant 0 : index
    %248 = vector.load %arg14[%c0_113, %c0_114] : memref<64x32xf32, #tpu.memory_space<vmem>>, vector<64x32xf32>
    %c1_115 = arith.constant 1 : index
    %c0_116 = arith.constant 0 : index
    %c0_117 = arith.constant 0 : index
    %249 = vector.load %arg3[%c1_115, %c0_116, %c0_117] : memref<2x32x32xf32, #tpu.memory_space<vmem>>, vector<1x32x32xf32>
    %250 = vector.shape_cast %249 : vector<1x32x32xf32> to vector<32x32xf32>
    %cst_118 = arith.constant dense<0.000000e+00> : vector<64x32xf32>
    %251 = tpu.matmul %248, %250, %cst_118 {dimension_numbers = #tpu.dot_dimension_numbers<[1], [0], [0], [1], [0, 0, 1, 1], [], []>} : vector<64x32xf32>, vector<32x32xf32>, vector<64x32xf32> -> vector<64x32xf32>
    %c1_119 = arith.constant 1 : index
    %c0_120 = arith.constant 0 : index
    %c0_121 = arith.constant 0 : index
    %252 = vector.load %arg4[%c1_119, %c0_120, %c0_121] : memref<2x1x32xf32, #tpu.memory_space<vmem>>, vector<1x1x32xf32>
    %253 = vector.shape_cast %252 : vector<1x1x32xf32> to vector<1x32xf32>
    %254 = vector.broadcast %253 : vector<1x32xf32> to vector<64x32xf32>
    %255 = arith.addf %251, %254 : vector<64x32xf32>
    %256 = arith.addf %163, %255 : vector<64x32xf32>
    %c1_122 = arith.constant 1 : index
    %c0_123 = arith.constant 0 : index
    %c0_124 = arith.constant 0 : index
    %257 = vector.load %arg9[%c1_122, %c0_123, %c0_124] : memref<2x1x32xf32, #tpu.memory_space<vmem>>, vector<1x1x32xf32>
    %258 = vector.shape_cast %257 : vector<1x1x32xf32> to vector<1x32xf32>
    %c1_125 = arith.constant 1 : index
    %c0_126 = arith.constant 0 : index
    %c0_127 = arith.constant 0 : index
    %259 = vector.load %arg10[%c1_125, %c0_126, %c0_127] : memref<2x1x32xf32, #tpu.memory_space<vmem>>, vector<1x1x32xf32>
    %260 = vector.shape_cast %259 : vector<1x1x32xf32> to vector<1x32xf32>
    %cst_128 = arith.constant dense<0.000000e+00> : vector<64xf32>
    %261 = vector.multi_reduction <add>, %256, %cst_128 [1] : vector<64x32xf32> to vector<64xf32>
    %262 = vector.shape_cast %261 : vector<64xf32> to vector<64x1xf32>
    %cst_129 = arith.constant 3.200000e+01 : f32
    %263 = vector.broadcast %cst_129 : f32 to vector<64x1xf32>
    %264 = arith.divf %262, %263 : vector<64x1xf32>
    %265 = vector.broadcast %264 : vector<64x1xf32> to vector<64x32xf32>
    %266 = arith.subf %256, %265 : vector<64x32xf32>
    %267 = arith.mulf %266, %266 : vector<64x32xf32>
    %cst_130 = arith.constant dense<0.000000e+00> : vector<64xf32>
    %268 = vector.multi_reduction <add>, %267, %cst_130 [1] : vector<64x32xf32> to vector<64xf32>
    %269 = vector.shape_cast %268 : vector<64xf32> to vector<64x1xf32>
    %cst_131 = arith.constant 3.200000e+01 : f32
    %270 = vector.broadcast %cst_131 : f32 to vector<64x1xf32>
    %271 = arith.divf %269, %270 : vector<64x1xf32>
    %272 = vector.broadcast %264 : vector<64x1xf32> to vector<64x32xf32>
    %273 = arith.subf %256, %272 : vector<64x32xf32>
    %cst_132 = arith.constant 9.99999974E-6 : f32
    %274 = vector.broadcast %cst_132 : f32 to vector<64x1xf32>
    %275 = arith.addf %271, %274 : vector<64x1xf32>
    %276 = math.rsqrt %275 : vector<64x1xf32>
    %277 = vector.broadcast %276 : vector<64x1xf32> to vector<64x32xf32>
    %278 = arith.mulf %273, %277 : vector<64x32xf32>
    %279 = vector.broadcast %258 : vector<1x32xf32> to vector<64x32xf32>
    %280 = arith.mulf %278, %279 : vector<64x32xf32>
    %281 = vector.broadcast %260 : vector<1x32xf32> to vector<64x32xf32>
    %282 = arith.addf %280, %281 : vector<64x32xf32>
    %c1_133 = arith.constant 1 : index
    %c0_134 = arith.constant 0 : index
    %c0_135 = arith.constant 0 : index
    %283 = vector.load %arg5[%c1_133, %c0_134, %c0_135] : memref<2x32x256xf32, #tpu.memory_space<vmem>>, vector<1x32x256xf32>
    %284 = vector.shape_cast %283 : vector<1x32x256xf32> to vector<32x256xf32>
    %cst_136 = arith.constant dense<0.000000e+00> : vector<64x256xf32>
    %285 = tpu.matmul %282, %284, %cst_136 {dimension_numbers = #tpu.dot_dimension_numbers<[1], [0], [0], [1], [0, 0, 1, 1], [], []>} : vector<64x32xf32>, vector<32x256xf32>, vector<64x256xf32> -> vector<64x256xf32>
    %c1_137 = arith.constant 1 : index
    %c0_138 = arith.constant 0 : index
    %c0_139 = arith.constant 0 : index
    %286 = vector.load %arg6[%c1_137, %c0_138, %c0_139] : memref<2x1x256xf32, #tpu.memory_space<vmem>>, vector<1x1x256xf32>
    %287 = vector.shape_cast %286 : vector<1x1x256xf32> to vector<1x256xf32>
    %288 = vector.broadcast %287 : vector<1x256xf32> to vector<64x256xf32>
    %289 = arith.addf %285, %288 : vector<64x256xf32>
    %cst_140 = arith.constant 0.000000e+00 : f32
    %290 = vector.broadcast %cst_140 : f32 to vector<64x256xf32>
    %291 = arith.maximumf %289, %290 : vector<64x256xf32>
    %c1_141 = arith.constant 1 : index
    %c0_142 = arith.constant 0 : index
    %c0_143 = arith.constant 0 : index
    %292 = vector.load %arg7[%c1_141, %c0_142, %c0_143] : memref<2x256x32xf32, #tpu.memory_space<vmem>>, vector<1x256x32xf32>
    %293 = vector.shape_cast %292 : vector<1x256x32xf32> to vector<256x32xf32>
    %cst_144 = arith.constant dense<0.000000e+00> : vector<64x32xf32>
    %294 = tpu.matmul %291, %293, %cst_144 {dimension_numbers = #tpu.dot_dimension_numbers<[1], [0], [0], [1], [0, 0, 1, 1], [], []>} : vector<64x256xf32>, vector<256x32xf32>, vector<64x32xf32> -> vector<64x32xf32>
    %c1_145 = arith.constant 1 : index
    %c0_146 = arith.constant 0 : index
    %c0_147 = arith.constant 0 : index
    %295 = vector.load %arg8[%c1_145, %c0_146, %c0_147] : memref<2x1x32xf32, #tpu.memory_space<vmem>>, vector<1x1x32xf32>
    %296 = vector.shape_cast %295 : vector<1x1x32xf32> to vector<1x32xf32>
    %297 = vector.broadcast %296 : vector<1x32xf32> to vector<64x32xf32>
    %298 = arith.addf %294, %297 : vector<64x32xf32>
    %299 = arith.addf %282, %298 : vector<64x32xf32>
    %c1_148 = arith.constant 1 : index
    %c0_149 = arith.constant 0 : index
    %c0_150 = arith.constant 0 : index
    %300 = vector.load %arg11[%c1_148, %c0_149, %c0_150] : memref<2x1x32xf32, #tpu.memory_space<vmem>>, vector<1x1x32xf32>
    %301 = vector.shape_cast %300 : vector<1x1x32xf32> to vector<1x32xf32>
    %c1_151 = arith.constant 1 : index
    %c0_152 = arith.constant 0 : index
    %c0_153 = arith.constant 0 : index
    %302 = vector.load %arg12[%c1_151, %c0_152, %c0_153] : memref<2x1x32xf32, #tpu.memory_space<vmem>>, vector<1x1x32xf32>
    %303 = vector.shape_cast %302 : vector<1x1x32xf32> to vector<1x32xf32>
    %cst_154 = arith.constant dense<0.000000e+00> : vector<64xf32>
    %304 = vector.multi_reduction <add>, %299, %cst_154 [1] : vector<64x32xf32> to vector<64xf32>
    %305 = vector.shape_cast %304 : vector<64xf32> to vector<64x1xf32>
    %cst_155 = arith.constant 3.200000e+01 : f32
    %306 = vector.broadcast %cst_155 : f32 to vector<64x1xf32>
    %307 = arith.divf %305, %306 : vector<64x1xf32>
    %308 = vector.broadcast %307 : vector<64x1xf32> to vector<64x32xf32>
    %309 = arith.subf %299, %308 : vector<64x32xf32>
    %310 = arith.mulf %309, %309 : vector<64x32xf32>
    %cst_156 = arith.constant dense<0.000000e+00> : vector<64xf32>
    %311 = vector.multi_reduction <add>, %310, %cst_156 [1] : vector<64x32xf32> to vector<64xf32>
    %312 = vector.shape_cast %311 : vector<64xf32> to vector<64x1xf32>
    %cst_157 = arith.constant 3.200000e+01 : f32
    %313 = vector.broadcast %cst_157 : f32 to vector<64x1xf32>
    %314 = arith.divf %312, %313 : vector<64x1xf32>
    %315 = vector.broadcast %307 : vector<64x1xf32> to vector<64x32xf32>
    %316 = arith.subf %299, %315 : vector<64x32xf32>
    %cst_158 = arith.constant 9.99999974E-6 : f32
    %317 = vector.broadcast %cst_158 : f32 to vector<64x1xf32>
    %318 = arith.addf %314, %317 : vector<64x1xf32>
    %319 = math.rsqrt %318 : vector<64x1xf32>
    %320 = vector.broadcast %319 : vector<64x1xf32> to vector<64x32xf32>
    %321 = arith.mulf %316, %320 : vector<64x32xf32>
    %322 = vector.broadcast %301 : vector<1x32xf32> to vector<64x32xf32>
    %323 = arith.mulf %321, %322 : vector<64x32xf32>
    %324 = vector.broadcast %303 : vector<1x32xf32> to vector<64x32xf32>
    %325 = arith.addf %323, %324 : vector<64x32xf32>
    %cst_159 = arith.constant 0.000000e+00 : f32
    %326 = vector.broadcast %cst_159 : f32 to vector<64x32xf32>
    %327 = arith.cmpf ogt, %325, %326 : vector<64x32xf32>
    %cst_160 = arith.constant 0.00999999977 : f32
    %328 = vector.broadcast %cst_160 : f32 to vector<64x32xf32>
    %329 = arith.mulf %328, %325 : vector<64x32xf32>
    %330 = arith.select %327, %325, %329 : vector<64x32xi1>, vector<64x32xf32>
    %331 = vector.shape_cast %330 : vector<64x32xf32> to vector<4x16x32xf32>
    %c0_161 = arith.constant 0 : index
    %c0_162 = arith.constant 0 : index
    %c0_163 = arith.constant 0 : index
    %332 = vector.load %arg13[%c0_161, %c0_162, %c0_163] : memref<4x16x32xf32, #tpu.memory_space<vmem>>, vector<4x16x32xf32>
    tpu.vector_store %arg13[%c0_161, %c0_162, %c0_163], %331 {strides = array<i32>} : memref<4x16x32xf32, #tpu.memory_space<vmem>>, vector<4x16x32xf32>,
    return
  }
}

</mosaic_0001>

<bundles_post_ra>
// kernel: transformer_encoder.1
= control target key start
LH: loop header
LB: loop body
LE: loop exit
PB: predicated region body
PF: predicated region fallthrough
CT: control target
= control target key end

     0   :  { %vm64_vm0 = vcmask 261120   ;;  %s13133_s0 = inlined_call_operand.vmem [shape: f32[4,16,32], index: 0, kind: input, shape index: {}]   ;;  %s13134_s1 = inlined_call_operand.vmem [shape: f32[2,32,96], index: 1, kind: input, shape index: {}]   ;;  %s13135_s2 = inlined_call_operand.vmem [shape: f32[2,1,96], index: 2, kind: input, shape index: {}]   ;;  %s13136_s3 = inlined_call_operand.vmem [shape: f32[2,32,32], index: 3, kind: input, shape index: {}]   ;;  %s13137_s4 = inlined_call_operand.vmem [shape: f32[2,1,32], index: 4, kind: input, shape index: {}]   ;;  %s13138_s5 = inlined_call_operand.vmem [shape: f32[2,32,256], index: 5, kind: input, shape index: {}]   ;;  %s13139_s6 = inlined_call_operand.vmem [shape: f32[2,1,256], index: 6, kind: input, shape index: {}]   ;;  %s13140_s7 = inlined_call_operand.vmem [shape: f32[2,256,32], index: 7, kind: input, shape index: {}]   ;;  %s13141_s8 = inlined_call_operand.vmem [shape: f32[2,1,32], index: 8, kind: input, shape index: {}]   ;;  %s13142_s9 = inlined_call_operand.vmem [shape: f32[2,1,32], index: 9, kind: input, shape index: {}]   ;;  %s13143_s10 = inlined_call_operand.vmem [shape: f32[2,1,32], index: 10, kind: input, shape index: {}]   ;;  %s13144_s11 = inlined_call_operand.vmem [shape: f32[2,1,32], index: 11, kind: input, shape index: {}]   ;;  %s13145_s12 = inlined_call_operand.vmem [shape: f32[2,1,32], index: 12, kind: input, shape index: {}]   ;;  %s13146_s13 = inlined_call_operand.hbm [shape: f32[4,16,32], index: 13, kind: output, shape index: {}]  }
   0x1   :  { %v53_v0 = vld [vmem:[%s13134_s1] sm:$0xff]  ;;  %v54_v1 = vld [vmem:[%s13134_s1 + $0x8] sm:$0xff]  ;;  %v55_v2 = vld [vmem:[%s13134_s1 + $0x10] sm:$0xff] }
   0x2   :  { %v9824_v3 = vpack.c.bf16 %v54_v1, %v53_v0  ;;  %v56_v4 = vld [vmem:[%s13134_s1 + $0x18] sm:$0xff]  ;;  %v45_v5 = vld [vmem:[%s13133_s0] sm:$0xff] }
   0x3   :  { %v9828_v6 = vpack.c.bf16 %v56_v4, %v55_v2  ;;  %9304 = vmatprep.mubr.msk.f32.mxu1 %vm64_vm0, %v45_v5 }
   0x4   :  { %9825 = vmatprep.subr.bf16.mxu1 %v9824_v3 }
   0x5   :  { %9827 = vmatpush3.bf16.msra.mxu1 %v9824_v3 }
   0x6   :  { %18 = vsyncpa [#allocation4], 0  ;;  %9829 = vmatprep.subr.bf16.mxu1 %v9828_v6  ;;  %v46_v7 = vld [vmem:[%s13133_s0 + $0x8] sm:$0xff]  ;;  %v47_v8 = vld [vmem:[%s13133_s0 + $0x10] sm:$0xff]  ;;  %vm208_vm1 = vcmask 64512   ;;  %s10945_s17 = smov 96  }
   0x7   :  { %v48_v9 = vld [vmem:[%s13133_s0 + $0x18] sm:$0xff]  ;;  %v49_v10 = vld [vmem:[%s13133_s0 + $0x20] sm:$0xff]  ;;  %v50_v11 = vld [vmem:[%s13133_s0 + $0x28] sm:$0xff]  ;;  %s10946_s18 = smov 64   ;;  %s10947_s19 = smov 88   ;;  %vm567_vm3 = vcmask 130048  }
   0x8   :  { %v51_v12 = vld [vmem:[%s13133_s0 + $0x30] sm:$0xff]  ;;  %v52_v13 = vld [vmem:[%s13133_s0 + $0x38] sm:$0xff]  ;;  %v8570_v14 = vld [vmem:[%s13135_s2] ss:$0 sm:$0xff]  ;;  %s10948_s20 = smov 120   ;;  %s10949_s21 = smov 56  }
   0x9   :  { %9831 = vmatpush3.bf16.msra.mxu1 %v9828_v6  ;;  %vm11123_vm2 = vmpackc.low %vm208_vm1, %vm208_vm1  ;;  %s10950_s22 = smov 80   ;;  %s10951_s23 = smov 112   ;;  %vm1844_vm4 = vcmask 130112   ;;  %vm2685_vm5 = vcmask 195712   ;;  %vm3526_vm6 = vcmask 261312  }
   0xa   :  { %s13153_s24 = smov 48   ;;  %s13151_s25 = smov 72  }
   0xb   :  { %s13149_s26 = smov 104   ;;  %s13147_s27 = smov 40  }
   0xc   :  { %9305 = vmatmul.mubr.msk.f32.vlgmr.msra.gmra.mrb[0].mxu1 %vm64_vm0, %v46_v7  ;;  %s13159_s28 = smov 8   ;;  %s13157_s29 = smov 16  }
   0xd   :  { %9307 = vmatprep.mubr.msk.f32.mxu1 %vm64_vm0, %v47_v8  ;;  %s13155_s30 = smov 24  }
  0x10   :  { %9308 = vmatmul.mubr.msk.f32.gmra.mrb[2].mxu1 %vm64_vm0, %v48_v9 }
  0x11   :  { %9310 = vmatprep.mubr.msk.f32.mxu1 %vm64_vm0, %v49_v10 }
  0x14   :  { %9311 = vmatmul.mubr.msk.f32.gmra.mrb[4].mxu1 %vm64_vm0, %v50_v11 }
  0x15   :  { %9313 = vmatprep.mubr.msk.f32.mxu1 %vm64_vm0, %v51_v12 }
  0x18   :  { %9314 = vmatmul.mubr.msk.f32.gmra.mrb[6].mxu1 %vm64_vm0, %v52_v13 }
  0xdf   :  { %v9306_v15 = vpop.f32.mrb[0].mxu1 }
  0xe0   :  { %v161_v16 = vadd.f32 %v9306_v15, %v8570_v14  ;;  %v155_v17 = vpop.f32.mrb[1].mxu1 }
  0xe1   :  { %v156_v18 = vadd.f32 %v8570_v14, %v155_v17 }
  0xe2   :  { %v11133_v49 = vmul.f32 0.35355338, %v161_v16 }
  0xe3   :  { %v9309_v19 = vpop.f32.mrb[2].mxu1  ;;  %v11079_v20 = vpack.i.bf16 %v161_v16, %v156_v18  ;;  %v11081_v21 = vmul.f32 0.35355338, %v156_v18 }
  0xe4   :  { %v11083_v22 = vadd.f32 %v9309_v19, %v8570_v14  ;;  %v165_v23 = vpop.f32.mrb[3].mxu1 }
  0xe5   :  { %v166_v24 = vadd.f32 %v8570_v14, %v165_v23  ;;  %10274 = vrot.lane.b32.xlu0 %v11079_v20, %s10945_s17  ;;  %9320 = vmatprep.mubr.msk.f32.mxu1 %vm208_vm1, %v11081_v21 }
  0xe6   :  { %v11150_v62 = vmul.f32 0.35355338, %v11083_v22 }
  0xe7   :  { %v9312_v25 = vpop.f32.mrb[4].mxu1  ;;  %v11090_v26 = vpack.i.bf16 %v11083_v22, %v166_v24  ;;  %v11135_v52 = vmul.f32 0.35355338, %v166_v24 }
  0xe8   :  { %v181_v27 = vadd.f32 %v9312_v25, %v8570_v14  ;;  %v175_v28 = vpop.f32.mrb[5].mxu1 }
  0xe9   :  { %v176_v29 = vadd.f32 %v8570_v14, %v175_v28  ;;  %10279 = vrot.lane.b32.xlu0 %v11090_v26, %s10945_s17 }
  0xea   :  { %v11152_v0 = vmul.f32 0.35355338, %v181_v27 }
  0xeb   :  { %v9315_v30 = vpop.f32.mrb[6].mxu1  ;;  %v11094_v31 = vpack.i.bf16 %v181_v27, %v176_v29  ;;  %v11096_v32 = vmul.f32 0.35355338, %v176_v29 }
  0xec   :  { %v11098_v33 = vadd.f32 %v9315_v30, %v8570_v14  ;;  %v185_v34 = vpop.f32.mrb[7].mxu1 }
  0xed   :  { %v186_v35 = vadd.f32 %v8570_v14, %v185_v34  ;;  %10284 = vrot.lane.b32.xlu1 %v11094_v31, %s10945_s17  ;;  %10299 = vrot.lane.b32.xlu0 %v11094_v31, %s10946_s18 }
  0xee   :  { %9334 = vmatprep.mubr.msk.f32.mxu0 %vm208_vm1, %v11096_v32  ;;  %v11170_v8 = vmul.f32 0.35355338, %v11098_v33 }
  0xef   :  { %v11107_v36 = vpack.i.bf16 %v11098_v33, %v186_v35  ;;  %v11158_v3 = vmul.f32 0.35355338, %v186_v35 }
  0xf1   :  { %10289 = vrot.lane.b32.xlu1 %v11107_v36, %s10945_s17  ;;  %10309 = vrot.lane.b32.xlu0 %v11079_v20, %s10947_s19 }
  0xf5   :  { %10294 = vrot.lane.b32.xlu1 %v11079_v20, %s10946_s18 }
  0xf9   :  { %10304 = vrot.lane.b32.xlu1 %v11090_v26, %s10946_s18 }
  0xfd   :  { %10314 = vrot.lane.b32.xlu1 %v11090_v26, %s10947_s19 }
 0x101   :  { %10319 = vrot.lane.b32.xlu1 %v11107_v36, %s10946_s18 }
 0x157   :  { %v10275_v37 = vpop.permute.xlu0 %10274 }
 0x158   :  { %v10277_v38 = vunpack.i.h.bf16 %v10275_v37  ;;  %v10276_v39 = vunpack.i.l.bf16 %v10275_v37 }
 0x15a   :  { %v9832_v41 = vpack.c.bf16 %v10277_v38, %v10276_v39 }
 0x15b   :  { %v10280_v42 = vpop.permute.xlu0 %10279 }
 0x15c   :  { %v10282_v43 = vunpack.i.h.bf16 %v10280_v42  ;;  %v10281_v44 = vunpack.i.l.bf16 %v10280_v42  ;;  %9834 = vmatprep.subr.msk.bf16.mxu1 %vm11123_vm2, %v9832_v41 }
 0x15d   :  { %9837 = vmatpush3.bf16.xpose.msk.msra.mxu1 %vm11123_vm2, %v9832_v41 }
 0x15e   :  { %v9838_v45 = vpack.c.bf16 %v10282_v43, %v10281_v44 }
 0x15f   :  { %v10285_v46 = vpop.permute.xlu1 %10284  ;;  %v10300_v55 = vpop.permute.xlu0 %10299 }
 0x160   :  { %9840 = vmatprep.subr.msk.bf16.mxu1 %vm11123_vm2, %v9838_v45  ;;  %v10287_v47 = vunpack.i.h.bf16 %v10285_v46  ;;  %v10286_v48 = vunpack.i.l.bf16 %v10285_v46  ;;  %v10302_v57 = vunpack.i.h.bf16 %v10300_v55  ;;  %v10301_v58 = vunpack.i.l.bf16 %v10300_v55 }
 0x162   :  { %v9844_v50 = vpack.c.bf16 %v10287_v47, %v10286_v48  ;;  %v11154_v2 = vpack.c.bf16 %v10302_v57, %v10301_v58 }
 0x163   :  { %v10290_v51 = vpop.permute.xlu1 %10289  ;;  %v11192_v34 = vpop.permute.xlu0 %10309 }
 0x164   :  { %v10292_v53 = vunpack.i.h.bf16 %v10290_v51  ;;  %v10291_v54 = vunpack.i.l.bf16 %v10290_v51  ;;  %9321 = vmatmul.mubr.msk.f32.vlgmr.msra.gmra.mrb[8].mxu1 %vm208_vm1, %v11133_v49  ;;  %9846 = vmatprep.subr.msk.bf16.mxu0 %vm11123_vm2, %v9844_v50 }
 0x165   :  { %9843 = vmatpush3.bf16.xpose.msk.msra.mxu1 %vm11123_vm2, %v9838_v45  ;;  %9327 = vmatprep.mubr.msk.f32.mxu1 %vm208_vm1, %v11135_v52 }
 0x166   :  { %v9850_v56 = vpack.c.bf16 %v10292_v53, %v10291_v54  ;;  %9849 = vmatpush3.bf16.xpose.msk.msra.mxu0 %vm11123_vm2, %v9844_v50 }
 0x167   :  { %v10295_v59 = vpop.permute.xlu1 %10294 }
 0x168   :  { %v10297_v60 = vunpack.i.h.bf16 %v10295_v59  ;;  %v10296_v61 = vunpack.i.l.bf16 %v10295_v59  ;;  %9852 = vmatprep.subr.msk.bf16.mxu1 %vm11123_vm2, %v9850_v56 }
 0x16a   :  { %v9856_v63 = vpack.c.bf16 %v10297_v60, %v10296_v61 }
 0x16b   :  { %v10305_v1 = vpop.permute.xlu1 %10304 }
 0x16c   :  { %9328 = vmatmul.mubr.msk.f32.vlgmr.msra.gmra.mrb[10].mxu1 %vm208_vm1, %v11150_v62  ;;  %9857 = vmatprep.subr.bf16.mxu0 %v9856_v63  ;;  %v10307_v4 = vunpack.i.h.bf16 %v10305_v1  ;;  %v10306_v5 = vunpack.i.l.bf16 %v10305_v1 }
 0x16d   :  { %9335 = vmatmul.mubr.msk.f32.vlgmr.msra.gmra.mrb[0].mxu0 %vm208_vm1, %v11152_v0  ;;  %9855 = vmatpush3.bf16.xpose.msk.msra.mxu1 %vm11123_vm2, %v9850_v56 }
 0x16e   :  { %9341 = vmatprep.mubr.msk.f32.mxu1 %vm208_vm1, %v11158_v3  ;;  %9859 = vmatpush3.bf16.msra.mxu0 %v9856_v63  ;;  %v9860_v6 = vpack.c.bf16 %v10307_v4, %v10306_v5 }
 0x16f   :  { %v11166_v7 = vpop.permute.xlu1 %10314  ;;  %9865 = vmatprep.subr.bf16.mxu0 %v11154_v2 }
 0x170   :  { %9861 = vmatprep.subr.bf16.mxu1 %v9860_v6 }
 0x173   :  { %v10320_v9 = vpop.permute.xlu1 %10319 }
 0x174   :  { %9342 = vmatmul.mubr.msk.f32.vlgmr.msra.gmra.mrb[12].mxu1 %vm208_vm1, %v11170_v8  ;;  %v10322_v10 = vunpack.i.h.bf16 %v10320_v9  ;;  %v10321_v11 = vunpack.i.l.bf16 %v10320_v9 }
 0x175   :  { %9863 = vmatpush3.bf16.msra.mxu1 %v9860_v6 }
 0x176   :  { %v11174_v12 = vpack.c.bf16 %v10322_v10, %v10321_v11 }
 0x178   :  { %9869 = vmatprep.subr.bf16.mxu1 %v11174_v12 }
 0x237   :  { %v9322_v13 = vpop.f32.mrb[8].mxu1 }
 0x238   :  { %v285_v14 = vpop.f32.mrb[9].mxu1  ;;  %v571_v15 = vsel %vm567_vm3, %v9322_v13, -inf }
 0x239   :  { %572 = vmax.xlane.f32.xlu1 %v571_v15  ;;  %v568_v16 = vsel %vm567_vm3, %v285_v14, -inf }
 0x23a   :  { %569 = vmax.xlane.f32.xlu0 %v568_v16 }
 0x23f   :  { %v9329_v17 = vpop.f32.mrb[10].mxu1 }
 0x240   :  { %v9336_v18 = vpop.f32.mrb[0].mxu0  ;;  %v376_v19 = vpop.f32.mrb[11].mxu1  ;;  %v577_v22 = vsel %vm567_vm3, %v9329_v17, -inf }
 0x241   :  { %v467_v23 = vpop.f32.mrb[1].mxu0  ;;  %578 = vmax.xlane.f32.xlu0 %v577_v22  ;;  %v583_v25 = vsel %vm567_vm3, %v9336_v18, -inf  ;;  %v574_v29 = vsel %vm567_vm3, %v376_v19, -inf }
 0x242   :  { %v580_v24 = vsel %vm567_vm3, %v467_v23, -inf }
 0x243   :  { %581 = vmax.xlane.f32.xlu1 %v580_v24 }
 0x245   :  { %584 = vmax.xlane.f32.xlu0 %v583_v25 }
 0x247   :  { %v9343_v27 = vpop.f32.mrb[12].mxu1 }
 0x248   :  { %v11182_v28 = vpop.f32.mrb[13].mxu1  ;;  %v589_v30 = vsel %vm567_vm3, %v9343_v27, -inf }
 0x249   :  { %575 = vmax.xlane.f32.xlu0 %v574_v29  ;;  %v586_v33 = vsel %vm567_vm3, %v11182_v28, -inf }
 0x24d   :  { %590 = vmax.xlane.f32.xlu0 %v589_v30 }
 0x254   :  { %10324 = vrot.lane.b32.xlu1 %v11094_v31, %s10947_s19 }
 0x263   :  { %1012 = vrot.lane.b32.xlu0 %v11081_v21, %s10948_s20 }
 0x278   :  { %587 = vmax.xlane.f32.xlu1 %v586_v33  ;;  %v10312_v33 = vunpack.i.h.bf16 %v11192_v34 }
 0x2c6   :  { %v573_v35 = vpop.xlane.xlu1 %572 }
 0x2c7   :  { %v593_v37 = vsub.f32 %v9322_v13, %v573_v35  ;;  %v570_v38 = vpop.xlane.xlu0 %569  ;;  %v10311_v35 = vunpack.i.l.bf16 %v11192_v34 }
 0x2c8   :  { %v592_v39 = vsub.f32 %v285_v14, %v570_v38 }
 0x2c9   :  { %v602_v41 = vmul.f32 1.442695, %v593_v37 }
 0x2ca   :  { %v600_v42 = vmul.f32 1.442695, %v592_v39  ;;  %v9872_v39 = vpack.c.bf16 %v10312_v33, %v10311_v35 }
 0x2cb   :  { %10593 = vpow2.f32 %v602_v41 }
 0x2cc   :  { %10595 = vpow2.f32 %v600_v42 }
 0x2ce   :  { %v579_v43 = vpop.xlane.xlu0 %578 }
 0x2cf   :  { %v595_v44 = vsub.f32 %v9329_v17, %v579_v43 }
 0x2d0   :  { %v582_v61 = vpop.xlane.xlu1 %581 }
 0x2d1   :  { %v606_v45 = vmul.f32 1.442695, %v595_v44  ;;  %v596_v63 = vsub.f32 %v467_v23, %v582_v61 }
 0x2d2   :  { %v585_v46 = vpop.xlane.xlu0 %584 }
 0x2d3   :  { %10597 = vpow2.f32 %v606_v45  ;;  %v597_v47 = vsub.f32 %v9336_v18, %v585_v46  ;;  %v608_v4 = vmul.f32 1.442695, %v596_v63 }
 0x2d4   :  { %v11225_v17 = vpop.permute.xlu1 %10324 }
 0x2d5   :  { %v11194_v48 = vpop.eup %10593  ;;  %v610_v50 = vmul.f32 1.442695, %v597_v47  ;;  %v10317_v47 = vunpack.i.h.bf16 %v11166_v7 }
 0x2d6   :  { %v11196_v51 = vpop.eup %10595  ;;  %v619_v53 = vsel %vm567_vm3, %v11194_v48, 0.0  ;;  %v576_v59 = vpop.xlane.xlu0 %575 }
 0x2d7   :  { %10599 = vpow2.f32 %v610_v50  ;;  %620 = vadd.xlane.f32.xlu0 %v619_v53  ;;  %v616_v54 = vsel %vm567_vm3, %v11196_v51, 0.0  ;;  %v594_v60 = vsub.f32 %v376_v19, %v576_v59  ;;  %v10326_v59 = vunpack.i.l.bf16 %v11225_v17 }
 0x2d8   :  { %617 = vadd.xlane.f32.xlu1 %v616_v54 }
 0x2d9   :  { %v604_v1 = vmul.f32 1.442695, %v594_v60 }
 0x2da   :  { %v591_v5 = vpop.xlane.xlu0 %590 }
 0x2db   :  { %10601 = vpow2.f32 %v604_v1  ;;  %v599_v6 = vsub.f32 %v9343_v27, %v591_v5 }
 0x2dc   :  { %10603 = vpow2.f32 %v608_v4 }
 0x2dd   :  { %v11202_v55 = vpop.eup %10597  ;;  %v614_v9 = vmul.f32 1.442695, %v599_v6 }
 0x2de   :  { %v625_v56 = vsel %vm567_vm3, %v11202_v55, 0.0  ;;  %v1013_v25 = vpop.permute.xlu0 %1012 }
 0x2df   :  { %626 = vadd.xlane.f32.xlu0 %v625_v56  ;;  %10605 = vpow2.f32 %v614_v9 }
 0x2e1   :  { %v11206_v57 = vpop.eup %10599 }
 0x2e2   :  { %v631_v58 = vsel %vm567_vm3, %v11206_v57, 0.0 }
 0x2e3   :  { %632 = vadd.xlane.f32.xlu0 %v631_v58  ;;  %v10327_v58 = vunpack.i.h.bf16 %v11225_v17 }
 0x2e5   :  { %v10602_v10 = vpop.eup %10601  ;;  %v9884_v61 = vpack.c.bf16 %v10327_v58, %v10326_v59 }
 0x2e6   :  { %v622_v11 = vsel %vm567_vm3, %v10602_v10, 0.0  ;;  %v11215_v13 = vpop.eup %10603 }
 0x2e7   :  { %v628_v14 = vsel %vm567_vm3, %v11215_v13, 0.0 }
 0x2e9   :  { %1103 = vrot.lane.b32.xlu1 %v11135_v52, %s10948_s20  ;;  %v11219_v15 = vpop.eup %10605 }
 0x2ea   :  { %v637_v16 = vsel %vm567_vm3, %v11219_v15, 0.0 }
 0x2f9   :  { %1014 = vrot.lane.b32.xlu0 %v11133_v49, %s10948_s20 }
 0x305   :  { %v588_v18 = vpop.xlane.xlu1 %587 }
 0x306   :  { %v598_v19 = vsub.f32 %v11182_v28, %v588_v18 }
 0x308   :  { %v612_v22 = vmul.f32 1.442695, %v598_v19 }
 0x30a   :  { %10607 = vpow2.f32 %v612_v22 }
 0x30d   :  { %623 = vadd.xlane.f32.xlu1 %v622_v11 }
 0x311   :  { %629 = vadd.xlane.f32.xlu1 %v628_v14 }
 0x314   :  { %v11238_v23 = vpop.eup %10607 }
 0x315   :  { %v634_v24 = vsel %vm567_vm3, %v11238_v23, 0.0 }
 0x318   :  { %638 = vadd.xlane.f32.xlu0 %v637_v16 }
 0x322   :  { %1105 = vrot.lane.b32.xlu1 %v11150_v62, %s10948_s20 }
 0x32e   :  { %10329 = vrot.lane.b32.xlu0 %v11107_v36, %s10947_s19 }
 0x332   :  { %1194 = vrot.lane.b32.xlu0 %v11096_v32, %s10948_s20 }
 0x336   :  { %1285 = vrot.lane.b32.xlu0 %v11158_v3, %s10948_s20 }
 0x33a   :  { %10339 = vrot.lane.b32.xlu0 %v11094_v31, %s10949_s21 }
 0x33e   :  { %10354 = vrot.lane.b32.xlu0 %v11079_v20, %s10950_s22 }
 0x346   :  { %635 = vadd.xlane.f32.xlu1 %v634_v24 }
 0x357   :  { %1196 = vrot.lane.b32.xlu1 %v11152_v0, %s10948_s20 }
 0x35b   :  { %1287 = vrot.lane.b32.xlu1 %v11170_v8, %s10948_s20 }
 0x35f   :  { %10334 = vrot.lane.b32.xlu1 %v11079_v20, %s10949_s21 }
 0x363   :  { %10344 = vrot.lane.b32.xlu1 %v11090_v26, %s10949_s21 }
 0x364   :  { %v621_v27 = vpop.xlane.xlu0 %620 }
 0x365   :  { %10609 = vrcp.f32 %v621_v27  ;;  %v618_v28 = vpop.xlane.xlu1 %617 }
 0x366   :  { %10611 = vrcp.f32 %v618_v28 }
 0x367   :  { %10349 = vrot.lane.b32.xlu1 %v11107_v36, %s10949_s21 }
 0x369   :  { %v11263_v42 = vpop.permute.xlu1 %1103 }
 0x36b   :  { %10359 = vrot.lane.b32.xlu1 %v11090_v26, %s10950_s22 }
 0x36c   :  { %v627_v41 = vpop.xlane.xlu0 %626 }
 0x36d   :  { %10613 = vrcp.f32 %v627_v41 }
 0x36f   :  { %v10610_v29 = vpop.eup %10609 }
 0x370   :  { %v10612_v30 = vpop.eup %10611  ;;  %v649_v38 = vmul.f32 %v10610_v29, %v11194_v48  ;;  %v633_v34 = vpop.xlane.xlu0 %632  ;;  %v10316_v48 = vunpack.i.l.bf16 %v11166_v7 }
 0x371   :  { %v648_v37 = vmul.f32 %v10612_v30, %v11196_v51 }
 0x372   :  { %v9878_v56 = vpack.c.bf16 %v10317_v47, %v10316_v48 }
 0x373   :  { %9348 = vmatprep.mubr.msk.f32.mxu0 %vm567_vm3, %v648_v37 }
 0x374   :  { %9349 = vmatmul.mubr.msk.f32.vlgmr.msra.gmra.mrb[2].mxu0 %vm567_vm3, %v649_v38 }
 0x375   :  { %9867 = vmatpush3.bf16.msra.mxu0 %v11154_v2  ;;  %v1015_v2 = vpop.permute.xlu0 %1014 }
 0x376   :  { %9874 = vmatprep.subr.msk.bf16.mxu0 %vm11123_vm2, %v9872_v39 }
 0x377   :  { %v10614_v45 = vpop.eup %10613 }
 0x378   :  { %v651_v51 = vmul.f32 %v10614_v45, %v11202_v55 }
 0x39a   :  { %v624_v43 = vpop.xlane.xlu1 %623 }
 0x39b   :  { %10615 = vrcp.f32 %v624_v43 }
 0x39c   :  { %10617 = vrcp.f32 %v633_v34 }
 0x39e   :  { %v630_v44 = vpop.xlane.xlu1 %629 }
 0x39f   :  { %10619 = vrcp.f32 %v630_v44 }
 0x3a5   :  { %v10616_v46 = vpop.eup %10615  ;;  %v639_v60 = vpop.xlane.xlu0 %638 }
 0x3a6   :  { %v650_v50 = vmul.f32 %v10616_v46, %v10602_v10  ;;  %v10618_v53 = vpop.eup %10617  ;;  %10621 = vrcp.f32 %v639_v60 }
 0x3a7   :  { %v653_v55 = vmul.f32 %v10618_v53, %v11206_v57  ;;  %v1106_v57 = vpop.permute.xlu1 %1105 }
 0x3a8   :  { %9355 = vmatprep.mubr.msk.f32.mxu1 %vm567_vm3, %v650_v50 }
 0x3a9   :  { %v10620_v54 = vpop.eup %10619  ;;  %9356 = vmatmul.mubr.msk.f32.vlgmr.msra.gmra.mrb[14].mxu1 %vm567_vm3, %v651_v51  ;;  %v10330_v63 = vpop.permute.xlu0 %10329 }
 0x3aa   :  { %9871 = vmatpush3.bf16.msra.mxu1 %v11174_v12  ;;  %v652_v7 = vmul.f32 %v10620_v54, %v11215_v13  ;;  %v10332_v13 = vunpack.i.h.bf16 %v10330_v63  ;;  %v10331_v14 = vunpack.i.l.bf16 %v10330_v63 }
 0x3ab   :  { %9880 = vmatprep.subr.msk.bf16.mxu1 %vm11123_vm2, %v9878_v56 }
 0x3ac   :  { %9362 = vmatprep.mubr.msk.f32.mxu0 %vm567_vm3, %v652_v7  ;;  %v9890_v27 = vpack.c.bf16 %v10332_v13, %v10331_v14 }
 0x3ad   :  { %9363 = vmatmul.mubr.msk.f32.vlgmr.msra.gmra.mrb[4].mxu0 %vm567_vm3, %v653_v55  ;;  %v1195_v12 = vpop.permute.xlu0 %1194 }
 0x3ae   :  { %9877 = vmatpush3.bf16.xpose.msk.msra.mxu0 %vm11123_vm2, %v9872_v39  ;;  %9376 = vmatprep.mubr.msk.f32.mxu0 %vm208_vm1, %v1013_v25 }
 0x3af   :  { %9886 = vmatprep.subr.msk.bf16.mxu0 %vm11123_vm2, %v9884_v61 }
 0x3b0   :  { %v10622_v9 = vpop.eup %10621 }
 0x3b1   :  { %v1286_v4 = vpop.permute.xlu0 %1285  ;;  %v655_v18 = vmul.f32 %v10622_v9, %v11219_v15 }
 0x3b5   :  { %9377 = vmatmul.mubr.msk.f32.vlgmr.msra.gmra.mrb[6].mxu0 %vm208_vm1, %v1015_v2  ;;  %v10340_v10 = vpop.permute.xlu0 %10339 }
 0x3b6   :  { %9889 = vmatpush3.bf16.xpose.msk.msra.mxu0 %vm11123_vm2, %v9884_v61  ;;  %9390 = vmatprep.mubr.msk.f32.mxu0 %vm208_vm1, %v1195_v12  ;;  %v10342_v19 = vunpack.i.h.bf16 %v10340_v10  ;;  %v10341_v22 = vunpack.i.l.bf16 %v10340_v10 }
 0x3b8   :  { %v11299_v15 = vpack.c.bf16 %v10342_v19, %v10341_v22 }
 0x3d3   :  { %v636_v1 = vpop.xlane.xlu1 %635 }
 0x3d4   :  { %10623 = vrcp.f32 %v636_v1 }
 0x3d7   :  { %v1197_v5 = vpop.permute.xlu1 %1196 }
 0x3d8   :  { %9391 = vmatmul.mubr.msk.f32.vlgmr.msra.gmra.mrb[8].mxu0 %vm208_vm1, %v1197_v5 }
 0x3db   :  { %v1288_v6 = vpop.permute.xlu1 %1287 }
 0x3de   :  { %v10624_v11 = vpop.eup %10623 }
 0x3df   :  { %v10335_v16 = vpop.permute.xlu1 %10334  ;;  %v654_v17 = vmul.f32 %v10624_v11, %v11238_v23 }
 0x3e0   :  { %v10337_v24 = vunpack.i.h.bf16 %v10335_v16  ;;  %v10336_v25 = vunpack.i.l.bf16 %v10335_v16 }
 0x3e1   :  { %9369 = vmatprep.mubr.msk.f32.mxu1 %vm567_vm3, %v654_v17 }
 0x3e2   :  { %9370 = vmatmul.mubr.msk.f32.vlgmr.msra.gmra.mrb[16].mxu1 %vm567_vm3, %v655_v18  ;;  %v9896_v28 = vpack.c.bf16 %v10337_v24, %v10336_v25 }
 0x3e3   :  { %9883 = vmatpush3.bf16.xpose.msk.msra.mxu1 %vm11123_vm2, %v9878_v56  ;;  %9383 = vmatprep.mubr.msk.f32.mxu1 %vm208_vm1, %v11263_v42  ;;  %v10345_v29 = vpop.permute.xlu1 %10344 }
 0x3e4   :  { %9892 = vmatprep.subr.msk.bf16.mxu1 %vm11123_vm2, %v9890_v27  ;;  %9897 = vmatprep.subr.bf16.mxu0 %v9896_v28  ;;  %v10347_v23 = vunpack.i.h.bf16 %v10345_v29  ;;  %v10346_v30 = vunpack.i.l.bf16 %v10345_v29 }
 0x3e5   :  { %9899 = vmatpush3.bf16.msra.mxu0 %v9896_v28 }
 0x3e6   :  { %9905 = vmatprep.subr.bf16.mxu0 %v11299_v15  ;;  %v9900_v33 = vpack.c.bf16 %v10347_v23, %v10346_v30 }
 0x3e7   :  { %v10350_v35 = vpop.permute.xlu1 %10349 }
 0x3e8   :  { %v10352_v37 = vunpack.i.h.bf16 %v10350_v35  ;;  %v10351_v38 = vunpack.i.l.bf16 %v10350_v35 }
 0x3ea   :  { %9384 = vmatmul.mubr.msk.f32.vlgmr.msra.gmra.mrb[18].mxu1 %vm208_vm1, %v1106_v57  ;;  %v11307_v39 = vpack.c.bf16 %v10352_v37, %v10351_v38 }
 0x3eb   :  { %9895 = vmatpush3.bf16.xpose.msk.msra.mxu1 %vm11123_vm2, %v9890_v27  ;;  %9397 = vmatprep.mubr.msk.f32.mxu1 %vm208_vm1, %v1286_v4  ;;  %v11333_v1 = vpop.permute.xlu1 %10359  ;;  %v11335_v4 = vpop.permute.xlu0 %10354 }
 0x3ec   :  { %9901 = vmatprep.subr.bf16.mxu1 %v9900_v33 }
 0x3f2   :  { %9398 = vmatmul.mubr.msk.f32.vlgmr.msra.gmra.mrb[20].mxu1 %vm208_vm1, %v1288_v6 }
 0x3f3   :  { %9903 = vmatpush3.bf16.msra.mxu1 %v9900_v33 }
 0x3f4   :  { %9909 = vmatprep.subr.bf16.mxu1 %v11307_v39 }
 0x447   :  { %v9350_v41 = vpop.f32.mrb[2].mxu0 }
 0x448   :  { %1005 = vst.msk [vmem:[#allocation2 + $0x8] sm:$0xff] %vm208_vm1, %v9350_v41  ;;  %v734_v42 = vpop.f32.mrb[3].mxu0 }
 0x449   :  { %1004 = vst.msk [vmem:[#allocation2] sm:$0xff] %vm208_vm1, %v734_v42 }
 0x47c   :  { %v9357_v43 = vpop.f32.mrb[14].mxu1 }
 0x47d   :  { %1007 = vst.msk [vmem:[#allocation2 + $0x18] sm:$0xff] %vm208_vm1, %v9357_v43  ;;  %v821_v34 = vpop.f32.mrb[15].mxu1 }
 0x47e   :  { %1006 = vst.msk [vmem:[#allocation2 + $0x10] sm:$0xff] %vm208_vm1, %v821_v34 }
 0x480   :  { %v9364_v44 = vpop.f32.mrb[4].mxu0 }
 0x481   :  { %1009 = vst.msk [vmem:[#allocation2 + $0x28] sm:$0xff] %vm208_vm1, %v9364_v44  ;;  %v908_v45 = vpop.f32.mrb[5].mxu0 }
 0x482   :  { %1008 = vst.msk [vmem:[#allocation2 + $0x20] sm:$0xff] %vm208_vm1, %v908_v45 }
 0x488   :  { %v9378_v46 = vpop.f32.mrb[6].mxu0 }
 0x489   :  { %v1094_v47 = vpop.f32.mrb[7].mxu0  ;;  %v1379_v48 = vsel %vm567_vm3, %v9378_v46, -inf }
 0x48a   :  { %1380 = vmax.xlane.f32.xlu1 %v1379_v48  ;;  %v1376_v2 = vsel %vm567_vm3, %v1094_v47, -inf }
 0x48b   :  { %1377 = vmax.xlane.f32.xlu0 %v1376_v2 }
 0x4ab   :  { %v9392_v50 = vpop.f32.mrb[8].mxu0 }
 0x4ac   :  { %v1276_v51 = vpop.f32.mrb[9].mxu0  ;;  %v1391_v7 = vsel %vm567_vm3, %v9392_v50, -inf }
 0x4ad   :  { %v1388_v53 = vsel %vm567_vm3, %v1276_v51, -inf }
 0x4ae   :  { %1389 = vmax.xlane.f32.xlu1 %v1388_v53 }
 0x4b5   :  { %v9371_v54 = vpop.f32.mrb[16].mxu1 }
 0x4b6   :  { %1011 = vst.msk [vmem:[#allocation2 + $0x38] sm:$0xff] %vm208_vm1, %v9371_v54  ;;  %v995_v56 = vpop.f32.mrb[17].mxu1 }
 0x4b7   :  { %1010 = vst.msk [vmem:[#allocation2 + $0x30] sm:$0xff] %vm208_vm1, %v995_v56 }
 0x4bd   :  { %v9385_v58 = vpop.f32.mrb[18].mxu1 }
 0x4be   :  { %v1185_v59 = vpop.f32.mrb[19].mxu1  ;;  %v1385_v60 = vsel %vm567_vm3, %v9385_v58, -inf }
 0x4bf   :  { %1386 = vmax.xlane.f32.xlu0 %v1385_v60  ;;  %10364 = vrot.lane.b32.xlu1 %v11094_v31, %s10950_s22  ;;  %v1382_v63 = vsel %vm567_vm3, %v1185_v59, -inf }
 0x4c3   :  { %1392 = vmax.xlane.f32.xlu0 %v1391_v7 }
 0x4c5   :  { %v9399_v55 = vpop.f32.mrb[20].mxu1 }
 0x4c6   :  { %v11325_v61 = vpop.f32.mrb[21].mxu1  ;;  %v1397_v12 = vsel %vm567_vm3, %v9399_v55, -inf }
 0x4c7   :  { %1383 = vmax.xlane.f32.xlu0 %v1382_v63  ;;  %v1394_v57 = vsel %vm567_vm3, %v11325_v61, -inf }
 0x4cb   :  { %1398 = vmax.xlane.f32.xlu0 %v1397_v12 }
 0x4e1   :  { %1853 = vrot.lane.b32.xlu0 %v11081_v21, %s10951_s23 }
 0x4e3   :  { %1395 = vmax.xlane.f32.xlu1 %v1394_v57  ;;  %v10357_v57 = vunpack.i.h.bf16 %v11335_v4 }
 0x517   :  { %v1381_v5 = vpop.xlane.xlu1 %1380 }
 0x518   :  { %v1401_v6 = vsub.f32 %v9378_v46, %v1381_v5  ;;  %v1378_v9 = vpop.xlane.xlu0 %1377  ;;  %v10356_v5 = vunpack.i.l.bf16 %v11335_v4 }
 0x519   :  { %v1400_v10 = vsub.f32 %v1094_v47, %v1378_v9 }
 0x51a   :  { %v1410_v11 = vmul.f32 1.442695, %v1401_v6 }
 0x51b   :  { %v1408_v13 = vmul.f32 1.442695, %v1400_v10  ;;  %v9912_v10 = vpack.c.bf16 %v10357_v57, %v10356_v5 }
 0x51c   :  { %10625 = vpow2.f32 %v1410_v11 }
 0x51d   :  { %10627 = vpow2.f32 %v1408_v13 }
 0x526   :  { %v11337_v14 = vpop.eup %10625 }
 0x527   :  { %v11339_v16 = vpop.eup %10627  ;;  %v1427_v17 = vsel %vm567_vm3, %v11337_v14, 0.0 }
 0x528   :  { %1428 = vadd.xlane.f32.xlu0 %v1427_v17  ;;  %v1424_v18 = vsel %vm567_vm3, %v11339_v16, 0.0 }
 0x529   :  { %1425 = vadd.xlane.f32.xlu1 %v1424_v18 }
 0x53a   :  { %1944 = vrot.lane.b32.xlu1 %v11135_v52, %s10951_s23 }
 0x53b   :  { %v1390_v25 = vpop.xlane.xlu1 %1389 }
 0x53c   :  { %v1404_v29 = vsub.f32 %v1276_v51, %v1390_v25 }
 0x53e   :  { %v1416_v35 = vmul.f32 1.442695, %v1404_v29 }
 0x53f   :  { %v11364_v2 = vpop.permute.xlu1 %10364 }
 0x540   :  { %v10367_v29 = vunpack.i.h.bf16 %v11364_v2 }
 0x54c   :  { %v1387_v19 = vpop.xlane.xlu0 %1386 }
 0x54d   :  { %v1403_v22 = vsub.f32 %v9385_v58, %v1387_v19  ;;  %v10362_v19 = vunpack.i.h.bf16 %v11333_v1 }
 0x54f   :  { %v1414_v24 = vmul.f32 1.442695, %v1403_v22  ;;  %v10361_v22 = vunpack.i.l.bf16 %v11333_v1 }
 0x550   :  { %v1393_v27 = vpop.xlane.xlu0 %1392 }
 0x551   :  { %10629 = vpow2.f32 %v1414_v24  ;;  %v1405_v28 = vsub.f32 %v9392_v50, %v1393_v27 }
 0x553   :  { %v1418_v23 = vmul.f32 1.442695, %v1405_v28  ;;  %v9918_v28 = vpack.c.bf16 %v10362_v19, %v10361_v22 }
 0x554   :  { %v1384_v30 = vpop.xlane.xlu0 %1383 }
 0x555   :  { %10631 = vpow2.f32 %v1418_v23  ;;  %v1402_v33 = vsub.f32 %v1185_v59, %v1384_v30  ;;  %v10366_v23 = vunpack.i.l.bf16 %v11364_v2 }
 0x557   :  { %v1412_v37 = vmul.f32 1.442695, %v1402_v33  ;;  %v9924_v33 = vpack.c.bf16 %v10367_v29, %v10366_v23 }
 0x558   :  { %v1399_v47 = vpop.xlane.xlu0 %1398 }
 0x559   :  { %10633 = vpow2.f32 %v1412_v37  ;;  %v1407_v48 = vsub.f32 %v9399_v55, %v1399_v47 }
 0x55a   :  { %10635 = vpow2.f32 %v1416_v35 }
 0x55b   :  { %v11347_v38 = vpop.eup %10629  ;;  %v1422_v50 = vmul.f32 1.442695, %v1407_v48 }
 0x55c   :  { %v1433_v41 = vsel %vm567_vm3, %v11347_v38, 0.0  ;;  %v1854_v7 = vpop.permute.xlu0 %1853 }
 0x55d   :  { %1434 = vadd.xlane.f32.xlu0 %v1433_v41  ;;  %10637 = vpow2.f32 %v1422_v50 }
 0x55f   :  { %v11351_v42 = vpop.eup %10631 }
 0x560   :  { %v1439_v43 = vsel %vm567_vm3, %v11351_v42, 0.0 }
 0x561   :  { %1440 = vadd.xlane.f32.xlu0 %v1439_v43 }
 0x563   :  { %v10634_v34 = vpop.eup %10633 }
 0x564   :  { %v1430_v44 = vsel %vm567_vm3, %v10634_v34, 0.0  ;;  %v11356_v45 = vpop.eup %10635 }
 0x565   :  { %1431 = vadd.xlane.f32.xlu1 %v1430_v44  ;;  %v1436_v46 = vsel %vm567_vm3, %v11356_v45, 0.0 }
 0x567   :  { %v11367_v56 = vpop.eup %10637 }
 0x568   :  { %v1445_v58 = vsel %vm567_vm3, %v11367_v56, 0.0 }
 0x569   :  { %1437 = vadd.xlane.f32.xlu1 %v1436_v46 }
 0x570   :  { %v1396_v51 = vpop.xlane.xlu1 %1395 }
 0x571   :  { %v1406_v53 = vsub.f32 %v11325_v61, %v1396_v51 }
 0x573   :  { %v1420_v54 = vmul.f32 1.442695, %v1406_v53 }
 0x575   :  { %10639 = vpow2.f32 %v1420_v54 }
 0x577   :  { %1855 = vrot.lane.b32.xlu0 %v11133_v49, %s10951_s23 }
 0x57a   :  { %1946 = vrot.lane.b32.xlu1 %v11150_v62, %s10951_s23 }
 0x57f   :  { %v11371_v59 = vpop.eup %10639 }
 0x580   :  { %v1442_v60 = vsel %vm567_vm3, %v11371_v59, 0.0 }
 0x596   :  { %1446 = vadd.xlane.f32.xlu0 %v1445_v58 }
 0x59e   :  { %1443 = vadd.xlane.f32.xlu1 %v1442_v60 }
 0x5ac   :  { %10369 = vrot.lane.b32.xlu0 %v11107_v36, %s10950_s22 }
 0x5af   :  { %2037 = vrot.lane.b32.xlu1 %v11152_v0, %s10951_s23 }
 0x5b0   :  { %2035 = vrot.lane.b32.xlu0 %v11096_v32, %s10951_s23 }
 0x5b3   :  { %2128 = vrot.lane.b32.xlu1 %v11170_v8, %s10951_s23 }
 0x5b4   :  { %2126 = vrot.lane.b32.xlu0 %v11158_v3, %s10951_s23 }
 0x5b5   :  { %v1429_v55 = vpop.xlane.xlu0 %1428 }
 0x5b6   :  { %10641 = vrcp.f32 %v1429_v55  ;;  %v1426_v61 = vpop.xlane.xlu1 %1425 }
 0x5b7   :  { %10643 = vrcp.f32 %v1426_v61  ;;  %10374 = vrot.lane.b32.xlu1 %v11079_v20, %s13153_s24 }
 0x5b8   :  { %10379 = vrot.lane.b32.xlu0 %v11094_v31, %s13153_s24 }
 0x5ba   :  { %v11402_v13 = vpop.permute.xlu1 %1944 }
 0x5bb   :  { %10384 = vrot.lane.b32.xlu1 %v11090_v26, %s13153_s24 }
 0x5bf   :  { %10389 = vrot.lane.b32.xlu1 %v11107_v36, %s13153_s24 }
 0x5c0   :  { %v10642_v63 = vpop.eup %10641 }
 0x5c1   :  { %v10644_v12 = vpop.eup %10643  ;;  %v1457_v9 = vmul.f32 %v10642_v63, %v11337_v14 }
 0x5c2   :  { %v1456_v6 = vmul.f32 %v10644_v12, %v11339_v16 }
 0x5c4   :  { %9404 = vmatprep.mubr.msk.f32.mxu0 %vm567_vm3, %v1456_v6 }
 0x5c5   :  { %9405 = vmatmul.mubr.msk.f32.vlgmr.msra.gmra.mrb[10].mxu0 %vm567_vm3, %v1457_v9 }
 0x5c6   :  { %9907 = vmatpush3.bf16.msra.mxu0 %v11299_v15 }
 0x5c7   :  { %9914 = vmatprep.subr.msk.bf16.mxu0 %vm11123_vm2, %v9912_v10 }
 0x5ea   :  { %v1435_v11 = vpop.xlane.xlu0 %1434 }
 0x5eb   :  { %10645 = vrcp.f32 %v1435_v11 }
 0x5ee   :  { %v1441_v4 = vpop.xlane.xlu0 %1440 }
 0x5f2   :  { %v1432_v17 = vpop.xlane.xlu1 %1431 }
 0x5f3   :  { %10647 = vrcp.f32 %v1432_v17 }
 0x5f4   :  { %10649 = vrcp.f32 %v1441_v4 }
 0x5f5   :  { %v10646_v14 = vpop.eup %10645 }
 0x5f6   :  { %v1438_v16 = vpop.xlane.xlu1 %1437  ;;  %v1459_v24 = vmul.f32 %v10646_v14, %v11347_v38 }
 0x5f7   :  { %10651 = vrcp.f32 %v1438_v16 }
 0x5fa   :  { %v1947_v37 = vpop.permute.xlu1 %1946 }
 0x5fd   :  { %v10648_v18 = vpop.eup %10647 }
 0x5fe   :  { %v1458_v15 = vmul.f32 %v10648_v18, %v10634_v34  ;;  %v10650_v25 = vpop.eup %10649 }
 0x5ff   :  { %v1461_v1 = vmul.f32 %v10650_v25, %v11351_v42 }
 0x600   :  { %9411 = vmatprep.mubr.msk.f32.mxu1 %vm567_vm3, %v1458_v15 }
 0x601   :  { %v10652_v27 = vpop.eup %10651  ;;  %9412 = vmatmul.mubr.msk.f32.vlgmr.msra.gmra.mrb[22].mxu1 %vm567_vm3, %v1459_v24 }
 0x602   :  { %9911 = vmatpush3.bf16.msra.mxu1 %v11307_v39  ;;  %v1460_v30 = vmul.f32 %v10652_v27, %v11356_v45  ;;  %v1856_v39 = vpop.permute.xlu0 %1855 }
 0x603   :  { %9920 = vmatprep.subr.msk.bf16.mxu1 %vm11123_vm2, %v9918_v28 }
 0x604   :  { %9418 = vmatprep.mubr.msk.f32.mxu0 %vm567_vm3, %v1460_v30 }
 0x605   :  { %9419 = vmatmul.mubr.msk.f32.vlgmr.msra.gmra.mrb[12].mxu0 %vm567_vm3, %v1461_v1 }
 0x606   :  { %9917 = vmatpush3.bf16.xpose.msk.msra.mxu0 %vm11123_vm2, %v9912_v10  ;;  %9432 = vmatprep.mubr.msk.f32.mxu0 %vm208_vm1, %v1854_v7 }
 0x607   :  { %9926 = vmatprep.subr.msk.bf16.mxu0 %vm11123_vm2, %v9924_v33 }
 0x60d   :  { %9433 = vmatmul.mubr.msk.f32.vlgmr.msra.gmra.mrb[14].mxu0 %vm208_vm1, %v1856_v39 }
 0x60e   :  { %9929 = vmatpush3.bf16.xpose.msk.msra.mxu0 %vm11123_vm2, %v9924_v33 }
 0x623   :  { %v1447_v35 = vpop.xlane.xlu0 %1446 }
 0x624   :  { %10653 = vrcp.f32 %v1447_v35 }
 0x627   :  { %v10370_v38 = vpop.permute.xlu0 %10369 }
 0x628   :  { %v10372_v48 = vunpack.i.h.bf16 %v10370_v38  ;;  %v10371_v2 = vunpack.i.l.bf16 %v10370_v38 }
 0x62a   :  { %v9930_v55 = vpack.c.bf16 %v10372_v48, %v10371_v2 }
 0x62b   :  { %v2036_v41 = vpop.permute.xlu0 %2035  ;;  %v1444_v42 = vpop.xlane.xlu1 %1443 }
 0x62c   :  { %10655 = vrcp.f32 %v1444_v42  ;;  %9446 = vmatprep.mubr.msk.f32.mxu0 %vm208_vm1, %v2036_v41 }
 0x62e   :  { %v10654_v45 = vpop.eup %10653 }
 0x62f   :  { %v2127_v43 = vpop.permute.xlu0 %2126  ;;  %v2038_v34 = vpop.permute.xlu1 %2037  ;;  %v1463_v53 = vmul.f32 %v10654_v45, %v11367_v56 }
 0x630   :  { %9447 = vmatmul.mubr.msk.f32.vlgmr.msra.gmra.mrb[16].mxu0 %vm208_vm1, %v2038_v34 }
 0x633   :  { %v2129_v44 = vpop.permute.xlu1 %2128  ;;  %v10380_v46 = vpop.permute.xlu0 %10379 }
 0x634   :  { %v10382_v54 = vunpack.i.h.bf16 %v10380_v46  ;;  %v10381_v58 = vunpack.i.l.bf16 %v10380_v46 }
 0x636   :  { %v10656_v47 = vpop.eup %10655  ;;  %v11438_v56 = vpack.c.bf16 %v10382_v54, %v10381_v58 }
 0x637   :  { %v10375_v50 = vpop.permute.xlu1 %10374  ;;  %v1462_v51 = vmul.f32 %v10656_v47, %v11371_v59 }
 0x638   :  { %v10377_v60 = vunpack.i.h.bf16 %v10375_v50  ;;  %v10376_v7 = vunpack.i.l.bf16 %v10375_v50 }
 0x639   :  { %9425 = vmatprep.mubr.msk.f32.mxu1 %vm567_vm3, %v1462_v51 }
 0x63a   :  { %9426 = vmatmul.mubr.msk.f32.vlgmr.msra.gmra.mrb[24].mxu1 %vm567_vm3, %v1463_v53  ;;  %v9936_v61 = vpack.c.bf16 %v10377_v60, %v10376_v7 }
 0x63b   :  { %9923 = vmatpush3.bf16.xpose.msk.msra.mxu1 %vm11123_vm2, %v9918_v28  ;;  %v10385_v63 = vpop.permute.xlu1 %10384  ;;  %9439 = vmatprep.mubr.msk.f32.mxu1 %vm208_vm1, %v11402_v13 }
 0x63c   :  { %9932 = vmatprep.subr.msk.bf16.mxu1 %vm11123_vm2, %v9930_v55  ;;  %9937 = vmatprep.subr.bf16.mxu0 %v9936_v61  ;;  %v10387_v59 = vunpack.i.h.bf16 %v10385_v63  ;;  %v10386_v12 = vunpack.i.l.bf16 %v10385_v63 }
 0x63d   :  { %9939 = vmatpush3.bf16.msra.mxu0 %v9936_v61 }
 0x63e   :  { %9945 = vmatprep.subr.bf16.mxu0 %v11438_v56  ;;  %v9940_v57 = vpack.c.bf16 %v10387_v59, %v10386_v12 }
 0x63f   :  { %v10390_v5 = vpop.permute.xlu1 %10389 }
 0x640   :  { %v10392_v6 = vunpack.i.h.bf16 %v10390_v5  ;;  %v10391_v9 = vunpack.i.l.bf16 %v10390_v5 }
 0x642   :  { %9440 = vmatmul.mubr.msk.f32.vlgmr.msra.gmra.mrb[26].mxu1 %vm208_vm1, %v1947_v37  ;;  %v11446_v10 = vpack.c.bf16 %v10392_v6, %v10391_v9 }
 0x643   :  { %9935 = vmatpush3.bf16.xpose.msk.msra.mxu1 %vm11123_vm2, %v9930_v55  ;;  %9453 = vmatprep.mubr.msk.f32.mxu1 %vm208_vm1, %v2127_v43 }
 0x644   :  { %9941 = vmatprep.subr.bf16.mxu1 %v9940_v57 }
 0x64a   :  { %9454 = vmatmul.mubr.msk.f32.vlgmr.msra.gmra.mrb[28].mxu1 %vm208_vm1, %v2129_v44 }
 0x64b   :  { %9943 = vmatpush3.bf16.msra.mxu1 %v9940_v57 }
 0x64c   :  { %9949 = vmatprep.subr.bf16.mxu1 %v11446_v10 }
 0x698   :  { %v11449_v11 = vpop.f32.mrb[10].mxu0 }
 0x699   :  { %v11451_v13 = vpop.f32.mrb[11].mxu0 }
 0x6d4   :  { %v11453_v17 = vpop.f32.mrb[22].mxu1 }
 0x6d5   :  { %v11455_v4 = vpop.f32.mrb[23].mxu1 }
 0x6d8   :  { %v11457_v16 = vpop.f32.mrb[12].mxu0 }
 0x6d9   :  { %v11459_v14 = vpop.f32.mrb[13].mxu0 }
 0x6e0   :  { %v9434_v18 = vpop.f32.mrb[14].mxu0 }
 0x6e1   :  { %v1935_v19 = vpop.f32.mrb[15].mxu0  ;;  %v2220_v22 = vsel %vm567_vm3, %v9434_v18, -inf }
 0x6e2   :  { %2221 = vmax.xlane.f32.xlu1 %v2220_v22  ;;  %v2217_v15 = vsel %vm567_vm3, %v1935_v19, -inf }
 0x6e3   :  { %2218 = vmax.xlane.f32.xlu0 %v2217_v15 }
 0x703   :  { %v9448_v24 = vpop.f32.mrb[16].mxu0 }
 0x704   :  { %v2117_v25 = vpop.f32.mrb[17].mxu0  ;;  %v2232_v33 = vsel %vm567_vm3, %v9448_v24, -inf }
 0x705   :  { %v2229_v27 = vsel %vm567_vm3, %v2117_v25, -inf }
 0x706   :  { %2230 = vmax.xlane.f32.xlu1 %v2229_v27 }
 0x70d   :  { %v11464_v28 = vpop.f32.mrb[24].mxu1 }
 0x70e   :  { %v11466_v29 = vpop.f32.mrb[25].mxu1 }
 0x715   :  { %v9441_v23 = vpop.f32.mrb[26].mxu1 }
 0x716   :  { %v2026_v30 = vpop.f32.mrb[27].mxu1  ;;  %v2226_v1 = vsel %vm567_vm3, %v9441_v23, -inf }
 0x717   :  { %2227 = vmax.xlane.f32.xlu0 %v2226_v1  ;;  %v2223_v37 = vsel %vm567_vm3, %v2026_v30, -inf }
 0x71b   :  { %2233 = vmax.xlane.f32.xlu0 %v2232_v33 }
 0x71d   :  { %v9455_v39 = vpop.f32.mrb[28].mxu1 }
 0x71e   :  { %v2208_v35 = vpop.f32.mrb[29].mxu1  ;;  %v2238_v41 = vsel %vm567_vm3, %v9455_v39, -inf }
 0x71f   :  { %2224 = vmax.xlane.f32.xlu0 %v2223_v37  ;;  %v2235_v38 = vsel %vm567_vm3, %v2208_v35, -inf }
 0x720   :  { %2236 = vmax.xlane.f32.xlu1 %v2235_v38 }
 0x723   :  { %2239 = vmax.xlane.f32.xlu0 %v2238_v41 }
 0x731   :  { %10399 = vrot.lane.b32.xlu1 %v11090_v26, %s13151_s25 }
 0x739   :  { %10394 = vrot.lane.b32.xlu0 %v11079_v20, %s13151_s25 }
 0x76f   :  { %v2222_v42 = vpop.xlane.xlu1 %2221 }
 0x770   :  { %v2242_v43 = vsub.f32 %v9434_v18, %v2222_v42  ;;  %v2219_v34 = vpop.xlane.xlu0 %2218 }
 0x771   :  { %v2241_v44 = vsub.f32 %v1935_v19, %v2219_v34 }
 0x772   :  { %v2251_v45 = vmul.f32 1.442695, %v2242_v43 }
 0x773   :  { %v2249_v46 = vmul.f32 1.442695, %v2241_v44 }
 0x774   :  { %10657 = vpow2.f32 %v2251_v45 }
 0x775   :  { %10659 = vpow2.f32 %v2249_v46 }
 0x77e   :  { %v11477_v47 = vpop.eup %10657 }
 0x77f   :  { %v11479_v48 = vpop.eup %10659  ;;  %v2268_v2 = vsel %vm567_vm3, %v11477_v47, 0.0 }
 0x780   :  { %2269 = vadd.xlane.f32.xlu0 %v2268_v2  ;;  %v2265_v50 = vsel %vm567_vm3, %v11479_v48, 0.0 }
 0x781   :  { %2266 = vadd.xlane.f32.xlu1 %v2265_v50 }
 0x793   :  { %v2231_v58 = vpop.xlane.xlu1 %2230 }
 0x794   :  { %v2245_v55 = vsub.f32 %v2117_v25, %v2231_v58 }
 0x796   :  { %v2257_v12 = vmul.f32 1.442695, %v2245_v55 }
 0x7a4   :  { %v2228_v51 = vpop.xlane.xlu0 %2227 }
 0x7a5   :  { %v2244_v53 = vsub.f32 %v9441_v23, %v2228_v51 }
 0x7a7   :  { %v2255_v54 = vmul.f32 1.442695, %v2244_v53 }
 0x7a8   :  { %v2234_v60 = vpop.xlane.xlu0 %2233 }
 0x7a9   :  { %10661 = vpow2.f32 %v2255_v54  ;;  %v2246_v7 = vsub.f32 %v9448_v24, %v2234_v60 }
 0x7ab   :  { %v2259_v61 = vmul.f32 1.442695, %v2246_v7 }
 0x7ac   :  { %v2225_v63 = vpop.xlane.xlu0 %2224 }
 0x7ad   :  { %10663 = vpow2.f32 %v2259_v61  ;;  %v2243_v59 = vsub.f32 %v2026_v30, %v2225_v63  ;;  %v2237_v30 = vpop.xlane.xlu1 %2236 }
 0x7ae   :  { %v2247_v1 = vsub.f32 %v2208_v35, %v2237_v30 }
 0x7af   :  { %v2253_v57 = vmul.f32 1.442695, %v2243_v59 }
 0x7b0   :  { %v2240_v25 = vpop.xlane.xlu0 %2239  ;;  %v2261_v33 = vmul.f32 1.442695, %v2247_v1 }
 0x7b1   :  { %10665 = vpow2.f32 %v2253_v57  ;;  %v2248_v27 = vsub.f32 %v9455_v39, %v2240_v25  ;;  %v10400_v39 = vpop.permute.xlu1 %10399 }
 0x7b2   :  { %10667 = vpow2.f32 %v2257_v12  ;;  %v10402_v2 = vunpack.i.h.bf16 %v10400_v39  ;;  %v10401_v50 = vunpack.i.l.bf16 %v10400_v39 }
 0x7b3   :  { %v11485_v5 = vpop.eup %10661  ;;  %v2263_v23 = vmul.f32 1.442695, %v2248_v27 }
 0x7b4   :  { %v2274_v6 = vsel %vm567_vm3, %v11485_v5, 0.0  ;;  %v9958_v58 = vpack.c.bf16 %v10402_v2, %v10401_v50 }
 0x7b5   :  { %2275 = vadd.xlane.f32.xlu0 %v2274_v6  ;;  %10669 = vpow2.f32 %v2263_v23 }
 0x7b6   :  { %10671 = vpow2.f32 %v2261_v33 }
 0x7b7   :  { %v11489_v9 = vpop.eup %10663 }
 0x7b8   :  { %v2280_v18 = vsel %vm567_vm3, %v11489_v9, 0.0 }
 0x7b9   :  { %2281 = vadd.xlane.f32.xlu0 %v2280_v18 }
 0x7bb   :  { %v10666_v19 = vpop.eup %10665 }
 0x7bc   :  { %v2271_v22 = vsel %vm567_vm3, %v10666_v19, 0.0  ;;  %v11494_v15 = vpop.eup %10667 }
 0x7bd   :  { %2272 = vadd.xlane.f32.xlu1 %v2271_v22  ;;  %v2277_v24 = vsel %vm567_vm3, %v11494_v15, 0.0 }
 0x7bf   :  { %v11502_v37 = vpop.eup %10669 }
 0x7c0   :  { %v2286_v38 = vsel %vm567_vm3, %v11502_v37, 0.0  ;;  %v11506_v41 = vpop.eup %10671 }
 0x7c1   :  { %2278 = vadd.xlane.f32.xlu1 %v2277_v24 }
 0x7cf   :  { %2694 = vrot.lane.b32.xlu0 %v11081_v21, %s13149_s26  ;;  %v2283_v21 = vsel %vm567_vm3, %v11506_v41, 0.0 }
 0x7d2   :  { %2696 = vrot.lane.b32.xlu1 %v11133_v49, %s13149_s26  ;;  %v10395_v49 = vpop.permute.xlu0 %10394 }
 0x7d3   :  { %v10397_v43 = vunpack.i.h.bf16 %v10395_v49  ;;  %v10396_v34 = vunpack.i.l.bf16 %v10395_v49 }
 0x7d5   :  { %v9952_v45 = vpack.c.bf16 %v10397_v43, %v10396_v34 }
 0x7ee   :  { %2287 = vadd.xlane.f32.xlu0 %v2286_v38 }
 0x7f6   :  { %2284 = vadd.xlane.f32.xlu1 %v2283_v21 }
 0x804   :  { %10404 = vrot.lane.b32.xlu0 %v11094_v31, %s13151_s25 }
 0x807   :  { %2785 = vrot.lane.b32.xlu1 %v11135_v52, %s13149_s26 }
 0x808   :  { %2787 = vrot.lane.b32.xlu0 %v11150_v62, %s13149_s26 }
 0x80b   :  { %10409 = vrot.lane.b32.xlu1 %v11107_v36, %s13151_s25 }
 0x80c   :  { %2876 = vrot.lane.b32.xlu0 %v11096_v32, %s13149_s26 }
 0x80d   :  { %v2270_v35 = vpop.xlane.xlu0 %2269 }
 0x80e   :  { %10673 = vrcp.f32 %v2270_v35  ;;  %v2267_v42 = vpop.xlane.xlu1 %2266 }
 0x80f   :  { %10675 = vrcp.f32 %v2267_v42  ;;  %2878 = vrot.lane.b32.xlu1 %v11152_v0, %s13149_s26 }
 0x810   :  { %2967 = vrot.lane.b32.xlu0 %v11158_v3, %s13149_s26 }
 0x813   :  { %2969 = vrot.lane.b32.xlu1 %v11170_v8, %s13149_s26 }
 0x818   :  { %v10674_v52 = vpop.eup %10673 }
 0x819   :  { %v10676_v62 = vpop.eup %10675  ;;  %v2298_v32 = vmul.f32 %v10674_v52, %v11477_v47 }
 0x81a   :  { %v2297_v44 = vmul.f32 %v10676_v62, %v11479_v48 }
 0x81c   :  { %9460 = vmatprep.mubr.msk.f32.mxu0 %vm567_vm3, %v2297_v44 }
 0x81d   :  { %9461 = vmatmul.mubr.msk.f32.vlgmr.msra.gmra.mrb[18].mxu0 %vm567_vm3, %v2298_v32 }
 0x81e   :  { %9947 = vmatpush3.bf16.msra.mxu0 %v11438_v56 }
 0x81f   :  { %9954 = vmatprep.subr.msk.bf16.mxu0 %vm11123_vm2, %v9952_v45 }
 0x842   :  { %v2276_v0 = vpop.xlane.xlu0 %2275 }
 0x843   :  { %10677 = vrcp.f32 %v2276_v0 }
 0x846   :  { %v2282_v8 = vpop.xlane.xlu0 %2281 }
 0x84a   :  { %v2273_v3 = vpop.xlane.xlu1 %2272  ;;  %v2695_v55 = vpop.permute.xlu0 %2694 }
 0x84b   :  { %10679 = vrcp.f32 %v2273_v3 }
 0x84c   :  { %10681 = vrcp.f32 %v2282_v8 }
 0x84d   :  { %v10678_v48 = vpop.eup %10677 }
 0x84e   :  { %v2279_v46 = vpop.xlane.xlu1 %2278  ;;  %v2300_v53 = vmul.f32 %v10678_v48, %v11485_v5 }
 0x84f   :  { %10683 = vrcp.f32 %v2279_v46 }
 0x852   :  { %v2697_v61 = vpop.permute.xlu1 %2696 }
 0x855   :  { %v10680_v47 = vpop.eup %10679 }
 0x856   :  { %v2299_v51 = vmul.f32 %v10680_v47, %v10666_v19  ;;  %v10682_v54 = vpop.eup %10681 }
 0x857   :  { %v2302_v7 = vmul.f32 %v10682_v54, %v11489_v9 }
 0x858   :  { %9467 = vmatprep.mubr.msk.f32.mxu1 %vm567_vm3, %v2299_v51 }
 0x859   :  { %v10684_v56 = vpop.eup %10683  ;;  %9468 = vmatmul.mubr.msk.f32.vlgmr.msra.gmra.mrb[30].mxu1 %vm567_vm3, %v2300_v53 }
 0x85a   :  { %9951 = vmatpush3.bf16.msra.mxu1 %v11446_v10  ;;  %v2301_v60 = vmul.f32 %v10684_v56, %v11494_v15 }
 0x85b   :  { %9960 = vmatprep.subr.msk.bf16.mxu1 %vm11123_vm2, %v9958_v58 }
 0x85c   :  { %9474 = vmatprep.mubr.msk.f32.mxu0 %vm567_vm3, %v2301_v60 }
 0x85d   :  { %9475 = vmatmul.mubr.msk.f32.vlgmr.msra.gmra.mrb[20].mxu0 %vm567_vm3, %v2302_v7 }
 0x85e   :  { %9957 = vmatpush3.bf16.xpose.msk.msra.mxu0 %vm11123_vm2, %v9952_v45  ;;  %9488 = vmatprep.mubr.msk.f32.mxu0 %vm208_vm1, %v2695_v55 }
 0x865   :  { %9489 = vmatmul.mubr.msk.f32.vlgmr.msra.gmra.mrb[22].mxu0 %vm208_vm1, %v2697_v61 }
 0x87b   :  { %v2288_v10 = vpop.xlane.xlu0 %2287 }
 0x87c   :  { %10685 = vrcp.f32 %v2288_v10 }
 0x87f   :  { %v10405_v63 = vpop.permute.xlu0 %10404 }
 0x880   :  { %v10407_v59 = vunpack.i.h.bf16 %v10405_v63  ;;  %v10406_v12 = vunpack.i.l.bf16 %v10405_v63 }
 0x882   :  { %v9964_v57 = vpack.c.bf16 %v10407_v59, %v10406_v12 }
 0x883   :  { %v2788_v5 = vpop.permute.xlu0 %2787  ;;  %v2285_v6 = vpop.xlane.xlu1 %2284 }
 0x884   :  { %10687 = vrcp.f32 %v2285_v6  ;;  %9966 = vmatprep.subr.msk.bf16.mxu0 %vm11123_vm2, %v9964_v57 }
 0x885   :  { %9969 = vmatpush3.bf16.xpose.msk.msra.mxu0 %vm11123_vm2, %v9964_v57 }
 0x886   :  { %v10686_v22 = vpop.eup %10685 }
 0x887   :  { %v2877_v9 = vpop.permute.xlu0 %2876  ;;  %v2786_v18 = vpop.permute.xlu1 %2785  ;;  %v2304_v30 = vmul.f32 %v10686_v22, %v11502_v37 }
 0x888   :  { %9502 = vmatprep.mubr.msk.f32.mxu0 %vm208_vm1, %v2877_v9 }
 0x88b   :  { %v10410_v19 = vpop.permute.xlu1 %10409  ;;  %v2968_v33 = vpop.permute.xlu0 %2967 }
 0x88c   :  { %v10412_v24 = vunpack.i.h.bf16 %v10410_v19  ;;  %v10411_v25 = vunpack.i.l.bf16 %v10410_v19 }
 0x88e   :  { %v10688_v15 = vpop.eup %10687  ;;  %v9970_v1 = vpack.c.bf16 %v10412_v24, %v10411_v25 }
 0x88f   :  { %v2879_v27 = vpop.permute.xlu1 %2878  ;;  %v2303_v23 = vmul.f32 %v10688_v15, %v11506_v41 }
 0x890   :  { %9503 = vmatmul.mubr.msk.f32.vlgmr.msra.gmra.mrb[24].mxu0 %vm208_vm1, %v2879_v27 }
 0x891   :  { %9481 = vmatprep.mubr.msk.f32.mxu1 %vm567_vm3, %v2303_v23 }
 0x892   :  { %9482 = vmatmul.mubr.msk.f32.vlgmr.msra.gmra.mrb[32].mxu1 %vm567_vm3, %v2304_v30 }
 0x893   :  { %9963 = vmatpush3.bf16.xpose.msk.msra.mxu1 %vm11123_vm2, %v9958_v58  ;;  %9495 = vmatprep.mubr.msk.f32.mxu1 %vm208_vm1, %v2786_v18  ;;  %v2970_v37 = vpop.permute.xlu1 %2969 }
 0x894   :  { %9972 = vmatprep.subr.msk.bf16.mxu1 %vm11123_vm2, %v9970_v1 }
 0x89a   :  { %9496 = vmatmul.mubr.msk.f32.vlgmr.msra.gmra.mrb[34].mxu1 %vm208_vm1, %v2788_v5 }
 0x89b   :  { %9975 = vmatpush3.bf16.xpose.msk.msra.mxu1 %vm11123_vm2, %v9970_v1  ;;  %9509 = vmatprep.mubr.msk.f32.mxu1 %vm208_vm1, %v2968_v33 }
 0x8a2   :  { %9510 = vmatmul.mubr.msk.f32.vlgmr.msra.gmra.mrb[36].mxu1 %vm208_vm1, %v2970_v37 }
 0x8f0   :  { %v11567_v38 = vpop.f32.mrb[18].mxu0 }
 0x8f1   :  { %v11569_v41 = vpop.f32.mrb[19].mxu0 }
 0x92c   :  { %v11571_v21 = vpop.f32.mrb[30].mxu1 }
 0x92d   :  { %v11573_v49 = vpop.f32.mrb[31].mxu1 }
 0x930   :  { %v11575_v39 = vpop.f32.mrb[20].mxu0 }
 0x931   :  { %v11577_v35 = vpop.f32.mrb[21].mxu0 }
 0x938   :  { %v9490_v42 = vpop.f32.mrb[22].mxu0 }
 0x939   :  { %v2776_v52 = vpop.f32.mrb[23].mxu0  ;;  %v3061_v62 = vsel %vm567_vm3, %v9490_v42, -inf }
 0x93a   :  { %3062 = vmax.xlane.f32.xlu1 %v3061_v62  ;;  %v3058_v43 = vsel %vm567_vm3, %v2776_v52, -inf }
 0x93b   :  { %3059 = vmax.xlane.f32.xlu0 %v3058_v43 }
 0x963   :  { %v9504_v34 = vpop.f32.mrb[24].mxu0 }
 0x964   :  { %v2958_v44 = vpop.f32.mrb[25].mxu0  ;;  %v3073_v50 = vsel %vm567_vm3, %v9504_v34, -inf }
 0x965   :  { %v11581_v32 = vpop.f32.mrb[32].mxu1  ;;  %v3070_v45 = vsel %vm567_vm3, %v2958_v44, -inf }
 0x966   :  { %v11584_v0 = vpop.f32.mrb[33].mxu1  ;;  %3071 = vmax.xlane.f32.xlu1 %v3070_v45 }
 0x96d   :  { %v9497_v3 = vpop.f32.mrb[34].mxu1 }
 0x96e   :  { %v2867_v8 = vpop.f32.mrb[35].mxu1  ;;  %v3067_v48 = vsel %vm567_vm3, %v9497_v3, -inf }
 0x96f   :  { %v3064_v46 = vsel %vm567_vm3, %v2867_v8, -inf }
 0x970   :  { %3065 = vmax.xlane.f32.xlu0 %v3064_v46 }
 0x974   :  { %3068 = vmax.xlane.f32.xlu0 %v3067_v48 }
 0x975   :  { %v9511_v47 = vpop.f32.mrb[36].mxu1 }
 0x976   :  { %v3049_v2 = vpop.f32.mrb[37].mxu1  ;;  %v3079_v53 = vsel %vm567_vm3, %v9511_v47, -inf }
 0x977   :  { %v3076_v51 = vsel %vm567_vm3, %v3049_v2, -inf }
 0x978   :  { %3074 = vmax.xlane.f32.xlu0 %v3073_v50  ;;  %3077 = vmax.xlane.f32.xlu1 %v3076_v51 }
 0x97c   :  { %3080 = vmax.xlane.f32.xlu0 %v3079_v53 }
 0x989   :  { %10414 = vrot.lane.b32.xlu1 %v11079_v20, %s13147_s27 }
 0x9c7   :  { %v3063_v54 = vpop.xlane.xlu1 %3062 }
 0x9c8   :  { %v3083_v56 = vsub.f32 %v9490_v42, %v3063_v54  ;;  %v3060_v58 = vpop.xlane.xlu0 %3059 }
 0x9c9   :  { %v3082_v60 = vsub.f32 %v2776_v52, %v3060_v58 }
 0x9ca   :  { %v3092_v7 = vmul.f32 1.442695, %v3083_v56 }
 0x9cb   :  { %v3090_v55 = vmul.f32 1.442695, %v3082_v60 }
 0x9cc   :  { %10689 = vpow2.f32 %v3092_v7 }
 0x9cd   :  { %10691 = vpow2.f32 %v3090_v55 }
 0x9d6   :  { %v11593_v61 = vpop.eup %10689 }
 0x9d7   :  { %v11595_v10 = vpop.eup %10691  ;;  %v3109_v63 = vsel %vm567_vm3, %v11593_v61, 0.0 }
 0x9d8   :  { %3110 = vadd.xlane.f32.xlu0 %v3109_v63  ;;  %v3106_v59 = vsel %vm567_vm3, %v11595_v10, 0.0 }
 0x9d9   :  { %3107 = vadd.xlane.f32.xlu1 %v3106_v59 }
 0x9f3   :  { %v3072_v20 = vpop.xlane.xlu1 %3071 }
 0x9f4   :  { %v3086_v12 = vsub.f32 %v2958_v44, %v3072_v20 }
 0x9f6   :  { %v3098_v6 = vmul.f32 1.442695, %v3086_v12 }
 0x9fd   :  { %v3066_v57 = vpop.xlane.xlu0 %3065 }
 0x9fe   :  { %v3084_v5 = vsub.f32 %v2867_v8, %v3066_v57 }
 0xa00   :  { %v3094_v9 = vmul.f32 1.442695, %v3084_v5 }
 0xa01   :  { %v3069_v18 = vpop.xlane.xlu0 %3068 }
 0xa02   :  { %10693 = vpow2.f32 %v3094_v9  ;;  %v3085_v19 = vsub.f32 %v9497_v3, %v3069_v18 }
 0xa03   :  { %10695 = vpow2.f32 %v3098_v6 }
 0xa04   :  { %v3096_v22 = vmul.f32 1.442695, %v3085_v19 }
 0xa05   :  { %v3075_v15 = vpop.xlane.xlu0 %3074  ;;  %v3078_v24 = vpop.xlane.xlu1 %3077 }
 0xa06   :  { %10697 = vpow2.f32 %v3096_v22  ;;  %v3087_v25 = vsub.f32 %v9504_v34, %v3075_v15  ;;  %v3088_v23 = vsub.f32 %v3049_v2, %v3078_v24 }
 0xa08   :  { %v3100_v27 = vmul.f32 1.442695, %v3087_v25  ;;  %v3102_v62 = vmul.f32 1.442695, %v3088_v23 }
 0xa09   :  { %v3081_v30 = vpop.xlane.xlu0 %3080  ;;  %v10415_v1 = vpop.permute.xlu1 %10414 }
 0xa0a   :  { %10699 = vpow2.f32 %v3100_v27  ;;  %v3089_v33 = vsub.f32 %v9511_v47, %v3081_v30  ;;  %v10417_v37 = vunpack.i.h.bf16 %v10415_v1  ;;  %v10416_v42 = vunpack.i.l.bf16 %v10415_v1 }
 0xa0c   :  { %v11601_v52 = vpop.eup %10693  ;;  %v3104_v43 = vmul.f32 1.442695, %v3089_v33  ;;  %v9976_v44 = vpack.c.bf16 %v10417_v37, %v10416_v42 }
 0xa0d   :  { %v3112_v45 = vsel %vm567_vm3, %v11601_v52, 0.0  ;;  %v11605_v3 = vpop.eup %10695 }
 0xa0e   :  { %10701 = vpow2.f32 %v3104_v43  ;;  %3113 = vadd.xlane.f32.xlu1 %v3112_v45  ;;  %9977 = vmatprep.subr.bf16.mxu0 %v9976_v44  ;;  %v3118_v46 = vsel %vm567_vm3, %v11605_v3, 0.0  ;;  %v3543_v45 = vld [vmem:[%s13136_s3] sm:$0xff] }
 0xa0f   :  { %9979 = vmatpush3.bf16.msra.mxu0 %v9976_v44  ;;  %10703 = vpow2.f32 %v3102_v62 }
 0xa10   :  { %v11607_v34 = vpop.eup %10697 }
 0xa11   :  { %v3115_v8 = vsel %vm567_vm3, %v11607_v34, 0.0 }
 0xa12   :  { %3116 = vadd.xlane.f32.xlu0 %v3115_v8  ;;  %3119 = vadd.xlane.f32.xlu1 %v3118_v46  ;;  %v3545_v8 = vld [vmem:[%s13136_s3 + $0x10] sm:$0xff]  ;;  %v3546_v46 = vld [vmem:[%s13136_s3 + $0x18] sm:$0xff] }
 0xa14   :  { %v11613_v48 = vpop.eup %10699 }
 0xa15   :  { %v3121_v47 = vsel %vm567_vm3, %v11613_v48, 0.0 }
 0xa16   :  { %3122 = vadd.xlane.f32.xlu0 %v3121_v47 }
 0xa18   :  { %v11617_v2 = vpop.eup %10701 }
 0xa19   :  { %v3127_v50 = vsel %vm567_vm3, %v11617_v2, 0.0  ;;  %v11621_v51 = vpop.eup %10703 }
 0xa1a   :  { %3128 = vadd.xlane.f32.xlu0 %v3127_v50  ;;  %v3124_v53 = vsel %vm567_vm3, %v11621_v51, 0.0 }
 0xa1e   :  { %3125 = vadd.xlane.f32.xlu0 %v3124_v53 }
 0xa23   :  { %10424 = vrot.lane.b32.xlu1 %v11094_v31, %s13147_s27 }
 0xa27   :  { %10429 = vrot.lane.b32.xlu1 %v11107_v36, %s13147_s27 }
 0xa2b   :  { %1820 = vrot.lane.b32.xlu1 %v11451_v13, %s13159_s28 }
 0xa2f   :  { %1822 = vrot.lane.b32.xlu1 %v11449_v11, %s13159_s28 }
 0xa33   :  { %2663 = vrot.lane.b32.xlu1 %v11567_v38, %s13157_s29 }
 0xa34   :  { %10419 = vrot.lane.b32.xlu0 %v11090_v26, %s13147_s27 }
 0xa37   :  { %1826 = vrot.lane.b32.xlu1 %v11453_v17, %s13159_s28 }
 0xa38   :  { %2661 = vrot.lane.b32.xlu0 %v11569_v41, %s13157_s29 }
 0xa3b   :  { %2667 = vrot.lane.b32.xlu1 %v11571_v21, %s13157_s29 }
 0xa3c   :  { %1824 = vrot.lane.b32.xlu0 %v11455_v4, %s13159_s28 }
 0xa3f   :  { %1830 = vrot.lane.b32.xlu1 %v11457_v16, %s13159_s28 }
 0xa40   :  { %2665 = vrot.lane.b32.xlu0 %v11573_v49, %s13157_s29 }
 0xa44   :  { %1828 = vrot.lane.b32.xlu0 %v11459_v14, %s13159_s28 }
 0xa65   :  { %v3111_v26 = vpop.xlane.xlu0 %3110 }
 0xa66   :  { %10705 = vrcp.f32 %v3111_v26  ;;  %v3108_v31 = vpop.xlane.xlu1 %3107 }
 0xa67   :  { %10707 = vrcp.f32 %v3108_v31 }
 0xa70   :  { %v10706_v36 = vpop.eup %10705 }
 0xa71   :  { %v10708_v11 = vpop.eup %10707  ;;  %v3139_v17 = vmul.f32 %v10706_v36, %v11593_v61 }
 0xa72   :  { %v3138_v13 = vmul.f32 %v10708_v11, %v11595_v10 }
 0xa74   :  { %9516 = vmatprep.mubr.msk.f32.mxu0 %vm567_vm3, %v3138_v13 }
 0xa75   :  { %9517 = vmatmul.mubr.msk.f32.vlgmr.msra.gmra.mrb[26].mxu0 %vm567_vm3, %v3139_v17 }
 0xa9b   :  { %v3114_v4 = vpop.xlane.xlu1 %3113 }
 0xa9c   :  { %10709 = vrcp.f32 %v3114_v4 }
 0xa9f   :  { %v3117_v16 = vpop.xlane.xlu0 %3116  ;;  %v3120_v38 = vpop.xlane.xlu1 %3119 }
 0xaa0   :  { %10711 = vrcp.f32 %v3120_v38 }
 0xaa3   :  { %v3123_v14 = vpop.xlane.xlu0 %3122  ;;  %v10425_v41 = vpop.permute.xlu1 %10424 }
 0xaa4   :  { %10713 = vrcp.f32 %v3123_v14  ;;  %v10427_v21 = vunpack.i.h.bf16 %v10425_v41  ;;  %v10426_v49 = vunpack.i.l.bf16 %v10425_v41 }
 0xaa5   :  { %10715 = vrcp.f32 %v3117_v16 }
 0xaa6   :  { %v10710_v54 = vpop.eup %10709  ;;  %v9984_v56 = vpack.c.bf16 %v10427_v21, %v10426_v49 }
 0xaa7   :  { %v3129_v58 = vpop.xlane.xlu0 %3128  ;;  %v10430_v60 = vpop.permute.xlu1 %10429  ;;  %v3140_v7 = vmul.f32 %v10710_v54, %v11601_v52 }
 0xaa8   :  { %9985 = vmatprep.subr.bf16.mxu0 %v9984_v56  ;;  %v10432_v5 = vunpack.i.h.bf16 %v10430_v60  ;;  %v10431_v6 = vunpack.i.l.bf16 %v10430_v60 }
 0xaa9   :  { %9523 = vmatprep.mubr.msk.f32.mxu1 %vm567_vm3, %v3140_v7  ;;  %9987 = vmatpush3.bf16.msra.mxu0 %v9984_v56 }
 0xaaa   :  { %v10712_v55 = vpop.eup %10711  ;;  %v9988_v25 = vpack.c.bf16 %v10432_v5, %v10431_v6  ;;  %v10914_v5 = vld [vmem:[%s13133_s0] sm:$0xff] }
 0xaab   :  { %v3126_v61 = vpop.xlane.xlu0 %3125  ;;  %v1821_v10 = vpop.permute.xlu1 %1820  ;;  %v3142_v63 = vmul.f32 %v10712_v55, %v11605_v3  ;;  %v3544_v3 = vld [vmem:[%s13136_s3 + $0x8] sm:$0xff] }
 0xaac   :  { %10717 = vrcp.f32 %v3126_v61  ;;  %1845 = vst.msk [vmem:[#allocation2] sm:$0xff] %vm1844_vm4, %v1821_v10  ;;  %v8675_v61 = vld [vmem:[%s13137_s4] ss:$0 sm:$0xff] }
 0xaad   :  { %10719 = vrcp.f32 %v3129_v58  ;;  %9530 = vmatprep.mubr.msk.f32.mxu0 %vm567_vm3, %v3142_v63 }
 0xaae   :  { %v10714_v59 = vpop.eup %10713 }
 0xaaf   :  { %v10420_v20 = vpop.permute.xlu0 %10419  ;;  %v1823_v12 = vpop.permute.xlu1 %1822  ;;  %v3143_v57 = vmul.f32 %v10714_v59, %v11613_v48  ;;  %v9996_v48 = vpack.c.bf16 %v3546_v46, %v3545_v8 }
 0xab0   :  { %v10422_v9 = vunpack.i.h.bf16 %v10420_v20  ;;  %v10421_v18 = vunpack.i.l.bf16 %v10420_v20  ;;  %1846 = vst.msk [vmem:[#allocation2 + $0x8] sm:$0xff] %vm1844_vm4, %v1823_v12  ;;  %v10716_v22 = vpop.eup %10715  ;;  %v10913_v12 = vld [vmem:[%s13133_s0 + $0x8] sm:$0xff] }
 0xab1   :  { %9531 = vmatmul.mubr.msk.f32.vlgmr.msra.gmra.mrb[28].mxu0 %vm567_vm3, %v3143_v57  ;;  %v3141_v23 = vmul.f32 %v10716_v22, %v11607_v34  ;;  %v9992_v34 = vpack.c.bf16 %v3544_v3, %v3543_v45  ;;  %v10918_v45 = vld [vmem:[%s13133_s0 + $0x20] sm:$0xff] }
 0xab2   :  { %v9980_v19 = vpack.c.bf16 %v10422_v9, %v10421_v18 }
 0xab3   :  { %v2662_v15 = vpop.permute.xlu0 %2661  ;;  %v2664_v24 = vpop.permute.xlu1 %2663  ;;  %9993 = vmatprep.subr.bf16.mxu0 %v9992_v34 }
 0xab4   :  { %2686 = vst.msk [vmem:[#allocation2] sm:$0xff] %vm2685_vm5, %v2662_v15  ;;  %2687 = vst.msk [vmem:[#allocation2 + $0x8] sm:$0xff] %vm2685_vm5, %v2664_v24  ;;  %9981 = vmatprep.subr.bf16.mxu1 %v9980_v19  ;;  %9995 = vmatpush3.bf16.msra.mxu0 %v9992_v34 }
 0xab5   :  { %9983 = vmatpush3.bf16.msra.mxu1 %v9980_v19  ;;  %9997 = vmatprep.subr.bf16.mxu0 %v9996_v48 }
 0xab6   :  { %v10718_v27 = vpop.eup %10717  ;;  %9989 = vmatprep.subr.bf16.mxu1 %v9988_v25 }
 0xab7   :  { %v10720_v30 = vpop.eup %10719  ;;  %v1825_v1 = vpop.permute.xlu0 %1824  ;;  %v3144_v37 = vmul.f32 %v10718_v27, %v11621_v51 }
 0xab8   :  { %v1827_v33 = vpop.permute.xlu1 %1826  ;;  %1847 = vst.msk [vmem:[#allocation2 + $0x10] sm:$0xff] %vm1844_vm4, %v1825_v1  ;;  %9524 = vmatmul.mubr.msk.f32.vlgmr.msra.gmra.mrb[38].mxu1 %vm567_vm3, %v3141_v23  ;;  %v3145_v42 = vmul.f32 %v10720_v30, %v11617_v2  ;;  %9999 = vmatpush3.bf16.msra.mxu0 %v9996_v48  ;;  %v10916_v23 = vld [vmem:[%s13133_s0 + $0x18] sm:$0xff] }
 0xab9   :  { %1848 = vst.msk [vmem:[#allocation2 + $0x18] sm:$0xff] %vm1844_vm4, %v1827_v33  ;;  %9991 = vmatpush3.bf16.msra.mxu1 %v9988_v25  ;;  %9537 = vmatprep.mubr.msk.f32.mxu1 %vm567_vm3, %v3144_v37  ;;  %v10915_v25 = vld [vmem:[%s13133_s0 + $0x10] sm:$0xff] }
 0xabb   :  { %v2666_v52 = vpop.permute.xlu0 %2665 }
 0xabc   :  { %v2668_v62 = vpop.permute.xlu1 %2667  ;;  %2688 = vst.msk [vmem:[#allocation2 + $0x10] sm:$0xff] %vm2685_vm5, %v2666_v52  ;;  %9538 = vmatmul.mubr.msk.f32.vlgmr.msra.gmra.mrb[40].mxu1 %vm567_vm3, %v3145_v42 }
 0xabd   :  { %2689 = vst.msk [vmem:[#allocation2 + $0x18] sm:$0xff] %vm2685_vm5, %v2668_v62 }
 0xabf   :  { %v1829_v43 = vpop.permute.xlu0 %1828 }
 0xac0   :  { %v1831_v44 = vpop.permute.xlu1 %1830  ;;  %1849 = vst.msk [vmem:[#allocation2 + $0x20] sm:$0xff] %vm1844_vm4, %v1829_v43  ;;  %v10917_v43 = vld [vmem:[%s13133_s0 + $0x28] sm:$0xff] }
 0xac1   :  { %1850 = vst.msk [vmem:[#allocation2 + $0x28] sm:$0xff] %vm1844_vm4, %v1831_v44 }
 0xb48   :  { %v9518_v47 = vpop.f32.mrb[26].mxu0 }
 0xb49   :  { %3504 = vrot.lane.b32.xlu1 %v9518_v47, %s13155_s30  ;;  %v3224_v2 = vpop.f32.mrb[27].mxu0 }
 0xb4a   :  { %3502 = vrot.lane.b32.xlu0 %v3224_v2, %s13155_s30 }
 0xb4d   :  { %2671 = vrot.lane.b32.xlu1 %v11575_v39, %s13157_s29 }
 0xb4e   :  { %2669 = vrot.lane.b32.xlu0 %v11577_v35, %s13157_s29 }
 0xb84   :  { %v9532_v50 = vpop.f32.mrb[28].mxu0 }
 0xb85   :  { %v3398_v51 = vpop.f32.mrb[29].mxu0 }
 0xb8b   :  { %v9525_v53 = vpop.f32.mrb[38].mxu1 }
 0xb8c   :  { %v3311_v26 = vpop.f32.mrb[39].mxu1  ;;  %3508 = vrot.lane.b32.xlu1 %v9525_v53, %s13155_s30  ;;  %v10920_v53 = vld [vmem:[%s13133_s0 + $0x30] sm:$0xff] }
 0xb8d   :  { %3506 = vrot.lane.b32.xlu0 %v3311_v26, %s13155_s30 }
 0xb8f   :  { %v9539_v31 = vpop.f32.mrb[40].mxu1 }
 0xb90   :  { %v3485_v36 = vpop.f32.mrb[41].mxu1  ;;  %3512 = vrot.lane.b32.xlu1 %v9532_v50, %s13155_s30  ;;  %v10919_v50 = vld [vmem:[%s13133_s0 + $0x38] sm:$0xff] }
 0xb91   :  { %1832 = vrot.lane.b32.xlu0 %v11466_v29, %s13159_s28 }
 0xb94   :  { %1834 = vrot.lane.b32.xlu1 %v11464_v28, %s13159_s28 }
 0xb95   :  { %3510 = vrot.lane.b32.xlu0 %v3398_v51, %s13155_s30 }
 0xb98   :  { %2675 = vrot.lane.b32.xlu1 %v11581_v32, %s13157_s29 }
 0xb99   :  { %2673 = vrot.lane.b32.xlu0 %v11584_v0, %s13157_s29 }
 0xb9c   :  { %3516 = vrot.lane.b32.xlu1 %v9539_v31, %s13155_s30 }
 0xb9d   :  { %3514 = vrot.lane.b32.xlu0 %v3485_v36, %s13155_s30 }
 0xbbb   :  { %v3505_v39 = vpop.permute.xlu1 %3504 }
 0xbbc   :  { %3528 = vst.msk [vmem:[#allocation2 + $0x8] sm:$0xff] %vm3526_vm6, %v3505_v39  ;;  %v3503_v29 = vpop.permute.xlu0 %3502 }
 0xbbd   :  { %3527 = vst.msk [vmem:[#allocation2] sm:$0xff] %vm3526_vm6, %v3503_v29 }
 0xbbf   :  { %v2672_v28 = vpop.permute.xlu1 %2671 }
 0xbc0   :  { %2691 = vst.msk [vmem:[#allocation2 + $0x28] sm:$0xff] %vm2685_vm5, %v2672_v28  ;;  %v2670_v35 = vpop.permute.xlu0 %2669 }
 0xbc1   :  { %2690 = vst.msk [vmem:[#allocation2 + $0x20] sm:$0xff] %vm2685_vm5, %v2670_v35 }
 0xbc3   :  { %v3536_v0 = vld [vmem:[#allocation2 + $0x8] sm:$0xff] }
 0xbc4   :  { %v3535_v32 = vld [vmem:[#allocation2] sm:$0xff] }
 0xbc5   :  { %9548 = vmatprep.mubr.msk.f32.mxu0 %vm64_vm0, %v3535_v32 }
 0xbc6   :  { %9549 = vmatmul.mubr.msk.f32.vlgmr.msra.gmra.mrb[30].mxu0 %vm64_vm0, %v3536_v0 }
 0xbfe   :  { %v3509_v11 = vpop.permute.xlu1 %3508 }
 0xbff   :  { %3530 = vst.msk [vmem:[#allocation2 + $0x18] sm:$0xff] %vm3526_vm6, %v3509_v11  ;;  %v3507_v13 = vpop.permute.xlu0 %3506 }
 0xc00   :  { %3529 = vst.msk [vmem:[#allocation2 + $0x10] sm:$0xff] %vm3526_vm6, %v3507_v13 }
 0xc02   :  { %v3513_v17 = vpop.permute.xlu1 %3512 }
 0xc03   :  { %3532 = vst.msk [vmem:[#allocation2 + $0x28] sm:$0xff] %vm3526_vm6, %v3513_v17  ;;  %v1833_v4 = vpop.permute.xlu0 %1832 }
 0xc04   :  { %1851 = vst.msk [vmem:[#allocation2 + $0x30] sm:$0xff] %vm1844_vm4, %v1833_v4 }
 0xc06   :  { %v1835_v16 = vpop.permute.xlu1 %1834  ;;  %v3538_v41 = vld [vmem:[#allocation2 + $0x18] sm:$0xff] }
 0xc07   :  { %1852 = vst.msk [vmem:[#allocation2 + $0x38] sm:$0xff] %vm1844_vm4, %v1835_v16  ;;  %v3511_v38 = vpop.permute.xlu0 %3510  ;;  %v3537_v14 = vld [vmem:[#allocation2 + $0x10] sm:$0xff]  ;;  %v3827_v16 = vld [vmem:[%s13138_s5 + $0x8] sm:$0xff] }
 0xc08   :  { %3531 = vst.msk [vmem:[#allocation2 + $0x20] sm:$0xff] %vm3526_vm6, %v3511_v38  ;;  %9551 = vmatprep.mubr.msk.f32.mxu0 %vm64_vm0, %v3537_v14  ;;  %v3829_v38 = vld [vmem:[%s13138_s5 + $0x18] sm:$0xff] }
 0xc09   :  { %9552 = vmatmul.mubr.msk.f32.gmra.mrb[32].mxu0 %vm64_vm0, %v3538_v41  ;;  %v10000_v14 = vpack.c.bf16 %v3829_v38, %v3827_v16  ;;  %v3826_v41 = vld [vmem:[%s13138_s5] sm:$0xff]  ;;  %v4022_v16 = vld [vmem:[%s13140_s7 + $0xb8] sm:$0xff] }
 0xc0a   :  { %v2676_v21 = vpop.permute.xlu1 %2675  ;;  %v3540_v60 = vld [vmem:[#allocation2 + $0x28] sm:$0xff] }
 0xc0b   :  { %2693 = vst.msk [vmem:[#allocation2 + $0x38] sm:$0xff] %vm2685_vm5, %v2676_v21  ;;  %v2674_v49 = vpop.permute.xlu0 %2673  ;;  %v3828_v21 = vld [vmem:[%s13138_s5 + $0x10] sm:$0xff]  ;;  %10001 = vmatprep.subr.bf16.mxu1 %v10000_v14 }
 0xc0c   :  { %2692 = vst.msk [vmem:[#allocation2 + $0x30] sm:$0xff] %vm2685_vm5, %v2674_v49  ;;  %v10002_v49 = vpack.c.bf16 %v3828_v21, %v3826_v41  ;;  %v4005_v41 = vld [vmem:[%s13140_s7 + $0x30] sm:$0xff]  ;;  %v4006_v21 = vld [vmem:[%s13140_s7 + $0x38] sm:$0xff] }
 0xc0e   :  { %v3517_v54 = vpop.permute.xlu1 %3516  ;;  %10003 = vmatpush1.bf16.msra.mxu1 %v10002_v49  ;;  %v4023_v49 = vld [vmem:[%s13140_s7 + $0xc0] sm:$0xff] }
 0xc0f   :  { %3534 = vst.msk [vmem:[#allocation2 + $0x38] sm:$0xff] %vm3526_vm6, %v3517_v54  ;;  %v3515_v56 = vpop.permute.xlu0 %3514  ;;  %v3539_v58 = vld [vmem:[#allocation2 + $0x20] sm:$0xff]  ;;  %v3831_v54 = vld [vmem:[%s13138_s5 + $0x28] sm:$0xff] }
 0xc10   :  { %3533 = vst.msk [vmem:[#allocation2 + $0x30] sm:$0xff] %vm3526_vm6, %v3515_v56  ;;  %9554 = vmatprep.mubr.msk.f32.mxu0 %vm64_vm0, %v3539_v58  ;;  %v3833_v56 = vld [vmem:[%s13138_s5 + $0x38] sm:$0xff]  ;;  %v3830_v58 = vld [vmem:[%s13138_s5 + $0x20] sm:$0xff] }
 0xc11   :  { %9555 = vmatmul.mubr.msk.f32.gmra.mrb[34].mxu0 %vm64_vm0, %v3540_v60  ;;  %v10004_v60 = vpack.c.bf16 %v3833_v56, %v3831_v54  ;;  %v4024_v54 = vld [vmem:[%s13140_s7 + $0xc8] sm:$0xff]  ;;  %v10022_v56 = vpack.c.bf16 %v4006_v21, %v4005_v41 }
 0xc13   :  { %10005 = vmatprep.subr.bf16.mxu1 %v10004_v60  ;;  %v4007_v60 = vld [vmem:[%s13140_s7 + $0x40] sm:$0xff] }
 0xc16   :  { %v3542_v55 = vld [vmem:[#allocation2 + $0x38] sm:$0xff] }
 0xc17   :  { %v3541_v7 = vld [vmem:[#allocation2 + $0x30] sm:$0xff] }
 0xc18   :  { %9557 = vmatprep.mubr.msk.f32.mxu0 %vm64_vm0, %v3541_v7  ;;  %v3832_v7 = vld [vmem:[%s13138_s5 + $0x30] sm:$0xff] }
 0xc19   :  { %9558 = vmatmul.mubr.msk.f32.gmra.mrb[36].mxu0 %vm64_vm0, %v3542_v55  ;;  %v10959_v55 = vmov 0.0  }
 0xc1a   :  { %3934 = vmatprep.mubr.f32.mxu1 %v10959_v55 }
 0xc99   :  { %v9550_v10 = vpop.f32.mrb[30].mxu0 }
 0xc9a   :  { %v3650_v63 = vadd.f32 %v9550_v10, %v8675_v61  ;;  %v3644_v59 = vpop.f32.mrb[31].mxu0 }
 0xc9b   :  { %v3645_v20 = vadd.f32 %v8675_v61, %v3644_v59 }
 0xc9c   :  { %v3684_v57 = vadd.f32 %v10913_v12, %v3650_v63 }
 0xc9d   :  { %v3683_v6 = vadd.f32 %v10914_v5, %v3645_v20 }
 0xc9e   :  { %v3696_v9 = vsel %vm64_vm0, %v3684_v57, 0.0 }
 0xc9f   :  { %3697 = vadd.xlane.f32.xlu1 %v3696_v9  ;;  %v3693_v18 = vsel %vm64_vm0, %v3683_v6, 0.0 }
 0xca0   :  { %3694 = vadd.xlane.f32.xlu0 %v3693_v18 }
 0xcdc   :  { %v9553_v19 = vpop.f32.mrb[32].mxu0 }
 0xcdd   :  { %v3654_v22 = vpop.f32.mrb[33].mxu0  ;;  %v3660_v15 = vadd.f32 %v9553_v19, %v8675_v61 }
 0xcde   :  { %v3655_v24 = vadd.f32 %v8675_v61, %v3654_v22 }
 0xcdf   :  { %v11750_v30 = vadd.f32 %v10916_v23, %v3660_v15 }
 0xce0   :  { %v11745_v27 = vadd.f32 %v10915_v25, %v3655_v24 }
 0xce1   :  { %v3702_v62 = vsel %vm64_vm0, %v11750_v30, 0.0 }
 0xce2   :  { %v3699_v1 = vsel %vm64_vm0, %v11745_v27, 0.0 }
 0xce3   :  { %3700 = vadd.xlane.f32.xlu0 %v3699_v1 }
 0xce4   :  { %v9556_v33 = vpop.f32.mrb[34].mxu0 }
 0xce5   :  { %v3670_v37 = vadd.f32 %v9556_v33, %v8675_v61  ;;  %v3664_v42 = vpop.f32.mrb[35].mxu0 }
 0xce6   :  { %v3665_v52 = vadd.f32 %v8675_v61, %v3664_v42 }
 0xce7   :  { %v11759_v44 = vadd.f32 %v10917_v43, %v3670_v37  ;;  %3703 = vadd.xlane.f32.xlu0 %v3702_v62 }
 0xce8   :  { %v3687_v3 = vadd.f32 %v10918_v45, %v3665_v52 }
 0xce9   :  { %v3708_v34 = vsel %vm64_vm0, %v11759_v44, 0.0 }
 0xcea   :  { %v3705_v8 = vsel %vm64_vm0, %v3687_v3, 0.0 }
 0xceb   :  { %3706 = vadd.xlane.f32.xlu1 %v3705_v8  ;;  %3709 = vadd.xlane.f32.xlu0 %v3708_v34 }
 0xcec   :  { %v9559_v46 = vpop.f32.mrb[36].mxu0 }
 0xced   :  { %v3680_v48 = vadd.f32 %v9559_v46, %v8675_v61  ;;  %v3674_v47 = vpop.f32.mrb[37].mxu0  ;;  %v4015_v46 = vld [vmem:[%s13140_s7 + $0x80] sm:$0xff] }
 0xcee   :  { %v3675_v2 = vadd.f32 %v8675_v61, %v3674_v47  ;;  %v10006_v61 = vpack.c.bf16 %v3832_v7, %v3830_v58  ;;  %v3999_v47 = vld [vmem:[%s13140_s7] sm:$0xff]  ;;  %v10024_v58 = vpack.c.bf16 %v4024_v54, %v4023_v49  ;;  %v4008_v7 = vld [vmem:[%s13140_s7 + $0x48] sm:$0xff] }
 0xcef   :  { %v11770_v51 = vadd.f32 %v10919_v50, %v3680_v48  ;;  %v4016_v48 = vld [vmem:[%s13140_s7 + $0x88] sm:$0xff] }
 0xcf0   :  { %v11775_v26 = vadd.f32 %v10920_v53, %v3675_v2  ;;  %10007 = vmatpush1.bf16.msra.mxu1 %v10006_v61  ;;  %v10008_v2 = vpack.c.bf16 %v4016_v48, %v4015_v46  ;;  %v4000_v50 = vld [vmem:[%s13140_s7 + $0x8] sm:$0xff]  ;;  %v4018_v53 = vld [vmem:[%s13140_s7 + $0x98] sm:$0xff]  ;;  %v4025_v61 = vld [vmem:[%s13140_s7 + $0xd0] sm:$0xff] }
 0xcf1   :  { %v3714_v31 = vsel %vm64_vm0, %v11770_v51, 0.0 }
 0xcf2   :  { %3715 = vadd.xlane.f32.xlu0 %v3714_v31  ;;  %v3711_v36 = vsel %vm64_vm0, %v11775_v26, 0.0  ;;  %10009 = vmatprep.subr.bf16.mxu0 %v10008_v2 }
 0xcf3   :  { %3712 = vadd.xlane.f32.xlu1 %v3711_v36  ;;  %v4001_v36 = vld [vmem:[%s13140_s7 + $0x10] sm:$0xff] }
 0xd2c   :  { %v3698_v39 = vpop.xlane.xlu1 %3697 }
 0xd2d   :  { %v3719_v29 = vmul.f32 0.03125, %v3698_v39  ;;  %v3695_v28 = vpop.xlane.xlu0 %3694  ;;  %v4002_v39 = vld [vmem:[%s13140_s7 + $0x18] sm:$0xff] }
 0xd2e   :  { %v3718_v35 = vmul.f32 0.03125, %v3695_v28  ;;  %v4020_v28 = vld [vmem:[%s13140_s7 + $0xa8] sm:$0xff] }
 0xd2f   :  { %v11781_v32 = vsub.f32 %v3684_v57, %v3719_v29  ;;  %v4019_v29 = vld [vmem:[%s13140_s7 + $0xa0] sm:$0xff] }
 0xd30   :  { %v11783_v0 = vsub.f32 %v3683_v6, %v3718_v35  ;;  %v10014_v35 = vpack.c.bf16 %v4002_v39, %v4001_v36 }
 0xd31   :  { %v3735_v11 = vmul.f32 %v11781_v32, %v11781_v32 }
 0xd32   :  { %v3734_v13 = vmul.f32 %v11783_v0, %v11783_v0 }
 0xd33   :  { %v3745_v17 = vsel %vm64_vm0, %v3735_v11, 0.0  ;;  %v10016_v11 = vpack.c.bf16 %v4020_v28, %v4019_v29 }
 0xd34   :  { %3746 = vadd.xlane.f32.xlu0 %v3745_v17  ;;  %v3742_v4 = vsel %vm64_vm0, %v3734_v13, 0.0  ;;  %v4003_v13 = vld [vmem:[%s13140_s7 + $0x20] sm:$0xff]  ;;  %v4004_v17 = vld [vmem:[%s13140_s7 + $0x28] sm:$0xff] }
 0xd35   :  { %3743 = vadd.xlane.f32.xlu1 %v3742_v4  ;;  %v4021_v4 = vld [vmem:[%s13140_s7 + $0xb0] sm:$0xff]  ;;  %v10018_v38 = vpack.c.bf16 %v4004_v17, %v4003_v13 }
 0xd36   :  { %v10020_v14 = vpack.c.bf16 %v4022_v16, %v4021_v4 }
 0xd70   :  { %v3701_v10 = vpop.xlane.xlu0 %3700 }
 0xd71   :  { %v3720_v63 = vmul.f32 0.03125, %v3701_v10  ;;  %v4026_v10 = vld [vmem:[%s13140_s7 + $0xd8] sm:$0xff] }
 0xd73   :  { %v11817_v59 = vsub.f32 %v11745_v27, %v3720_v63  ;;  %v10026_v63 = vpack.c.bf16 %v4008_v7, %v4007_v60 }
 0xd74   :  { %v3704_v20 = vpop.xlane.xlu0 %3703 }
 0xd75   :  { %v3721_v12 = vmul.f32 0.03125, %v3704_v20  ;;  %v3736_v57 = vmul.f32 %v11817_v59, %v11817_v59  ;;  %v10028_v20 = vpack.c.bf16 %v4026_v10, %v4025_v61 }
 0xd77   :  { %v11822_v5 = vsub.f32 %v11750_v30, %v3721_v12  ;;  %v3748_v6 = vsel %vm64_vm0, %v3736_v57, 0.0  ;;  %v4009_v12 = vld [vmem:[%s13140_s7 + $0x50] sm:$0xff]  ;;  %v4010_v57 = vld [vmem:[%s13140_s7 + $0x58] sm:$0xff] }
 0xd78   :  { %v3707_v9 = vpop.xlane.xlu1 %3706  ;;  %3749 = vadd.xlane.f32.xlu1 %v3748_v6  ;;  %v3710_v18 = vpop.xlane.xlu0 %3709 }
 0xd79   :  { %v3722_v19 = vmul.f32 0.03125, %v3707_v9  ;;  %v3723_v22 = vmul.f32 0.03125, %v3710_v18  ;;  %v3737_v15 = vmul.f32 %v11822_v5, %v11822_v5  ;;  %v4027_v9 = vld [vmem:[%s13140_s7 + $0xe0] sm:$0xff]  ;;  %v4028_v18 = vld [vmem:[%s13140_s7 + $0xe8] sm:$0xff] }
 0xd7b   :  { %v11827_v24 = vsub.f32 %v3687_v3, %v3722_v19  ;;  %v11830_v25 = vsub.f32 %v11759_v44, %v3723_v22  ;;  %v3751_v27 = vsel %vm64_vm0, %v3737_v15, 0.0 }
 0xd7c   :  { %3752 = vadd.xlane.f32.xlu0 %v3751_v27  ;;  %v10030_v27 = vpack.c.bf16 %v4010_v57, %v4009_v12 }
 0xd7d   :  { %v3738_v23 = vmul.f32 %v11827_v24, %v11827_v24  ;;  %v3739_v30 = vmul.f32 %v11830_v25, %v11830_v25 }
 0xd7f   :  { %v3716_v1 = vpop.xlane.xlu0 %3715  ;;  %v3754_v33 = vsel %vm64_vm0, %v3738_v23, 0.0  ;;  %v3757_v37 = vsel %vm64_vm0, %v3739_v30, 0.0  ;;  %v10032_v30 = vpack.c.bf16 %v4028_v18, %v4027_v9  ;;  %v4011_v9 = vld [vmem:[%s13140_s7 + $0x60] sm:$0xff]  ;;  %v4029_v18 = vld [vmem:[%s13140_s7 + $0xf0] sm:$0xff] }
 0xd80   :  { %v3725_v42 = vmul.f32 0.03125, %v3716_v1  ;;  %v3713_v52 = vpop.xlane.xlu1 %3712  ;;  %3755 = vadd.xlane.f32.xlu1 %v3754_v33  ;;  %3758 = vadd.xlane.f32.xlu0 %v3757_v37 }
 0xd81   :  { %v3724_v62 = vmul.f32 0.03125, %v3713_v52 }
 0xd82   :  { %v11840_v43 = vsub.f32 %v11770_v51, %v3725_v42  ;;  %v4017_v51 = vld [vmem:[%s13140_s7 + $0x90] sm:$0xff]  ;;  %v11932_v42 = vld [vmem:[%s13142_s9] ss:$0 sm:$0xff] }
 0xd83   :  { %v11843_v44 = vsub.f32 %v11775_v26, %v3724_v62  ;;  %v10010_v26 = vpack.c.bf16 %v4000_v50, %v3999_v47  ;;  %v10012_v31 = vpack.c.bf16 %v4018_v53, %v4017_v51 }
 0xd84   :  { %v3741_v45 = vmul.f32 %v11840_v43, %v11840_v43 }
 0xd85   :  { %v3740_v3 = vmul.f32 %v11843_v44, %v11843_v44  ;;  %10011 = vmatpush3.bf16.msra.mxu0 %v10010_v26 }
 0xd86   :  { %v3763_v34 = vsel %vm64_vm0, %v3741_v45, 0.0  ;;  %10013 = vmatprep.subr.bf16.mxu0 %v10012_v31  ;;  %v11939_v45 = vld [vmem:[%s13143_s10] ss:$0 sm:$0xff] }
 0xd87   :  { %3764 = vadd.xlane.f32.xlu0 %v3763_v34  ;;  %v3760_v8 = vsel %vm64_vm0, %v3740_v3, 0.0 }
 0xd88   :  { %3761 = vadd.xlane.f32.xlu1 %v3760_v8 }
 0xd89   :  { %10015 = vmatpush3.bf16.msra.mxu0 %v10014_v35 }
 0xd8a   :  { %10017 = vmatprep.subr.bf16.mxu0 %v10016_v11 }
 0xd8d   :  { %10019 = vmatpush3.bf16.msra.mxu0 %v10018_v38 }
 0xd8e   :  { %10021 = vmatprep.subr.bf16.mxu0 %v10020_v14 }
 0xd91   :  { %10023 = vmatpush3.bf16.msra.mxu0 %v10022_v56 }
 0xd92   :  { %10025 = vmatprep.subr.bf16.mxu0 %v10024_v58 }
 0xd95   :  { %10027 = vmatpush3.bf16.msra.mxu0 %v10026_v63 }
 0xd96   :  { %10029 = vmatprep.subr.bf16.mxu0 %v10028_v20 }
 0xd99   :  { %10031 = vmatpush3.bf16.msra.mxu0 %v10030_v27  ;;  %v4013_v27 = vld [vmem:[%s13140_s7 + $0x70] sm:$0xff] }
 0xd9a   :  { %10033 = vmatprep.subr.bf16.mxu0 %v10032_v30 }
 0xdc1   :  { %v3747_v6 = vpop.xlane.xlu0 %3746 }
 0xdc2   :  { %v3767_v19 = vmul.f32 0.03125, %v3747_v6  ;;  %v3744_v22 = vpop.xlane.xlu1 %3743 }
 0xdc3   :  { %v3766_v15 = vmul.f32 0.03125, %v3744_v22 }
 0xdc4   :  { %v3775_v23 = vadd.f32 1e-05, %v3767_v19  ;;  %v4030_v19 = vld [vmem:[%s13140_s7 + $0xf8] sm:$0xff] }
 0xdc5   :  { %v3774_v1 = vadd.f32 1e-05, %v3766_v15  ;;  %v10036_v15 = vpack.c.bf16 %v4030_v19, %v4029_v18 }
 0xdc6   :  { %10721 = vrsqrt.f32 %v3775_v23  ;;  %v4014_v23 = vld [vmem:[%s13140_s7 + $0x78] sm:$0xff] }
 0xdc7   :  { %10723 = vrsqrt.f32 %v3774_v1  ;;  %v10038_v30 = vpack.c.bf16 %v4014_v23, %v4013_v27  ;;  %v3836_v1 = vlaneseq }
 0xdd0   :  { %v10722_v33 = vpop.eup %10721 }
 0xdd1   :  { %v10724_v37 = vpop.eup %10723  ;;  %v3791_v62 = vmul.f32 %v10722_v33, %v11781_v32  ;;  %v12020_v33 = vshrl.u32 %v3836_v1, 7 }
 0xdd2   :  { %v3790_v52 = vmul.f32 %v10724_v37, %v11783_v0 }
 0xdd3   :  { %v3805_v8 = vmul.f32 %v11932_v42, %v3791_v62  ;;  %v3838_v37 = vsub.s32 0, %v12020_v33 }
 0xdd4   :  { %v3804_v3 = vmul.f32 %v11932_v42, %v3790_v52  ;;  %v3842_v52 = vsub.s32 1, %v12020_v33 }
 0xdd5   :  { %v11950_v0 = vadd.f32 %v11939_v45, %v3805_v8 }
 0xdd6   :  { %v11943_v34 = vadd.f32 %v11939_v45, %v3804_v3 }
 0xdd8   :  { %8686 = vmatmul.mubr.msk.f32.vlgmr.msra.gmra.mrb[42].mxu1 %vm64_vm0, %v11943_v34 }
 0xdd9   :  { %3940 = vmatprep.mubr.f32.mxu1 %v10959_v55 }
 0xddc   :  { %8687 = vmatmul.mubr.msk.f32.gmra.mrb[44].mxu1 %vm64_vm0, %v11950_v0 }
 0xddd   :  { %3946 = vmatprep.mubr.f32.mxu1 %v10959_v55 }
 0xe05   :  { %v3750_v32 = vpop.xlane.xlu1 %3749 }
 0xe06   :  { %v3768_v46 = vmul.f32 0.03125, %v3750_v32 }
 0xe08   :  { %v3776_v48 = vadd.f32 1e-05, %v3768_v46 }
 0xe09   :  { %v3753_v47 = vpop.xlane.xlu0 %3752 }
 0xe0a   :  { %10725 = vrsqrt.f32 %v3776_v48  ;;  %v3769_v2 = vmul.f32 0.03125, %v3753_v47 }
 0xe0c   :  { %v3777_v50 = vadd.f32 1e-05, %v3769_v2 }
 0xe0d   :  { %v3756_v51 = vpop.xlane.xlu1 %3755  ;;  %v3759_v53 = vpop.xlane.xlu0 %3758 }
 0xe0e   :  { %10727 = vrsqrt.f32 %v3777_v50  ;;  %v3770_v26 = vmul.f32 0.03125, %v3756_v51  ;;  %v3771_v31 = vmul.f32 0.03125, %v3759_v53 }
 0xe10   :  { %v3778_v36 = vadd.f32 1e-05, %v3770_v26  ;;  %v3779_v39 = vadd.f32 1e-05, %v3771_v31 }
 0xe12   :  { %10729 = vrsqrt.f32 %v3778_v36 }
 0xe13   :  { %10731 = vrsqrt.f32 %v3779_v39 }
 0xe14   :  { %v10726_v29 = vpop.eup %10725  ;;  %v3765_v28 = vpop.xlane.xlu0 %3764 }
 0xe15   :  { %v3773_v35 = vmul.f32 0.03125, %v3765_v28  ;;  %v3762_v11 = vpop.xlane.xlu1 %3761  ;;  %v3792_v13 = vmul.f32 %v10726_v29, %v11817_v59 }
 0xe16   :  { %v3772_v17 = vmul.f32 0.03125, %v3762_v11 }
 0xe17   :  { %v3781_v4 = vadd.f32 1e-05, %v3773_v35  ;;  %v3806_v16 = vmul.f32 %v11932_v42, %v3792_v13 }
 0xe18   :  { %v10728_v38 = vpop.eup %10727  ;;  %v3780_v14 = vadd.f32 1e-05, %v3772_v17 }
 0xe19   :  { %10733 = vrsqrt.f32 %v3781_v4  ;;  %v11958_v41 = vadd.f32 %v11939_v45, %v3806_v16  ;;  %v3793_v21 = vmul.f32 %v10728_v38, %v11822_v5 }
 0xe1a   :  { %10735 = vrsqrt.f32 %v3780_v14 }
 0xe1b   :  { %8688 = vmatmul.mubr.msk.f32.gmra.mrb[46].mxu1 %vm64_vm0, %v11958_v41  ;;  %v3807_v49 = vmul.f32 %v11932_v42, %v3793_v21 }
 0xe1c   :  { %v10730_v54 = vpop.eup %10729  ;;  %3952 = vmatprep.mubr.f32.mxu1 %v10959_v55 }
 0xe1d   :  { %v10732_v59 = vpop.eup %10731  ;;  %v11966_v56 = vadd.f32 %v11939_v45, %v3807_v49  ;;  %v3794_v58 = vmul.f32 %v10730_v54, %v11827_v24 }
 0xe1e   :  { %v3795_v60 = vmul.f32 %v10732_v59, %v11830_v25 }
 0xe1f   :  { %8689 = vmatmul.mubr.msk.f32.gmra.mrb[48].mxu1 %vm64_vm0, %v11966_v56  ;;  %v3808_v5 = vmul.f32 %v11932_v42, %v3794_v58 }
 0xe20   :  { %3958 = vmatprep.mubr.f32.mxu1 %v10959_v55  ;;  %v3809_v61 = vmul.f32 %v11932_v42, %v3795_v60 }
 0xe21   :  { %v11975_v7 = vadd.f32 %v11939_v45, %v3808_v5 }
 0xe22   :  { %v11982_v24 = vadd.f32 %v11939_v45, %v3809_v61 }
 0xe23   :  { %v10734_v10 = vpop.eup %10733  ;;  %8690 = vmatmul.mubr.msk.f32.gmra.mrb[50].mxu1 %vm64_vm0, %v11975_v7 }
 0xe24   :  { %v10736_v63 = vpop.eup %10735  ;;  %3964 = vmatprep.mubr.f32.mxu1 %v10959_v55  ;;  %v3797_v20 = vmul.f32 %v10734_v10, %v11840_v43  ;;  %v4012_v43 = vld [vmem:[%s13140_s7 + $0x68] sm:$0xff] }
 0xe25   :  { %v3796_v25 = vmul.f32 %v10736_v63, %v11843_v44  ;;  %v10034_v44 = vpack.c.bf16 %v4012_v43, %v4011_v9 }
 0xe26   :  { %v3811_v6 = vmul.f32 %v11932_v42, %v3797_v20 }
 0xe27   :  { %8691 = vmatmul.mubr.msk.f32.gmra.mrb[52].mxu1 %vm64_vm0, %v11982_v24  ;;  %v3810_v12 = vmul.f32 %v11932_v42, %v3796_v25  ;;  %10035 = vmatpush3.bf16.msra.mxu0 %v10034_v44  ;;  %v3834_v42 = vld [vmem:[%s13139_s6] sm:$0x3] }
 0xe28   :  { %3970 = vmatprep.mubr.f32.mxu1 %v10959_v55  ;;  %v12010_v22 = vadd.f32 %v11939_v45, %v3811_v6  ;;  %10037 = vmatprep.subr.bf16.mxu0 %v10036_v15  ;;  %v3839_v62 = vrot.slane %v3834_v42, %v3838_v37 }
 0xe29   :  { %v11991_v57 = vadd.f32 %v11939_v45, %v3810_v12  ;;  %v3843_v45 = vrot.slane %v3834_v42, %v3842_v52 }
 0xe2b   :  { %8692 = vmatmul.mubr.msk.f32.gmra.mrb[54].mxu1 %vm64_vm0, %v11991_v57  ;;  %10039 = vmatpush3.bf16.msra.mxu0 %v10038_v30 }
 0xe2c   :  { %3976 = vmatprep.mubr.f32.mxu1 %v10959_v55 }
 0xe2f   :  { %8693 = vmatmul.mubr.msk.f32.gmra.mrb[56].mxu1 %vm64_vm0, %v12010_v22 }
 0xeab   :  { %v3936_v3 = vpop.f32.mrb[42].mxu1 }
 0xeac   :  { %v3937_v8 = vadd.f32 %v3936_v3, %v3839_v62  ;;  %v3938_v32 = vpop.f32.mrb[43].mxu1  ;;  %v8694_v3 = vld [vmem:[%s13141_s8] ss:$0 sm:$0xff] }
 0xead   :  { %v3939_v46 = vadd.f32 %v3938_v32, %v3843_v45 }
 0xeae   :  { %v3983_v2 = vmax.f32 %v3937_v8, 0.0 }
 0xeaf   :  { %v3984_v48 = vmax.f32 %v3939_v46, 0.0  ;;  %v3942_v47 = vpop.f32.mrb[44].mxu1 }
 0xeb0   :  { %v3943_v50 = vadd.f32 %v3942_v47, %v3839_v62  ;;  %v3944_v51 = vpop.f32.mrb[45].mxu1 }
 0xeb1   :  { %v3945_v53 = vadd.f32 %v3944_v51, %v3843_v45  ;;  %4102 = vmatprep.mubr.f32.mxu0 %v3984_v48 }
 0xeb2   :  { %4103 = vmatmul.mubr.f32.vlgmr.msra.gmra.mrb[38].mxu0 %v3983_v2  ;;  %v3985_v31 = vmax.f32 %v3943_v50, 0.0 }
 0xeb3   :  { %v3986_v26 = vmax.f32 %v3945_v53, 0.0 }
 0xeb5   :  { %4107 = vmatprep.mubr.f32.mxu0 %v3986_v26 }
 0xeb6   :  { %4108 = vmatmul.mubr.f32.gmra.mrb[40].mxu0 %v3985_v31 }
 0xeee   :  { %v3948_v36 = vpop.f32.mrb[46].mxu1 }
 0xeef   :  { %v3949_v39 = vadd.f32 %v3948_v36, %v3839_v62  ;;  %v3950_v29 = vpop.f32.mrb[47].mxu1 }
 0xef0   :  { %v3951_v28 = vadd.f32 %v3950_v29, %v3843_v45 }
 0xef1   :  { %v3987_v13 = vmax.f32 %v3949_v39, 0.0 }
 0xef2   :  { %v3988_v35 = vmax.f32 %v3951_v28, 0.0  ;;  %v3954_v11 = vpop.f32.mrb[48].mxu1 }
 0xef3   :  { %v3955_v17 = vadd.f32 %v3954_v11, %v3839_v62  ;;  %v3956_v4 = vpop.f32.mrb[49].mxu1 }
 0xef4   :  { %v3957_v16 = vadd.f32 %v3956_v4, %v3843_v45  ;;  %4112 = vmatprep.mubr.f32.mxu0 %v3988_v35 }
 0xef5   :  { %4113 = vmatmul.mubr.f32.gmra.mrb[42].mxu0 %v3987_v13  ;;  %v3989_v21 = vmax.f32 %v3955_v17, 0.0 }
 0xef6   :  { %v3990_v38 = vmax.f32 %v3957_v16, 0.0  ;;  %v3960_v14 = vpop.f32.mrb[50].mxu1 }
 0xef7   :  { %v3961_v49 = vadd.f32 %v3960_v14, %v3839_v62  ;;  %v3962_v54 = vpop.f32.mrb[51].mxu1 }
 0xef8   :  { %v3963_v59 = vadd.f32 %v3962_v54, %v3843_v45  ;;  %4117 = vmatprep.mubr.f32.mxu0 %v3990_v38 }
 0xef9   :  { %4118 = vmatmul.mubr.f32.gmra.mrb[44].mxu0 %v3989_v21  ;;  %v3991_v5 = vmax.f32 %v3961_v49, 0.0 }
 0xefa   :  { %v3992_v58 = vmax.f32 %v3963_v59, 0.0  ;;  %v3966_v60 = vpop.f32.mrb[52].mxu1 }
 0xefb   :  { %v3967_v61 = vadd.f32 %v3966_v60, %v3839_v62  ;;  %v3968_v10 = vpop.f32.mrb[53].mxu1 }
 0xefc   :  { %v3969_v63 = vadd.f32 %v3968_v10, %v3843_v45  ;;  %4122 = vmatprep.mubr.f32.mxu0 %v3992_v58 }
 0xefd   :  { %4123 = vmatmul.mubr.f32.gmra.mrb[46].mxu0 %v3991_v5  ;;  %v3993_v12 = vmax.f32 %v3967_v61, 0.0 }
 0xefe   :  { %v3994_v25 = vmax.f32 %v3969_v63, 0.0  ;;  %v3972_v20 = vpop.f32.mrb[54].mxu1 }
 0xeff   :  { %v3973_v6 = vadd.f32 %v3972_v20, %v3839_v62  ;;  %v3974_v9 = vpop.f32.mrb[55].mxu1 }
 0xf00   :  { %v3975_v43 = vadd.f32 %v3974_v9, %v3843_v45  ;;  %4127 = vmatprep.mubr.f32.mxu0 %v3994_v25 }
 0xf01   :  { %4128 = vmatmul.mubr.f32.gmra.mrb[48].mxu0 %v3993_v12  ;;  %v3995_v19 = vmax.f32 %v3973_v6, 0.0 }
 0xf02   :  { %v3996_v44 = vmax.f32 %v3975_v43, 0.0  ;;  %v3978_v18 = vpop.f32.mrb[56].mxu1 }
 0xf03   :  { %v3979_v15 = vadd.f32 %v3978_v18, %v3839_v62  ;;  %v3980_v27 = vpop.f32.mrb[57].mxu1 }
 0xf04   :  { %v3981_v23 = vadd.f32 %v3980_v27, %v3843_v45  ;;  %4132 = vmatprep.mubr.f32.mxu0 %v3996_v44 }
 0xf05   :  { %4133 = vmatmul.mubr.f32.gmra.mrb[50].mxu0 %v3995_v19  ;;  %v3997_v1 = vmax.f32 %v3979_v15, 0.0 }
 0xf06   :  { %v3998_v30 = vmax.f32 %v3981_v23, 0.0 }
 0xf08   :  { %4137 = vmatprep.mubr.f32.mxu0 %v3998_v30 }
 0xf09   :  { %4138 = vmatmul.mubr.f32.gmra.mrb[52].mxu0 %v3997_v1 }
 0xf85   :  { %v9064_v42 = vpop.f32.mrb[38].mxu0 }
 0xf86   :  { %v9065_v8 = vpop.f32.mrb[39].mxu0 }
 0xf87   :  { %v9066_v32 = vadd.f32 %v9065_v8, %v9064_v42  ;;  %v8697_v42 = vld [vmem:[%s13134_s1 + $0x20] sm:$0xff] }
 0xf89   :  { %v4105_v46 = vadd.f32 %v9066_v32, %v8694_v3  ;;  %v9067_v48 = vpop.f32.mrb[40].mxu0  ;;  %v8699_v32 = vld [vmem:[%s13134_s1 + $0x30] sm:$0xff] }
 0xf8a   :  { %v9068_v47 = vpop.f32.mrb[41].mxu0 }
 0xf8b   :  { %v9069_v2 = vadd.f32 %v9068_v47, %v9067_v48  ;;  %v4143_v62 = vadd.f32 %v4105_v46, %v11943_v34  ;;  %v8700_v46 = vld [vmem:[%s13134_s1 + $0x38] sm:$0xff] }
 0xf8c   :  { %v10044_v48 = vpack.c.bf16 %v8700_v46, %v8699_v32 }
 0xf8d   :  { %v4110_v45 = vadd.f32 %v9069_v2, %v8694_v3  ;;  %v4153_v50 = vsel %vm64_vm0, %v4143_v62, 0.0 }
 0xf8e   :  { %4154 = vadd.xlane.f32.xlu1 %v4153_v50 }
 0xf8f   :  { %v4144_v51 = vadd.f32 %v4110_v45, %v11950_v0 }
 0xf91   :  { %v4156_v53 = vsel %vm64_vm0, %v4144_v51, 0.0 }
 0xf92   :  { %4157 = vadd.xlane.f32.xlu0 %v4156_v53 }
 0xfc8   :  { %v9070_v26 = vpop.f32.mrb[42].mxu0 }
 0xfc9   :  { %v9071_v31 = vpop.f32.mrb[43].mxu0 }
 0xfca   :  { %v9072_v36 = vadd.f32 %v9071_v31, %v9070_v26 }
 0xfcc   :  { %v4115_v39 = vadd.f32 %v9072_v36, %v8694_v3  ;;  %v9073_v29 = vpop.f32.mrb[44].mxu0 }
 0xfcd   :  { %v9074_v28 = vpop.f32.mrb[45].mxu0 }
 0xfce   :  { %v9075_v35 = vadd.f32 %v9074_v28, %v9073_v29  ;;  %v4145_v11 = vadd.f32 %v4115_v39, %v11958_v41 }
 0xfd0   :  { %v4120_v13 = vadd.f32 %v9075_v35, %v8694_v3  ;;  %v9076_v34 = vpop.f32.mrb[46].mxu0  ;;  %v4159_v17 = vsel %vm64_vm0, %v4145_v11, 0.0 }
 0xfd1   :  { %4160 = vadd.xlane.f32.xlu1 %v4159_v17  ;;  %v9077_v4 = vpop.f32.mrb[47].mxu0 }
 0xfd2   :  { %v9078_v16 = vadd.f32 %v9077_v4, %v9076_v34  ;;  %v4146_v0 = vadd.f32 %v4120_v13, %v11966_v56 }
 0xfd4   :  { %v4125_v38 = vadd.f32 %v9078_v16, %v8694_v3  ;;  %v9079_v14 = vpop.f32.mrb[48].mxu0  ;;  %v4162_v21 = vsel %vm64_vm0, %v4146_v0, 0.0 }
 0xfd5   :  { %4163 = vadd.xlane.f32.xlu0 %v4162_v21  ;;  %v9080_v49 = vpop.f32.mrb[49].mxu0 }
 0xfd6   :  { %v9081_v54 = vadd.f32 %v9080_v49, %v9079_v14  ;;  %v4147_v59 = vadd.f32 %v4125_v38, %v11975_v7 }
 0xfd8   :  { %v4130_v58 = vadd.f32 %v9081_v54, %v8694_v3  ;;  %v9082_v41 = vpop.f32.mrb[50].mxu0  ;;  %v4165_v60 = vsel %vm64_vm0, %v4147_v59, 0.0 }
 0xfd9   :  { %4166 = vadd.xlane.f32.xlu1 %v4165_v60  ;;  %v9083_v5 = vpop.f32.mrb[51].mxu0 }
 0xfda   :  { %v9084_v61 = vadd.f32 %v9083_v5, %v9082_v41  ;;  %v4148_v10 = vadd.f32 %v4130_v58, %v11982_v24 }
 0xfdc   :  { %v4135_v63 = vadd.f32 %v9084_v61, %v8694_v3  ;;  %v9085_v56 = vpop.f32.mrb[52].mxu0  ;;  %v4168_v25 = vsel %vm64_vm0, %v4148_v10, 0.0 }
 0xfdd   :  { %4169 = vadd.xlane.f32.xlu0 %v4168_v25  ;;  %v9086_v20 = vpop.f32.mrb[53].mxu0 }
 0xfde   :  { %v9087_v12 = vadd.f32 %v9086_v20, %v9085_v56  ;;  %v4149_v6 = vadd.f32 %v4135_v63, %v11991_v57 }
 0xfe0   :  { %v4140_v9 = vadd.f32 %v9087_v12, %v8694_v3  ;;  %v4171_v7 = vsel %vm64_vm0, %v4149_v6, 0.0  ;;  %v8698_v3 = vld [vmem:[%s13134_s1 + $0x28] sm:$0xff]  ;;  %v8695_v12 = vld [vmem:[%s13144_s11] ss:$0 sm:$0xff]  ;;  %s13169_s1 = smov 24  }
 0xfe1   :  { %4172 = vadd.xlane.f32.xlu1 %v4171_v7  ;;  %v10040_v8 = vpack.c.bf16 %v8698_v3, %v8697_v42 }
 0xfe2   :  { %v4150_v43 = vadd.f32 %v4140_v9, %v12010_v22  ;;  %v8696_v9 = vld [vmem:[%s13145_s12] ss:$0 sm:$0xff] }
 0xfe3   :  { %10041 = vmatprep.subr.bf16.mxu1 %v10040_v8 }
 0xfe4   :  { %v4174_v44 = vsel %vm64_vm0, %v4150_v43, 0.0  ;;  %10043 = vmatpush3.bf16.msra.mxu1 %v10040_v8 }
 0xfe5   :  { %4175 = vadd.xlane.f32.xlu0 %v4174_v44  ;;  %10045 = vmatprep.subr.bf16.mxu1 %v10044_v48 }
 0xfe8   :  { %10047 = vmatpush3.bf16.msra.mxu1 %v10044_v48 }
0x101b   :  { %v4155_v18 = vpop.xlane.xlu1 %4154 }
0x101c   :  { %v4177_v24 = vmul.f32 0.03125, %v4155_v18 }
0x101e   :  { %v12050_v19 = vsub.f32 %v4143_v62, %v4177_v24 }
0x101f   :  { %v4158_v15 = vpop.xlane.xlu0 %4157 }
0x1020   :  { %v4178_v27 = vmul.f32 0.03125, %v4158_v15  ;;  %v4193_v23 = vmul.f32 %v12050_v19, %v12050_v19 }
0x1022   :  { %v12054_v30 = vsub.f32 %v4144_v51, %v4178_v27  ;;  %v4201_v57 = vsel %vm64_vm0, %v4193_v23, 0.0 }
0x1023   :  { %4202 = vadd.xlane.f32.xlu1 %v4201_v57 }
0x1024   :  { %v4194_v22 = vmul.f32 %v12054_v30, %v12054_v30 }
0x1026   :  { %v4204_v1 = vsel %vm64_vm0, %v4194_v22, 0.0 }
0x1027   :  { %4205 = vadd.xlane.f32.xlu0 %v4204_v1 }
0x105e   :  { %v4161_v47 = vpop.xlane.xlu1 %4160 }
0x105f   :  { %v4179_v2 = vmul.f32 0.03125, %v4161_v47 }
0x1061   :  { %v12072_v62 = vsub.f32 %v4145_v11, %v4179_v2 }
0x1062   :  { %v4164_v45 = vpop.xlane.xlu0 %4163 }
0x1063   :  { %v4180_v50 = vmul.f32 0.03125, %v4164_v45  ;;  %v4195_v51 = vmul.f32 %v12072_v62, %v12072_v62 }
0x1065   :  { %v12076_v53 = vsub.f32 %v4146_v0, %v4180_v50  ;;  %v4207_v26 = vsel %vm64_vm0, %v4195_v51, 0.0 }
0x1066   :  { %v4167_v31 = vpop.xlane.xlu1 %4166  ;;  %4208 = vadd.xlane.f32.xlu1 %v4207_v26 }
0x1067   :  { %v4181_v36 = vmul.f32 0.03125, %v4167_v31  ;;  %v4196_v39 = vmul.f32 %v12076_v53, %v12076_v53 }
0x1069   :  { %v12081_v29 = vsub.f32 %v4147_v59, %v4181_v36  ;;  %v4210_v28 = vsel %vm64_vm0, %v4196_v39, 0.0 }
0x106a   :  { %4211 = vadd.xlane.f32.xlu0 %v4210_v28  ;;  %v4170_v35 = vpop.xlane.xlu0 %4169 }
0x106b   :  { %v4182_v11 = vmul.f32 0.03125, %v4170_v35  ;;  %v4197_v13 = vmul.f32 %v12081_v29, %v12081_v29 }
0x106d   :  { %v12086_v34 = vsub.f32 %v4148_v10, %v4182_v11  ;;  %v4213_v17 = vsel %vm64_vm0, %v4197_v13, 0.0 }
0x106e   :  { %4214 = vadd.xlane.f32.xlu1 %v4213_v17  ;;  %v4173_v4 = vpop.xlane.xlu1 %4172 }
0x106f   :  { %v4183_v16 = vmul.f32 0.03125, %v4173_v4  ;;  %v4198_v0 = vmul.f32 %v12086_v34, %v12086_v34 }
0x1071   :  { %v12091_v38 = vsub.f32 %v4149_v6, %v4183_v16  ;;  %v4216_v14 = vsel %vm64_vm0, %v4198_v0, 0.0 }
0x1072   :  { %4217 = vadd.xlane.f32.xlu0 %v4216_v14  ;;  %v4176_v21 = vpop.xlane.xlu0 %4175 }
0x1073   :  { %v4184_v49 = vmul.f32 0.03125, %v4176_v21  ;;  %v4199_v54 = vmul.f32 %v12091_v38, %v12091_v38 }
0x1075   :  { %v12096_v59 = vsub.f32 %v4150_v43, %v4184_v49  ;;  %v4219_v58 = vsel %vm64_vm0, %v4199_v54, 0.0 }
0x1076   :  { %4220 = vadd.xlane.f32.xlu1 %v4219_v58 }
0x1077   :  { %v4200_v41 = vmul.f32 %v12096_v59, %v12096_v59 }
0x1079   :  { %v4222_v60 = vsel %vm64_vm0, %v4200_v41, 0.0 }
0x107a   :  { %4223 = vadd.xlane.f32.xlu0 %v4222_v60 }
0x10b0   :  { %v4203_v5 = vpop.xlane.xlu1 %4202 }
0x10b1   :  { %v4225_v61 = vmul.f32 0.03125, %v4203_v5 }
0x10b3   :  { %v4233_v10 = vadd.f32 1e-05, %v4225_v61 }
0x10b4   :  { %v4206_v63 = vpop.xlane.xlu0 %4205 }
0x10b5   :  { %10737 = vrsqrt.f32 %v4233_v10  ;;  %v4226_v56 = vmul.f32 0.03125, %v4206_v63 }
0x10b7   :  { %v4234_v25 = vadd.f32 1e-05, %v4226_v56 }
0x10b9   :  { %10739 = vrsqrt.f32 %v4234_v25 }
0x10bf   :  { %v10738_v20 = vpop.eup %10737 }
0x10c0   :  { %v4249_v6 = vmul.f32 %v10738_v20, %v12050_v19 }
0x10c2   :  { %v4263_v7 = vmul.f32 %v8695_v12, %v4249_v6 }
0x10c3   :  { %v10740_v43 = vpop.eup %10739 }
0x10c4   :  { %v4250_v44 = vmul.f32 %v10740_v43, %v12054_v30  ;;  %v12110_v18 = vadd.f32 %v8696_v9, %v4263_v7 }
0x10c6   :  { %v4264_v24 = vmul.f32 %v8695_v12, %v4250_v44  ;;  %9568 = vmatprep.mubr.msk.f32.mxu1 %vm64_vm0, %v12110_v18 }
0x10c8   :  { %v12114_v15 = vadd.f32 %v8696_v9, %v4264_v24 }
0x10ca   :  { %9569 = vmatmul.mubr.msk.f32.vlgmr.msra.gmra.mrb[58].mxu1 %vm64_vm0, %v12114_v15 }
0x10f3   :  { %v4209_v19 = vpop.xlane.xlu1 %4208 }
0x10f4   :  { %v4227_v27 = vmul.f32 0.03125, %v4209_v19 }
0x10f6   :  { %v4235_v23 = vadd.f32 1e-05, %v4227_v27 }
0x10f7   :  { %v4212_v57 = vpop.xlane.xlu0 %4211 }
0x10f8   :  { %10741 = vrsqrt.f32 %v4235_v23  ;;  %v4228_v22 = vmul.f32 0.03125, %v4212_v57 }
0x10fa   :  { %v4236_v1 = vadd.f32 1e-05, %v4228_v22 }
0x10fb   :  { %v4215_v42 = vpop.xlane.xlu1 %4214 }
0x10fc   :  { %10743 = vrsqrt.f32 %v4236_v1  ;;  %v4229_v30 = vmul.f32 0.03125, %v4215_v42 }
0x10fe   :  { %v4237_v3 = vadd.f32 1e-05, %v4229_v30 }
0x10ff   :  { %v4218_v8 = vpop.xlane.xlu0 %4217 }
0x1100   :  { %10745 = vrsqrt.f32 %v4237_v3  ;;  %v4230_v32 = vmul.f32 0.03125, %v4218_v8 }
0x1102   :  { %v10742_v46 = vpop.eup %10741  ;;  %v4238_v48 = vadd.f32 1e-05, %v4230_v32 }
0x1103   :  { %v4221_v47 = vpop.xlane.xlu1 %4220  ;;  %v4251_v2 = vmul.f32 %v10742_v46, %v12072_v62 }
0x1104   :  { %10747 = vrsqrt.f32 %v4238_v48  ;;  %v4231_v45 = vmul.f32 0.03125, %v4221_v47 }
0x1105   :  { %v4265_v50 = vmul.f32 %v8695_v12, %v4251_v2 }
0x1106   :  { %v10744_v51 = vpop.eup %10743  ;;  %v4239_v26 = vadd.f32 1e-05, %v4231_v45 }
0x1107   :  { %v4224_v31 = vpop.xlane.xlu0 %4223  ;;  %v12119_v36 = vadd.f32 %v8696_v9, %v4265_v50  ;;  %v4252_v39 = vmul.f32 %v10744_v51, %v12076_v53 }
0x1108   :  { %10749 = vrsqrt.f32 %v4239_v26  ;;  %v4232_v28 = vmul.f32 0.03125, %v4224_v31 }
0x1109   :  { %9571 = vmatprep.mubr.msk.f32.mxu1 %vm64_vm0, %v12119_v36  ;;  %v4266_v35 = vmul.f32 %v8695_v12, %v4252_v39 }
0x110a   :  { %v10746_v11 = vpop.eup %10745  ;;  %v4240_v13 = vadd.f32 1e-05, %v4232_v28 }
0x110b   :  { %v12124_v17 = vadd.f32 %v8696_v9, %v4266_v35  ;;  %v4253_v62 = vmul.f32 %v10746_v11, %v12081_v29 }
0x110c   :  { %10751 = vrsqrt.f32 %v4240_v13 }
0x110d   :  { %9572 = vmatmul.mubr.msk.f32.gmra.mrb[60].mxu1 %vm64_vm0, %v12124_v17  ;;  %v4267_v4 = vmul.f32 %v8695_v12, %v4253_v62 }
0x110e   :  { %v10748_v16 = vpop.eup %10747 }
0x110f   :  { %v12129_v0 = vadd.f32 %v8696_v9, %v4267_v4  ;;  %v4254_v53 = vmul.f32 %v10748_v16, %v12086_v34 }
0x1111   :  { %9574 = vmatprep.mubr.msk.f32.mxu1 %vm64_vm0, %v12129_v0  ;;  %v4268_v14 = vmul.f32 %v8695_v12, %v4254_v53 }
0x1112   :  { %v10750_v21 = vpop.eup %10749 }
0x1113   :  { %v12134_v49 = vadd.f32 %v8696_v9, %v4268_v14  ;;  %v4255_v54 = vmul.f32 %v10750_v21, %v12091_v38  ;;  %v8702_v38 = vld [vmem:[%s13135_s2 + $0x1] ss:$0 sm:$0xff]  ;;  %s13163_s2 = smov 48  }
0x1115   :  { %9575 = vmatmul.mubr.msk.f32.gmra.mrb[62].mxu1 %vm64_vm0, %v12134_v49  ;;  %v4269_v29 = vmul.f32 %v8695_v12, %v4255_v54 }
0x1116   :  { %v10752_v58 = vpop.eup %10751 }
0x1117   :  { %v12139_v41 = vadd.f32 %v8696_v9, %v4269_v29  ;;  %v4256_v60 = vmul.f32 %v10752_v58, %v12096_v59 }
0x1119   :  { %9577 = vmatprep.mubr.msk.f32.mxu1 %vm64_vm0, %v12139_v41  ;;  %v4270_v34 = vmul.f32 %v8695_v12, %v4256_v60 }
0x111b   :  { %v12144_v5 = vadd.f32 %v8696_v9, %v4270_v34 }
0x111d   :  { %9578 = vmatmul.mubr.msk.f32.gmra.mrb[64].mxu1 %vm64_vm0, %v12144_v5 }
0x119d   :  { %v9570_v61 = vpop.f32.mrb[58].mxu1 }
0x119e   :  { %v4394_v10 = vadd.f32 %v9570_v61, %v8702_v38  ;;  %v4388_v63 = vpop.f32.mrb[59].mxu1 }
0x119f   :  { %v4389_v56 = vadd.f32 %v8702_v38, %v4388_v63 }
0x11a0   :  { %v12191_v48 = vmul.f32 0.35355338, %v4394_v10 }
0x11a1   :  { %v12151_v25 = vpack.i.bf16 %v4394_v10, %v4389_v56  ;;  %v12153_v59 = vmul.f32 0.35355338, %v4389_v56 }
0x11a3   :  { %10434 = vrot.lane.b32.xlu1 %v12151_v25, %s10945_s17  ;;  %9584 = vmatprep.mubr.msk.f32.mxu1 %vm208_vm1, %v12153_v59 }
0x11e0   :  { %v9573_v20 = vpop.f32.mrb[60].mxu1 }
0x11e1   :  { %v4404_v12 = vadd.f32 %v9573_v20, %v8702_v38  ;;  %v4398_v6 = vpop.f32.mrb[61].mxu1 }
0x11e2   :  { %v4399_v9 = vadd.f32 %v8702_v38, %v4398_v6 }
0x11e3   :  { %v12203_v35 = vmul.f32 0.35355338, %v4404_v12 }
0x11e4   :  { %v12159_v7 = vpack.i.bf16 %v4404_v12, %v4399_v9  ;;  %v12193_v47 = vmul.f32 0.35355338, %v4399_v9 }
0x11e6   :  { %10439 = vrot.lane.b32.xlu0 %v12159_v7, %s10945_s17 }
0x11e8   :  { %v9576_v43 = vpop.f32.mrb[62].mxu1 }
0x11e9   :  { %v4414_v44 = vadd.f32 %v9576_v43, %v8702_v38  ;;  %v4408_v24 = vpop.f32.mrb[63].mxu1 }
0x11ea   :  { %v4409_v19 = vadd.f32 %v8702_v38, %v4408_v24 }
0x11eb   :  { %v12215_v14 = vmul.f32 0.35355338, %v4414_v44 }
0x11ec   :  { %v12163_v27 = vpack.i.bf16 %v4414_v44, %v4409_v19  ;;  %v12165_v23 = vmul.f32 0.35355338, %v4409_v19 }
0x11ee   :  { %10459 = vrot.lane.b32.xlu0 %v12163_v27, %s10946_s18  ;;  %10444 = vrot.lane.b32.xlu1 %v12163_v27, %s10945_s17 }
0x11ef   :  { %9598 = vmatprep.mubr.msk.f32.mxu0 %vm208_vm1, %v12165_v23 }
0x11f0   :  { %v9579_v57 = vpop.f32.mrb[64].mxu1 }
0x11f1   :  { %v4424_v22 = vadd.f32 %v9579_v57, %v8702_v38  ;;  %v4418_v1 = vpop.f32.mrb[65].mxu1 }
0x11f2   :  { %v4419_v42 = vadd.f32 %v8702_v38, %v4418_v1  ;;  %10469 = vrot.lane.b32.xlu0 %v12151_v25, %s10947_s19 }
0x11f3   :  { %v12226_v56 = vmul.f32 0.35355338, %v4424_v22 }
0x11f4   :  { %v12175_v30 = vpack.i.bf16 %v4424_v22, %v4419_v42  ;;  %v12205_v11 = vmul.f32 0.35355338, %v4419_v42 }
0x11f6   :  { %10449 = vrot.lane.b32.xlu1 %v12175_v30, %s10945_s17  ;;  %s13164_s17 = smov 72  }
0x11fa   :  { %10454 = vrot.lane.b32.xlu1 %v12151_v25, %s10946_s18 }
0x11fe   :  { %10464 = vrot.lane.b32.xlu1 %v12159_v7, %s10946_s18 }
0x1202   :  { %10474 = vrot.lane.b32.xlu1 %v12159_v7, %s10947_s19 }
0x1206   :  { %10479 = vrot.lane.b32.xlu1 %v12175_v30, %s10946_s18  ;;  %s13165_s18 = smov 104  }
0x1215   :  { %v10435_v3 = vpop.permute.xlu1 %10434 }
0x1216   :  { %v10437_v8 = vunpack.i.h.bf16 %v10435_v3  ;;  %v10436_v32 = vunpack.i.l.bf16 %v10435_v3 }
0x1218   :  { %v10048_v46 = vpack.c.bf16 %v10437_v8, %v10436_v32 }
0x121a   :  { %10050 = vmatprep.subr.msk.bf16.mxu1 %vm11123_vm2, %v10048_v46 }
0x121b   :  { %10053 = vmatpush3.bf16.xpose.msk.msra.mxu1 %vm11123_vm2, %v10048_v46 }
0x1222   :  { %9585 = vmatmul.mubr.msk.f32.vlgmr.msra.gmra.mrb[66].mxu1 %vm208_vm1, %v12191_v48 }
0x1223   :  { %9591 = vmatprep.mubr.msk.f32.mxu1 %vm208_vm1, %v12193_v47 }
0x1258   :  { %v10440_v2 = vpop.permute.xlu0 %10439 }
0x1259   :  { %v10442_v45 = vunpack.i.h.bf16 %v10440_v2  ;;  %v10441_v50 = vunpack.i.l.bf16 %v10440_v2 }
0x125b   :  { %v10054_v51 = vpack.c.bf16 %v10442_v45, %v10441_v50 }
0x125d   :  { %10056 = vmatprep.subr.msk.bf16.mxu1 %vm11123_vm2, %v10054_v51 }
0x125e   :  { %10059 = vmatpush3.bf16.xpose.msk.msra.mxu1 %vm11123_vm2, %v10054_v51 }
0x1260   :  { %v10445_v26 = vpop.permute.xlu1 %10444  ;;  %v10460_v16 = vpop.permute.xlu0 %10459 }
0x1261   :  { %v10447_v31 = vunpack.i.h.bf16 %v10445_v26  ;;  %v10446_v39 = vunpack.i.l.bf16 %v10445_v26  ;;  %v10462_v54 = vunpack.i.h.bf16 %v10460_v16  ;;  %v10461_v29 = vunpack.i.l.bf16 %v10460_v16 }
0x1263   :  { %v10060_v28 = vpack.c.bf16 %v10447_v31, %v10446_v39  ;;  %v12223_v63 = vpack.c.bf16 %v10462_v54, %v10461_v29 }
0x1264   :  { %v12250_v39 = vpop.permute.xlu0 %10469 }
0x1265   :  { %9592 = vmatmul.mubr.msk.f32.vlgmr.msra.gmra.mrb[68].mxu1 %vm208_vm1, %v12203_v35  ;;  %10062 = vmatprep.subr.msk.bf16.mxu0 %vm11123_vm2, %v10060_v28 }
0x1266   :  { %10065 = vmatpush3.bf16.xpose.msk.msra.mxu0 %vm11123_vm2, %v10060_v28  ;;  %9605 = vmatprep.mubr.msk.f32.mxu1 %vm208_vm1, %v12205_v11 }
0x1268   :  { %v10450_v13 = vpop.permute.xlu1 %10449 }
0x1269   :  { %v10452_v62 = vunpack.i.h.bf16 %v10450_v13  ;;  %v10451_v4 = vunpack.i.l.bf16 %v10450_v13 }
0x126b   :  { %v10066_v53 = vpack.c.bf16 %v10452_v62, %v10451_v4 }
0x126c   :  { %v10455_v21 = vpop.permute.xlu1 %10454 }
0x126d   :  { %v10457_v58 = vunpack.i.h.bf16 %v10455_v21  ;;  %v10456_v60 = vunpack.i.l.bf16 %v10455_v21  ;;  %9599 = vmatmul.mubr.msk.f32.vlgmr.msra.gmra.mrb[54].mxu0 %vm208_vm1, %v12215_v14  ;;  %10068 = vmatprep.subr.msk.bf16.mxu1 %vm11123_vm2, %v10066_v53 }
0x126e   :  { %10071 = vmatpush3.bf16.xpose.msk.msra.mxu1 %vm11123_vm2, %v10066_v53 }
0x126f   :  { %v10072_v34 = vpack.c.bf16 %v10457_v58, %v10456_v60 }
0x1270   :  { %v10465_v38 = vpop.permute.xlu1 %10464 }
0x1271   :  { %v10467_v61 = vunpack.i.h.bf16 %v10465_v38  ;;  %v10466_v10 = vunpack.i.l.bf16 %v10465_v38  ;;  %10073 = vmatprep.subr.bf16.mxu0 %v10072_v34 }
0x1272   :  { %10075 = vmatpush3.bf16.msra.mxu0 %v10072_v34 }
0x1273   :  { %10081 = vmatprep.subr.bf16.mxu0 %v12223_v63  ;;  %v10076_v20 = vpack.c.bf16 %v10467_v61, %v10466_v10 }
0x1274   :  { %v12228_v12 = vpop.permute.xlu1 %10474 }
0x1275   :  { %9606 = vmatmul.mubr.msk.f32.vlgmr.msra.gmra.mrb[70].mxu1 %vm208_vm1, %v12226_v56  ;;  %10077 = vmatprep.subr.bf16.mxu1 %v10076_v20 }
0x1276   :  { %10079 = vmatpush3.bf16.msra.mxu1 %v10076_v20 }
0x1278   :  { %v10480_v6 = vpop.permute.xlu1 %10479 }
0x1279   :  { %v10482_v9 = vunpack.i.h.bf16 %v10480_v6  ;;  %v10481_v43 = vunpack.i.l.bf16 %v10480_v6 }
0x127b   :  { %v12232_v44 = vpack.c.bf16 %v10482_v9, %v10481_v43 }
0x127d   :  { %10085 = vmatprep.subr.bf16.mxu1 %v12232_v44 }
0x12f5   :  { %v9586_v24 = vpop.f32.mrb[66].mxu1 }
0x12f6   :  { %v4517_v19 = vpop.f32.mrb[67].mxu1  ;;  %v4802_v57 = vsel %vm567_vm3, %v9586_v24, -inf }
0x12f7   :  { %4803 = vmax.xlane.f32.xlu1 %v4802_v57  ;;  %v4799_v22 = vsel %vm567_vm3, %v4517_v19, -inf }
0x12f8   :  { %4800 = vmax.xlane.f32.xlu0 %v4799_v22 }
0x1338   :  { %v9593_v1 = vpop.f32.mrb[68].mxu1 }
0x1339   :  { %v4608_v42 = vpop.f32.mrb[69].mxu1  ;;  %v4808_v3 = vsel %vm567_vm3, %v9593_v1, -inf }
0x133a   :  { %4809 = vmax.xlane.f32.xlu0 %v4808_v3  ;;  %v4805_v8 = vsel %vm567_vm3, %v4608_v42, -inf }
0x133e   :  { %4806 = vmax.xlane.f32.xlu0 %v4805_v8 }
0x1340   :  { %v9600_v32 = vpop.f32.mrb[54].mxu0 }
0x1341   :  { %v4699_v46 = vpop.f32.mrb[55].mxu0  ;;  %v4814_v2 = vsel %vm567_vm3, %v9600_v32, -inf }
0x1342   :  { %4815 = vmax.xlane.f32.xlu0 %v4814_v2  ;;  %v4811_v45 = vsel %vm567_vm3, %v4699_v46, -inf }
0x1343   :  { %4812 = vmax.xlane.f32.xlu1 %v4811_v45 }
0x1348   :  { %v9607_v50 = vpop.f32.mrb[70].mxu1 }
0x1349   :  { %v12241_v51 = vpop.f32.mrb[71].mxu1  ;;  %v4820_v26 = vsel %vm567_vm3, %v9607_v50, -inf }
0x134a   :  { %4821 = vmax.xlane.f32.xlu0 %v4820_v26  ;;  %v4817_v31 = vsel %vm567_vm3, %v12241_v51, -inf }
0x1354   :  { %10484 = vrot.lane.b32.xlu1 %v12163_v27, %s10947_s19 }
0x1360   :  { %5243 = vrot.lane.b32.xlu0 %v12153_v59, %s10948_s20 }
0x1378   :  { %4818 = vmax.xlane.f32.xlu1 %v4817_v31 }
0x1384   :  { %v4804_v28 = vpop.xlane.xlu1 %4803 }
0x1385   :  { %v4824_v13 = vsub.f32 %v9586_v24, %v4804_v28  ;;  %v4801_v62 = vpop.xlane.xlu0 %4800 }
0x1386   :  { %v4823_v4 = vsub.f32 %v4517_v19, %v4801_v62 }
0x1387   :  { %v4833_v16 = vmul.f32 1.442695, %v4824_v13 }
0x1388   :  { %v4831_v53 = vmul.f32 1.442695, %v4823_v4 }
0x1389   :  { %10753 = vpow2.f32 %v4833_v16 }
0x138a   :  { %10755 = vpow2.f32 %v4831_v53 }
0x1393   :  { %v10754_v21 = vpop.eup %10753 }
0x1394   :  { %v10756_v54 = vpop.eup %10755  ;;  %v4850_v29 = vsel %vm567_vm3, %v10754_v21, 0.0 }
0x1395   :  { %4851 = vadd.xlane.f32.xlu0 %v4850_v29  ;;  %v4847_v58 = vsel %vm567_vm3, %v10756_v54, 0.0 }
0x1396   :  { %4848 = vadd.xlane.f32.xlu1 %v4847_v58 }
0x13c7   :  { %v4810_v60 = vpop.xlane.xlu0 %4809 }
0x13c8   :  { %v4826_v34 = vsub.f32 %v9593_v1, %v4810_v60  ;;  %v10472_v60 = vunpack.i.h.bf16 %v12250_v39 }
0x13ca   :  { %v4837_v38 = vmul.f32 1.442695, %v4826_v34  ;;  %v10471_v34 = vunpack.i.l.bf16 %v12250_v39 }
0x13cb   :  { %v4807_v61 = vpop.xlane.xlu0 %4806 }
0x13cc   :  { %10757 = vpow2.f32 %v4837_v38  ;;  %v4825_v10 = vsub.f32 %v4608_v42, %v4807_v61 }
0x13ce   :  { %v4835_v20 = vmul.f32 1.442695, %v4825_v10 }
0x13cf   :  { %v4816_v6 = vpop.xlane.xlu0 %4815 }
0x13d0   :  { %10759 = vpow2.f32 %v4835_v20  ;;  %v4828_v9 = vsub.f32 %v9600_v32, %v4816_v6  ;;  %v4813_v3 = vpop.xlane.xlu1 %4812  ;;  %v10088_v20 = vpack.c.bf16 %v10472_v60, %v10471_v34 }
0x13d1   :  { %v4827_v8 = vsub.f32 %v4699_v46, %v4813_v3 }
0x13d2   :  { %v4841_v43 = vmul.f32 1.442695, %v4828_v9 }
0x13d3   :  { %v4839_v2 = vmul.f32 1.442695, %v4827_v8 }
0x13d4   :  { %10761 = vpow2.f32 %v4841_v43  ;;  %v12278_v4 = vpop.permute.xlu1 %10484  ;;  %v10477_v43 = vunpack.i.h.bf16 %v12228_v12 }
0x13d5   :  { %10763 = vpow2.f32 %v4839_v2 }
0x13d6   :  { %v12254_v24 = vpop.eup %10757 }
0x13d7   :  { %v4856_v19 = vsel %vm567_vm3, %v12254_v24, 0.0  ;;  %v4822_v32 = vpop.xlane.xlu0 %4821 }
0x13d8   :  { %4857 = vadd.xlane.f32.xlu0 %v4856_v19  ;;  %v4830_v45 = vsub.f32 %v9607_v50, %v4822_v32  ;;  %v10476_v19 = vunpack.i.l.bf16 %v12228_v12 }
0x13da   :  { %v12258_v57 = vpop.eup %10759  ;;  %v4845_v26 = vmul.f32 1.442695, %v4830_v45  ;;  %v10094_v3 = vpack.c.bf16 %v10477_v43, %v10476_v19 }
0x13db   :  { %v4853_v22 = vsel %vm567_vm3, %v12258_v57, 0.0  ;;  %v12280_v46 = vpop.permute.xlu0 %5243 }
0x13dc   :  { %4854 = vadd.xlane.f32.xlu1 %v4853_v22  ;;  %10765 = vpow2.f32 %v4845_v26  ;;  %v10486_v26 = vunpack.i.l.bf16 %v12278_v4 }
0x13de   :  { %v12262_v1 = vpop.eup %10761 }
0x13df   :  { %v4862_v42 = vsel %vm567_vm3, %v12262_v1, 0.0  ;;  %v12270_v31 = vpop.eup %10763 }
0x13e0   :  { %4863 = vadd.xlane.f32.xlu0 %v4862_v42  ;;  %v4859_v28 = vsel %vm567_vm3, %v12270_v31, 0.0 }
0x13e6   :  { %v12274_v13 = vpop.eup %10765 }
0x13e7   :  { %v4868_v62 = vsel %vm567_vm3, %v12274_v13, 0.0 }
0x13ed   :  { %5334 = vrot.lane.b32.xlu1 %v12193_v47, %s10948_s20 }
0x13f6   :  { %5245 = vrot.lane.b32.xlu0 %v12191_v48, %s10948_s20 }
0x1405   :  { %v4819_v50 = vpop.xlane.xlu1 %4818 }
0x1406   :  { %v4829_v61 = vsub.f32 %v12241_v51, %v4819_v50 }
0x1408   :  { %v4843_v6 = vmul.f32 1.442695, %v4829_v61 }
0x1411   :  { %4860 = vadd.xlane.f32.xlu1 %v4859_v28 }
0x1415   :  { %4869 = vadd.xlane.f32.xlu0 %v4868_v62 }
0x1422   :  { %v4852_v16 = vpop.xlane.xlu0 %4851  ;;  %5336 = vrot.lane.b32.xlu1 %v12203_v35, %s10948_s20 }
0x1423   :  { %10767 = vrcp.f32 %v4852_v16  ;;  %v4849_v53 = vpop.xlane.xlu1 %4848 }
0x1424   :  { %10769 = vrcp.f32 %v4849_v53 }
0x1425   :  { %10771 = vpow2.f32 %v4843_v6 }
0x142b   :  { %10489 = vrot.lane.b32.xlu0 %v12175_v30, %s10947_s19  ;;  %s13166_s19 = smov 40  }
0x142d   :  { %v10768_v29 = vpop.eup %10767 }
0x142e   :  { %v10770_v58 = vpop.eup %10769  ;;  %v4880_v10 = vmul.f32 %v10768_v29, %v10754_v21 }
0x142f   :  { %5425 = vrot.lane.b32.xlu0 %v12165_v23, %s10948_s20  ;;  %v4879_v38 = vmul.f32 %v10770_v58, %v10756_v54  ;;  %v10772_v51 = vpop.eup %10771 }
0x1430   :  { %v4865_v39 = vsel %vm567_vm3, %v10772_v51, 0.0 }
0x1431   :  { %9612 = vmatprep.mubr.msk.f32.mxu0 %vm567_vm3, %v4879_v38 }
0x1432   :  { %9613 = vmatmul.mubr.msk.f32.vlgmr.msra.gmra.mrb[56].mxu0 %vm567_vm3, %v4880_v10 }
0x1433   :  { %10083 = vmatpush3.bf16.msra.mxu0 %v12223_v63  ;;  %5516 = vrot.lane.b32.xlu0 %v12205_v11, %s10948_s20 }
0x1434   :  { %10090 = vmatprep.subr.msk.bf16.mxu0 %vm11123_vm2, %v10088_v20 }
0x1437   :  { %10499 = vrot.lane.b32.xlu0 %v12163_v27, %s10949_s21 }
0x143b   :  { %10514 = vrot.lane.b32.xlu0 %v12151_v25, %s10950_s22 }
0x1446   :  { %4866 = vadd.xlane.f32.xlu1 %v4865_v39 }
0x1457   :  { %5427 = vrot.lane.b32.xlu1 %v12215_v14, %s10948_s20 }
0x145b   :  { %5518 = vrot.lane.b32.xlu1 %v12226_v56, %s10948_s20  ;;  %s13167_s20 = smov 8  }
0x145f   :  { %10494 = vrot.lane.b32.xlu1 %v12151_v25, %s10949_s21 }
0x1463   :  { %10504 = vrot.lane.b32.xlu1 %v12159_v7, %s10949_s21 }
0x1465   :  { %v4858_v63 = vpop.xlane.xlu0 %4857 }
0x1466   :  { %10773 = vrcp.f32 %v4858_v63 }
0x1467   :  { %10509 = vrot.lane.b32.xlu1 %v12175_v30, %s10949_s21  ;;  %s13168_s21 = smov 16  }
0x1469   :  { %v4855_v21 = vpop.xlane.xlu1 %4854 }
0x146a   :  { %10775 = vrcp.f32 %v4855_v21 }
0x146b   :  { %10519 = vrot.lane.b32.xlu1 %v12159_v7, %s10950_s22 }
0x146d   :  { %v5335_v8 = vpop.permute.xlu1 %5334  ;;  %v4864_v32 = vpop.xlane.xlu0 %4863 }
0x146e   :  { %10777 = vrcp.f32 %v4864_v32 }
0x1470   :  { %v10774_v54 = vpop.eup %10773 }
0x1471   :  { %v4882_v42 = vmul.f32 %v10774_v54, %v12254_v24  ;;  %v5246_v12 = vpop.permute.xlu0 %5245  ;;  %v10487_v24 = vunpack.i.h.bf16 %v12278_v4 }
0x1473   :  { %v10100_v50 = vpack.c.bf16 %v10487_v24, %v10486_v26 }
0x1474   :  { %v10776_v9 = vpop.eup %10775 }
0x1475   :  { %v4881_v22 = vmul.f32 %v10776_v9, %v12258_v57 }
0x1477   :  { %9619 = vmatprep.mubr.msk.f32.mxu1 %vm567_vm3, %v4881_v22 }
0x1478   :  { %9620 = vmatmul.mubr.msk.f32.vlgmr.msra.gmra.mrb[72].mxu1 %vm567_vm3, %v4882_v42  ;;  %v10778_v45 = vpop.eup %10777 }
0x1479   :  { %10087 = vmatpush3.bf16.msra.mxu1 %v12232_v44  ;;  %v4884_v44 = vmul.f32 %v10778_v45, %v12262_v1 }
0x147a   :  { %10096 = vmatprep.subr.msk.bf16.mxu1 %vm11123_vm2, %v10094_v3 }
0x149e   :  { %v4861_v2 = vpop.xlane.xlu1 %4860 }
0x149f   :  { %10779 = vrcp.f32 %v4861_v2 }
0x14a2   :  { %v4870_v28 = vpop.xlane.xlu0 %4869  ;;  %v5337_v1 = vpop.permute.xlu1 %5336 }
0x14a3   :  { %10781 = vrcp.f32 %v4870_v28 }
0x14a6   :  { %v10490_v16 = vpop.permute.xlu0 %10489 }
0x14a7   :  { %v10492_v38 = vunpack.i.h.bf16 %v10490_v16  ;;  %v10491_v61 = vunpack.i.l.bf16 %v10490_v16 }
0x14a9   :  { %v10780_v57 = vpop.eup %10779  ;;  %v10106_v9 = vpack.c.bf16 %v10492_v38, %v10491_v61 }
0x14aa   :  { %v4883_v62 = vmul.f32 %v10780_v57, %v12270_v31  ;;  %v5426_v4 = vpop.permute.xlu0 %5425 }
0x14ac   :  { %9626 = vmatprep.mubr.msk.f32.mxu0 %vm567_vm3, %v4883_v62 }
0x14ad   :  { %9627 = vmatmul.mubr.msk.f32.vlgmr.msra.gmra.mrb[58].mxu0 %vm567_vm3, %v4884_v44  ;;  %v10782_v58 = vpop.eup %10781 }
0x14ae   :  { %10093 = vmatpush3.bf16.xpose.msk.msra.mxu0 %vm11123_vm2, %v10088_v20  ;;  %9640 = vmatprep.mubr.msk.f32.mxu0 %vm208_vm1, %v12280_v46  ;;  %v5517_v53 = vpop.permute.xlu0 %5516  ;;  %v4886_v6 = vmul.f32 %v10782_v58, %v12274_v13 }
0x14af   :  { %10102 = vmatprep.subr.msk.bf16.mxu0 %vm11123_vm2, %v10100_v50 }
0x14b2   :  { %v10500_v60 = vpop.permute.xlu0 %10499 }
0x14b3   :  { %v10502_v39 = vunpack.i.h.bf16 %v10500_v60  ;;  %v10501_v63 = vunpack.i.l.bf16 %v10500_v60 }
0x14b5   :  { %9641 = vmatmul.mubr.msk.f32.vlgmr.msra.gmra.mrb[60].mxu0 %vm208_vm1, %v5246_v12  ;;  %v12349_v13 = vpack.c.bf16 %v10502_v39, %v10501_v63 }
0x14b6   :  { %10105 = vmatpush3.bf16.xpose.msk.msra.mxu0 %vm11123_vm2, %v10100_v50  ;;  %9654 = vmatprep.mubr.msk.f32.mxu0 %vm208_vm1, %v5426_v4  ;;  %v12382_v63 = vpop.permute.xlu0 %10514 }
0x14d3   :  { %v4867_v31 = vpop.xlane.xlu1 %4866 }
0x14d4   :  { %10783 = vrcp.f32 %v4867_v31 }
0x14d7   :  { %v5428_v29 = vpop.permute.xlu1 %5427 }
0x14d8   :  { %9655 = vmatmul.mubr.msk.f32.vlgmr.msra.gmra.mrb[62].mxu0 %vm208_vm1, %v5428_v29 }
0x14db   :  { %v5519_v46 = vpop.permute.xlu1 %5518 }
0x14de   :  { %v10784_v34 = vpop.eup %10783 }
0x14df   :  { %v10495_v10 = vpop.permute.xlu1 %10494  ;;  %v4885_v20 = vmul.f32 %v10784_v34, %v10772_v51 }
0x14e0   :  { %v10497_v21 = vunpack.i.h.bf16 %v10495_v10  ;;  %v10496_v54 = vunpack.i.l.bf16 %v10495_v10 }
0x14e1   :  { %9633 = vmatprep.mubr.msk.f32.mxu1 %vm567_vm3, %v4885_v20 }
0x14e2   :  { %9634 = vmatmul.mubr.msk.f32.vlgmr.msra.gmra.mrb[74].mxu1 %vm567_vm3, %v4886_v6  ;;  %v10112_v43 = vpack.c.bf16 %v10497_v21, %v10496_v54 }
0x14e3   :  { %10099 = vmatpush3.bf16.xpose.msk.msra.mxu1 %vm11123_vm2, %v10094_v3  ;;  %9647 = vmatprep.mubr.msk.f32.mxu1 %vm208_vm1, %v5335_v8  ;;  %v10505_v19 = vpop.permute.xlu1 %10504 }
0x14e4   :  { %10108 = vmatprep.subr.msk.bf16.mxu1 %vm11123_vm2, %v10106_v9  ;;  %10113 = vmatprep.subr.bf16.mxu0 %v10112_v43  ;;  %v10507_v51 = vunpack.i.h.bf16 %v10505_v19  ;;  %v10506_v22 = vunpack.i.l.bf16 %v10505_v19 }
0x14e5   :  { %10115 = vmatpush3.bf16.msra.mxu0 %v10112_v43 }
0x14e6   :  { %10121 = vmatprep.subr.bf16.mxu0 %v12349_v13  ;;  %v10116_v42 = vpack.c.bf16 %v10507_v51, %v10506_v22 }
0x14e7   :  { %v10510_v32 = vpop.permute.xlu1 %10509 }
0x14e8   :  { %v10512_v3 = vunpack.i.h.bf16 %v10510_v32  ;;  %v10511_v8 = vunpack.i.l.bf16 %v10510_v32 }
0x14ea   :  { %9648 = vmatmul.mubr.msk.f32.vlgmr.msra.gmra.mrb[76].mxu1 %vm208_vm1, %v5337_v1  ;;  %v12357_v2 = vpack.c.bf16 %v10512_v3, %v10511_v8 }
0x14eb   :  { %10111 = vmatpush3.bf16.xpose.msk.msra.mxu1 %vm11123_vm2, %v10106_v9  ;;  %9661 = vmatprep.mubr.msk.f32.mxu1 %vm208_vm1, %v5517_v53  ;;  %v12380_v39 = vpop.permute.xlu1 %10519 }
0x14ec   :  { %10117 = vmatprep.subr.bf16.mxu1 %v10116_v42 }
0x14f2   :  { %9662 = vmatmul.mubr.msk.f32.vlgmr.msra.gmra.mrb[78].mxu1 %vm208_vm1, %v5519_v46 }
0x14f3   :  { %10119 = vmatpush3.bf16.msra.mxu1 %v10116_v42 }
0x14f4   :  { %10125 = vmatprep.subr.bf16.mxu1 %v12357_v2 }
0x1505   :  { %v9614_v12 = vpop.f32.mrb[56].mxu0 }
0x1506   :  { %5236 = vst.msk [vmem:[#allocation2 + $0x8] sm:$0xff] %vm208_vm1, %v9614_v12  ;;  %v4965_v45 = vpop.f32.mrb[57].mxu0 }
0x1507   :  { %5235 = vst.msk [vmem:[#allocation2] sm:$0xff] %vm208_vm1, %v4965_v45 }
0x154b   :  { %v9621_v57 = vpop.f32.mrb[72].mxu1 }
0x154c   :  { %5238 = vst.msk [vmem:[#allocation2 + $0x18] sm:$0xff] %vm208_vm1, %v9621_v57  ;;  %v5052_v24 = vpop.f32.mrb[73].mxu1 }
0x154d   :  { %5237 = vst.msk [vmem:[#allocation2 + $0x10] sm:$0xff] %vm208_vm1, %v5052_v24 }
0x1580   :  { %v9628_v26 = vpop.f32.mrb[58].mxu0 }
0x1581   :  { %5240 = vst.msk [vmem:[#allocation2 + $0x28] sm:$0xff] %vm208_vm1, %v9628_v26  ;;  %v5139_v28 = vpop.f32.mrb[59].mxu0 }
0x1582   :  { %5239 = vst.msk [vmem:[#allocation2 + $0x20] sm:$0xff] %vm208_vm1, %v5139_v28 }
0x1588   :  { %v9642_v62 = vpop.f32.mrb[60].mxu0 }
0x1589   :  { %v5325_v44 = vpop.f32.mrb[61].mxu0  ;;  %v5610_v50 = vsel %vm567_vm3, %v9642_v62, -inf }
0x158a   :  { %5611 = vmax.xlane.f32.xlu1 %v5610_v50  ;;  %v5607_v16 = vsel %vm567_vm3, %v5325_v44, -inf }
0x158b   :  { %5608 = vmax.xlane.f32.xlu0 %v5607_v16 }
0x15ab   :  { %v9656_v4 = vpop.f32.mrb[62].mxu0 }
0x15ac   :  { %v5507_v1 = vpop.f32.mrb[63].mxu0  ;;  %v5622_v34 = vsel %vm567_vm3, %v9656_v4, -inf }
0x15ad   :  { %v5619_v31 = vsel %vm567_vm3, %v5507_v1, -inf }
0x15ae   :  { %5620 = vmax.xlane.f32.xlu1 %v5619_v31 }
0x15b5   :  { %v9635_v53 = vpop.f32.mrb[74].mxu1 }
0x15b6   :  { %5242 = vst.msk [vmem:[#allocation2 + $0x38] sm:$0xff] %vm208_vm1, %v9635_v53  ;;  %v5226_v29 = vpop.f32.mrb[75].mxu1 }
0x15b7   :  { %5241 = vst.msk [vmem:[#allocation2 + $0x30] sm:$0xff] %vm208_vm1, %v5226_v29 }
0x15bd   :  { %v9649_v46 = vpop.f32.mrb[76].mxu1 }
0x15be   :  { %v5416_v58 = vpop.f32.mrb[77].mxu1  ;;  %v5616_v60 = vsel %vm567_vm3, %v9649_v46, -inf }
0x15bf   :  { %5617 = vmax.xlane.f32.xlu0 %v5616_v60  ;;  %10524 = vrot.lane.b32.xlu1 %v12163_v27, %s10950_s22  ;;  %v5613_v10 = vsel %vm567_vm3, %v5416_v58, -inf }
0x15c3   :  { %5623 = vmax.xlane.f32.xlu0 %v5622_v34 }
0x15c5   :  { %v9663_v38 = vpop.f32.mrb[78].mxu1 }
0x15c6   :  { %v5598_v61 = vpop.f32.mrb[79].mxu1  ;;  %v5628_v20 = vsel %vm567_vm3, %v9663_v38, -inf }
0x15c7   :  { %5614 = vmax.xlane.f32.xlu0 %v5613_v10  ;;  %v5625_v6 = vsel %vm567_vm3, %v5598_v61, -inf }
0x15cb   :  { %5629 = vmax.xlane.f32.xlu0 %v5628_v20 }
0x15e1   :  { %6083 = vrot.lane.b32.xlu0 %v12153_v59, %s10951_s23 }
0x15e3   :  { %5626 = vmax.xlane.f32.xlu1 %v5625_v6 }
0x1617   :  { %v5612_v21 = vpop.xlane.xlu1 %5611 }
0x1618   :  { %v5632_v54 = vsub.f32 %v9642_v62, %v5612_v21  ;;  %v5609_v9 = vpop.xlane.xlu0 %5608 }
0x1619   :  { %v5631_v43 = vsub.f32 %v5325_v44, %v5609_v9 }
0x161a   :  { %v5641_v19 = vmul.f32 1.442695, %v5632_v54 }
0x161b   :  { %v5639_v51 = vmul.f32 1.442695, %v5631_v43 }
0x161c   :  { %10785 = vpow2.f32 %v5641_v19 }
0x161d   :  { %10787 = vpow2.f32 %v5639_v51 }
0x1626   :  { %v12384_v22 = vpop.eup %10785 }
0x1627   :  { %v12386_v42 = vpop.eup %10787  ;;  %v5658_v32 = vsel %vm567_vm3, %v12384_v22, 0.0 }
0x1628   :  { %5659 = vadd.xlane.f32.xlu0 %v5658_v32  ;;  %v5655_v3 = vsel %vm567_vm3, %v12386_v42, 0.0 }
0x1629   :  { %5656 = vadd.xlane.f32.xlu1 %v5655_v3 }
0x163a   :  { %6174 = vrot.lane.b32.xlu1 %v12193_v47, %s10951_s23 }
0x163b   :  { %v5621_v57 = vpop.xlane.xlu1 %5620 }
0x163c   :  { %v5635_v28 = vsub.f32 %v5507_v1, %v5621_v57  ;;  %v10517_v57 = vunpack.i.h.bf16 %v12382_v63 }
0x163e   :  { %v5647_v16 = vmul.f32 1.442695, %v5635_v28 }
0x163f   :  { %v12411_v6 = vpop.permute.xlu1 %10524 }
0x164c   :  { %v5618_v8 = vpop.xlane.xlu0 %5617 }
0x164d   :  { %v5634_v12 = vsub.f32 %v9649_v46, %v5618_v8 }
0x164f   :  { %v5645_v45 = vmul.f32 1.442695, %v5634_v12 }
0x1650   :  { %v5624_v24 = vpop.xlane.xlu0 %5623 }
0x1651   :  { %10789 = vpow2.f32 %v5645_v45  ;;  %v5636_v26 = vsub.f32 %v9656_v4, %v5624_v24  ;;  %v10516_v24 = vunpack.i.l.bf16 %v12382_v63 }
0x1653   :  { %v5649_v62 = vmul.f32 1.442695, %v5636_v26 }
0x1654   :  { %v5615_v44 = vpop.xlane.xlu0 %5614 }
0x1655   :  { %10791 = vpow2.f32 %v5649_v62  ;;  %v5633_v50 = vsub.f32 %v5416_v58, %v5615_v44  ;;  %v10128_v62 = vpack.c.bf16 %v10517_v57, %v10516_v24 }
0x1657   :  { %v5643_v31 = vmul.f32 1.442695, %v5633_v50 }
0x1658   :  { %v5630_v10 = vpop.xlane.xlu0 %5629 }
0x1659   :  { %10793 = vpow2.f32 %v5643_v31  ;;  %v5638_v20 = vsub.f32 %v9663_v38, %v5630_v10 }
0x165a   :  { %10795 = vpow2.f32 %v5647_v16 }
0x165b   :  { %v12394_v53 = vpop.eup %10789  ;;  %v5653_v21 = vmul.f32 1.442695, %v5638_v20 }
0x165c   :  { %v5664_v29 = vsel %vm567_vm3, %v12394_v53, 0.0  ;;  %v6084_v38 = vpop.permute.xlu0 %6083 }
0x165d   :  { %5665 = vadd.xlane.f32.xlu0 %v5664_v29  ;;  %10797 = vpow2.f32 %v5653_v21  ;;  %v10522_v29 = vunpack.i.h.bf16 %v12380_v39  ;;  %v10527_v21 = vunpack.i.h.bf16 %v12411_v6 }
0x165f   :  { %v12398_v46 = vpop.eup %10791 }
0x1660   :  { %v5670_v4 = vsel %vm567_vm3, %v12398_v46, 0.0 }
0x1661   :  { %5671 = vadd.xlane.f32.xlu0 %v5670_v4  ;;  %v10521_v4 = vunpack.i.l.bf16 %v12380_v39 }
0x1663   :  { %v10794_v1 = vpop.eup %10793  ;;  %v10134_v20 = vpack.c.bf16 %v10522_v29, %v10521_v4 }
0x1664   :  { %v5661_v60 = vsel %vm567_vm3, %v10794_v1, 0.0  ;;  %v12403_v58 = vpop.eup %10795 }
0x1665   :  { %5662 = vadd.xlane.f32.xlu1 %v5661_v60  ;;  %v5667_v34 = vsel %vm567_vm3, %v12403_v58, 0.0 }
0x1667   :  { %v12413_v19 = vpop.eup %10797 }
0x1668   :  { %v5676_v51 = vsel %vm567_vm3, %v12413_v19, 0.0 }
0x1669   :  { %5668 = vadd.xlane.f32.xlu1 %v5667_v34 }
0x1670   :  { %v5627_v54 = vpop.xlane.xlu1 %5626 }
0x1671   :  { %v5637_v9 = vsub.f32 %v5598_v61, %v5627_v54  ;;  %v10526_v54 = vunpack.i.l.bf16 %v12411_v6 }
0x1673   :  { %v5651_v43 = vmul.f32 1.442695, %v5637_v9 }
0x1675   :  { %10799 = vpow2.f32 %v5651_v43 }
0x1677   :  { %6085 = vrot.lane.b32.xlu0 %v12191_v48, %s10951_s23 }
0x167a   :  { %6176 = vrot.lane.b32.xlu1 %v12203_v35, %s10951_s23 }
0x167f   :  { %v12417_v32 = vpop.eup %10799 }
0x1680   :  { %v5673_v3 = vsel %vm567_vm3, %v12417_v32, 0.0 }
0x1696   :  { %5677 = vadd.xlane.f32.xlu0 %v5676_v51 }
0x169e   :  { %5674 = vadd.xlane.f32.xlu1 %v5673_v3 }
0x16ac   :  { %10529 = vrot.lane.b32.xlu0 %v12175_v30, %s10950_s22 }
0x16af   :  { %6267 = vrot.lane.b32.xlu1 %v12215_v14, %s10951_s23 }
0x16b0   :  { %6265 = vrot.lane.b32.xlu0 %v12165_v23, %s10951_s23 }
0x16b3   :  { %6358 = vrot.lane.b32.xlu1 %v12226_v56, %s10951_s23 }
0x16b4   :  { %6356 = vrot.lane.b32.xlu0 %v12205_v11, %s10951_s23 }
0x16b5   :  { %v5660_v61 = vpop.xlane.xlu0 %5659 }
0x16b6   :  { %10801 = vrcp.f32 %v5660_v61  ;;  %v5657_v8 = vpop.xlane.xlu1 %5656 }
0x16b7   :  { %10803 = vrcp.f32 %v5657_v8  ;;  %10534 = vrot.lane.b32.xlu1 %v12151_v25, %s13163_s2 }
0x16b8   :  { %10539 = vrot.lane.b32.xlu0 %v12163_v27, %s13163_s2 }
0x16ba   :  { %v12448_v50 = vpop.permute.xlu1 %6174 }
0x16bb   :  { %10544 = vrot.lane.b32.xlu1 %v12159_v7, %s13163_s2 }
0x16bf   :  { %10549 = vrot.lane.b32.xlu1 %v12175_v30, %s13163_s2 }
0x16c0   :  { %v10802_v12 = vpop.eup %10801 }
0x16c1   :  { %v10804_v45 = vpop.eup %10803  ;;  %v5688_v28 = vmul.f32 %v10802_v12, %v12384_v22 }
0x16c2   :  { %v5687_v26 = vmul.f32 %v10804_v45, %v12386_v42 }
0x16c4   :  { %9668 = vmatprep.mubr.msk.f32.mxu0 %vm567_vm3, %v5687_v26 }
0x16c5   :  { %9669 = vmatmul.mubr.msk.f32.vlgmr.msra.gmra.mrb[64].mxu0 %vm567_vm3, %v5688_v28 }
0x16c6   :  { %10123 = vmatpush3.bf16.msra.mxu0 %v12349_v13 }
0x16c7   :  { %10130 = vmatprep.subr.msk.bf16.mxu0 %vm11123_vm2, %v10128_v62 }
0x16ea   :  { %v5666_v44 = vpop.xlane.xlu0 %5665 }
0x16eb   :  { %10805 = vrcp.f32 %v5666_v44 }
0x16ee   :  { %v5672_v63 = vpop.xlane.xlu0 %5671 }
0x16f2   :  { %v5663_v16 = vpop.xlane.xlu1 %5662 }
0x16f3   :  { %10807 = vrcp.f32 %v5663_v16 }
0x16f4   :  { %10809 = vrcp.f32 %v5672_v63 }
0x16f5   :  { %v10806_v22 = vpop.eup %10805 }
0x16f6   :  { %v5669_v42 = vpop.xlane.xlu1 %5668  ;;  %v5690_v60 = vmul.f32 %v10806_v22, %v12394_v53  ;;  %v10140_v53 = vpack.c.bf16 %v10527_v21, %v10526_v54 }
0x16f7   :  { %10811 = vrcp.f32 %v5669_v42 }
0x16fd   :  { %v10808_v31 = vpop.eup %10807 }
0x16fe   :  { %v5689_v13 = vmul.f32 %v10808_v31, %v10794_v1  ;;  %v10810_v34 = vpop.eup %10809  ;;  %v6177_v1 = vpop.permute.xlu1 %6176 }
0x16ff   :  { %v5692_v39 = vmul.f32 %v10810_v34, %v12398_v46 }
0x1700   :  { %9675 = vmatprep.mubr.msk.f32.mxu1 %vm567_vm3, %v5689_v13 }
0x1701   :  { %v10812_v10 = vpop.eup %10811  ;;  %9676 = vmatmul.mubr.msk.f32.vlgmr.msra.gmra.mrb[80].mxu1 %vm567_vm3, %v5690_v60 }
0x1702   :  { %10127 = vmatpush3.bf16.msra.mxu1 %v12357_v2  ;;  %v5691_v9 = vmul.f32 %v10812_v10, %v12403_v58  ;;  %v6086_v2 = vpop.permute.xlu0 %6085 }
0x1703   :  { %10136 = vmatprep.subr.msk.bf16.mxu1 %vm11123_vm2, %v10134_v20 }
0x1704   :  { %9682 = vmatprep.mubr.msk.f32.mxu0 %vm567_vm3, %v5691_v9 }
0x1705   :  { %9683 = vmatmul.mubr.msk.f32.vlgmr.msra.gmra.mrb[66].mxu0 %vm567_vm3, %v5692_v39 }
0x1706   :  { %10133 = vmatpush3.bf16.xpose.msk.msra.mxu0 %vm11123_vm2, %v10128_v62  ;;  %9696 = vmatprep.mubr.msk.f32.mxu0 %vm208_vm1, %v6084_v38 }
0x1707   :  { %10142 = vmatprep.subr.msk.bf16.mxu0 %vm11123_vm2, %v10140_v53 }
0x170d   :  { %9697 = vmatmul.mubr.msk.f32.vlgmr.msra.gmra.mrb[68].mxu0 %vm208_vm1, %v6086_v2 }
0x170e   :  { %10145 = vmatpush3.bf16.xpose.msk.msra.mxu0 %vm11123_vm2, %v10140_v53 }
0x1723   :  { %v5678_v46 = vpop.xlane.xlu0 %5677 }
0x1724   :  { %10813 = vrcp.f32 %v5678_v46 }
0x1727   :  { %v10530_v58 = vpop.permute.xlu0 %10529 }
0x1728   :  { %v10532_v45 = vunpack.i.h.bf16 %v10530_v58  ;;  %v10531_v57 = vunpack.i.l.bf16 %v10530_v58 }
0x172a   :  { %v10146_v42 = vpack.c.bf16 %v10532_v45, %v10531_v57 }
0x172b   :  { %v6266_v6 = vpop.permute.xlu0 %6265  ;;  %v5675_v43 = vpop.xlane.xlu1 %5674 }
0x172c   :  { %10815 = vrcp.f32 %v5675_v43  ;;  %9710 = vmatprep.mubr.msk.f32.mxu0 %vm208_vm1, %v6266_v6 }
0x172e   :  { %v10814_v61 = vpop.eup %10813 }
0x172f   :  { %v6357_v51 = vpop.permute.xlu0 %6356  ;;  %v6268_v3 = vpop.permute.xlu1 %6267  ;;  %v5694_v28 = vmul.f32 %v10814_v61, %v12413_v19 }
0x1730   :  { %9711 = vmatmul.mubr.msk.f32.vlgmr.msra.gmra.mrb[70].mxu0 %vm208_vm1, %v6268_v3 }
0x1733   :  { %v6359_v38 = vpop.permute.xlu1 %6358  ;;  %v10540_v8 = vpop.permute.xlu0 %10539 }
0x1734   :  { %v10542_v62 = vunpack.i.h.bf16 %v10540_v8  ;;  %v10541_v44 = vunpack.i.l.bf16 %v10540_v8 }
0x1736   :  { %v10816_v12 = vpop.eup %10815  ;;  %v12484_v19 = vpack.c.bf16 %v10542_v62, %v10541_v44 }
0x1737   :  { %v10535_v24 = vpop.permute.xlu1 %10534  ;;  %v5693_v26 = vmul.f32 %v10816_v12, %v12417_v32 }
0x1738   :  { %v10537_v16 = vunpack.i.h.bf16 %v10535_v24  ;;  %v10536_v63 = vunpack.i.l.bf16 %v10535_v24 }
0x1739   :  { %9689 = vmatprep.mubr.msk.f32.mxu1 %vm567_vm3, %v5693_v26 }
0x173a   :  { %9690 = vmatmul.mubr.msk.f32.vlgmr.msra.gmra.mrb[82].mxu1 %vm567_vm3, %v5694_v28  ;;  %v10152_v22 = vpack.c.bf16 %v10537_v16, %v10536_v63 }
0x173b   :  { %10139 = vmatpush3.bf16.xpose.msk.msra.mxu1 %vm11123_vm2, %v10134_v20  ;;  %v10545_v31 = vpop.permute.xlu1 %10544  ;;  %9703 = vmatprep.mubr.msk.f32.mxu1 %vm208_vm1, %v12448_v50 }
0x173c   :  { %10148 = vmatprep.subr.msk.bf16.mxu1 %vm11123_vm2, %v10146_v42  ;;  %10153 = vmatprep.subr.bf16.mxu0 %v10152_v22  ;;  %v10547_v32 = vunpack.i.h.bf16 %v10545_v31  ;;  %v10546_v29 = vunpack.i.l.bf16 %v10545_v31 }
0x173d   :  { %10155 = vmatpush3.bf16.msra.mxu0 %v10152_v22 }
0x173e   :  { %10161 = vmatprep.subr.bf16.mxu0 %v12484_v19  ;;  %v10156_v4 = vpack.c.bf16 %v10547_v32, %v10546_v29 }
0x173f   :  { %v10550_v13 = vpop.permute.xlu1 %10549 }
0x1740   :  { %v10552_v50 = vunpack.i.h.bf16 %v10550_v13  ;;  %v10551_v60 = vunpack.i.l.bf16 %v10550_v13 }
0x1742   :  { %9704 = vmatmul.mubr.msk.f32.vlgmr.msra.gmra.mrb[84].mxu1 %vm208_vm1, %v6177_v1  ;;  %v12492_v34 = vpack.c.bf16 %v10552_v50, %v10551_v60 }
0x1743   :  { %10151 = vmatpush3.bf16.xpose.msk.msra.mxu1 %vm11123_vm2, %v10146_v42  ;;  %9717 = vmatprep.mubr.msk.f32.mxu1 %vm208_vm1, %v6357_v51 }
0x1744   :  { %10157 = vmatprep.subr.bf16.mxu1 %v10156_v4 }
0x174a   :  { %9718 = vmatmul.mubr.msk.f32.vlgmr.msra.gmra.mrb[86].mxu1 %vm208_vm1, %v6359_v38 }
0x174b   :  { %10159 = vmatpush3.bf16.msra.mxu1 %v10156_v4 }
0x174c   :  { %10165 = vmatprep.subr.bf16.mxu1 %v12492_v34 }
0x1798   :  { %v12495_v10 = vpop.f32.mrb[64].mxu0 }
0x1799   :  { %v12497_v20 = vpop.f32.mrb[65].mxu0 }
0x17d4   :  { %v12499_v21 = vpop.f32.mrb[80].mxu1 }
0x17d5   :  { %v12501_v54 = vpop.f32.mrb[81].mxu1 }
0x17d8   :  { %v12503_v9 = vpop.f32.mrb[66].mxu0 }
0x17d9   :  { %v12505_v39 = vpop.f32.mrb[67].mxu0 }
0x17e0   :  { %v9698_v53 = vpop.f32.mrb[68].mxu0 }
0x17e1   :  { %v6165_v2 = vpop.f32.mrb[69].mxu0  ;;  %v6450_v46 = vsel %vm567_vm3, %v9698_v53, -inf }
0x17e2   :  { %6451 = vmax.xlane.f32.xlu1 %v6450_v46  ;;  %v6447_v1 = vsel %vm567_vm3, %v6165_v2, -inf }
0x17e3   :  { %6448 = vmax.xlane.f32.xlu0 %v6447_v1 }
0x1803   :  { %v9712_v58 = vpop.f32.mrb[70].mxu0 }
0x1804   :  { %v6347_v6 = vpop.f32.mrb[71].mxu0  ;;  %v6462_v12 = vsel %vm567_vm3, %v9712_v58, -inf }
0x1805   :  { %v6459_v43 = vsel %vm567_vm3, %v6347_v6, -inf }
0x1806   :  { %6460 = vmax.xlane.f32.xlu1 %v6459_v43 }
0x180d   :  { %v12510_v51 = vpop.f32.mrb[82].mxu1 }
0x180e   :  { %v12512_v3 = vpop.f32.mrb[83].mxu1 }
0x1815   :  { %v9705_v38 = vpop.f32.mrb[84].mxu1 }
0x1816   :  { %v6256_v61 = vpop.f32.mrb[85].mxu1  ;;  %v6456_v8 = vsel %vm567_vm3, %v9705_v38, -inf }
0x1817   :  { %6457 = vmax.xlane.f32.xlu0 %v6456_v8  ;;  %v6453_v24 = vsel %vm567_vm3, %v6256_v61, -inf }
0x181b   :  { %6463 = vmax.xlane.f32.xlu0 %v6462_v12 }
0x181d   :  { %v9719_v45 = vpop.f32.mrb[86].mxu1 }
0x181e   :  { %v6438_v57 = vpop.f32.mrb[87].mxu1  ;;  %v6468_v28 = vsel %vm567_vm3, %v9719_v45, -inf }
0x181f   :  { %6454 = vmax.xlane.f32.xlu0 %v6453_v24  ;;  %v6465_v26 = vsel %vm567_vm3, %v6438_v57, -inf }
0x1820   :  { %6466 = vmax.xlane.f32.xlu1 %v6465_v26 }
0x1823   :  { %6469 = vmax.xlane.f32.xlu0 %v6468_v28 }
0x1831   :  { %10559 = vrot.lane.b32.xlu1 %v12159_v7, %s13164_s17 }
0x1839   :  { %10554 = vrot.lane.b32.xlu0 %v12151_v25, %s13164_s17 }
0x186f   :  { %v6452_v62 = vpop.xlane.xlu1 %6451 }
0x1870   :  { %v6472_v44 = vsub.f32 %v9698_v53, %v6452_v62  ;;  %v6449_v16 = vpop.xlane.xlu0 %6448 }
0x1871   :  { %v6471_v63 = vsub.f32 %v6165_v2, %v6449_v16 }
0x1872   :  { %v6481_v42 = vmul.f32 1.442695, %v6472_v44 }
0x1873   :  { %v6479_v22 = vmul.f32 1.442695, %v6471_v63 }
0x1874   :  { %10817 = vpow2.f32 %v6481_v42 }
0x1875   :  { %10819 = vpow2.f32 %v6479_v22 }
0x187e   :  { %v12523_v31 = vpop.eup %10817 }
0x187f   :  { %v12525_v32 = vpop.eup %10819  ;;  %v6498_v29 = vsel %vm567_vm3, %v12523_v31, 0.0 }
0x1880   :  { %6499 = vadd.xlane.f32.xlu0 %v6498_v29  ;;  %v6495_v4 = vsel %vm567_vm3, %v12525_v32, 0.0 }
0x1881   :  { %6496 = vadd.xlane.f32.xlu1 %v6495_v4 }
0x1893   :  { %v6461_v53 = vpop.xlane.xlu1 %6460 }
0x1894   :  { %v6475_v1 = vsub.f32 %v6347_v6, %v6461_v53 }
0x1896   :  { %v6487_v24 = vmul.f32 1.442695, %v6475_v1 }
0x18a4   :  { %v6458_v13 = vpop.xlane.xlu0 %6457 }
0x18a5   :  { %v6474_v50 = vsub.f32 %v9705_v38, %v6458_v13 }
0x18a7   :  { %v6485_v60 = vmul.f32 1.442695, %v6474_v50 }
0x18a8   :  { %v6464_v2 = vpop.xlane.xlu0 %6463 }
0x18a9   :  { %10821 = vpow2.f32 %v6485_v60  ;;  %v6476_v46 = vsub.f32 %v9712_v58, %v6464_v2 }
0x18ab   :  { %v6489_v43 = vmul.f32 1.442695, %v6476_v46 }
0x18ac   :  { %v6455_v8 = vpop.xlane.xlu0 %6454 }
0x18ad   :  { %10823 = vpow2.f32 %v6489_v43  ;;  %v6473_v12 = vsub.f32 %v6256_v61, %v6455_v8  ;;  %v6467_v29 = vpop.xlane.xlu1 %6466 }
0x18ae   :  { %v6477_v4 = vsub.f32 %v6438_v57, %v6467_v29 }
0x18af   :  { %v6483_v26 = vmul.f32 1.442695, %v6473_v12 }
0x18b0   :  { %v6470_v63 = vpop.xlane.xlu0 %6469  ;;  %v6491_v13 = vmul.f32 1.442695, %v6477_v4 }
0x18b1   :  { %10825 = vpow2.f32 %v6483_v26  ;;  %v6478_v42 = vsub.f32 %v9719_v45, %v6470_v63  ;;  %v10560_v45 = vpop.permute.xlu1 %10559 }
0x18b2   :  { %10827 = vpow2.f32 %v6487_v24  ;;  %v10562_v24 = vunpack.i.h.bf16 %v10560_v45  ;;  %v10561_v26 = vunpack.i.l.bf16 %v10560_v45 }
0x18b3   :  { %v12531_v28 = vpop.eup %10821  ;;  %v6493_v22 = vmul.f32 1.442695, %v6478_v42 }
0x18b4   :  { %v6504_v62 = vsel %vm567_vm3, %v12531_v28, 0.0 }
0x18b5   :  { %6505 = vadd.xlane.f32.xlu0 %v6504_v62  ;;  %10829 = vpow2.f32 %v6493_v22 }
0x18b6   :  { %10831 = vpow2.f32 %v6491_v13 }
0x18b7   :  { %v12535_v38 = vpop.eup %10823 }
0x18b8   :  { %v6510_v58 = vsel %vm567_vm3, %v12535_v38, 0.0 }
0x18b9   :  { %6511 = vadd.xlane.f32.xlu0 %v6510_v58 }
0x18bb   :  { %v10826_v6 = vpop.eup %10825 }
0x18bc   :  { %v6501_v44 = vsel %vm567_vm3, %v10826_v6, 0.0  ;;  %v12540_v61 = vpop.eup %10827 }
0x18bd   :  { %6502 = vadd.xlane.f32.xlu1 %v6501_v44  ;;  %v6507_v16 = vsel %vm567_vm3, %v12540_v61, 0.0 }
0x18bf   :  { %v12548_v50 = vpop.eup %10829 }
0x18c0   :  { %v6516_v60 = vsel %vm567_vm3, %v12548_v50, 0.0  ;;  %v12552_v53 = vpop.eup %10831 }
0x18c1   :  { %6508 = vadd.xlane.f32.xlu1 %v6507_v16  ;;  %v10174_v16 = vpack.c.bf16 %v10562_v24, %v10561_v26 }
0x18cf   :  { %6923 = vrot.lane.b32.xlu0 %v12153_v59, %s13165_s18  ;;  %v6513_v59 = vsel %vm567_vm3, %v12552_v53, 0.0 }
0x18d2   :  { %6925 = vrot.lane.b32.xlu1 %v12191_v48, %s13165_s18  ;;  %v10555_v48 = vpop.permute.xlu0 %10554 }
0x18d3   :  { %v10557_v46 = vunpack.i.h.bf16 %v10555_v48  ;;  %v10556_v1 = vunpack.i.l.bf16 %v10555_v48 }
0x18d5   :  { %v10168_v8 = vpack.c.bf16 %v10557_v46, %v10556_v1 }
0x18ee   :  { %6517 = vadd.xlane.f32.xlu0 %v6516_v60 }
0x18f6   :  { %6514 = vadd.xlane.f32.xlu1 %v6513_v59 }
0x1904   :  { %10564 = vrot.lane.b32.xlu0 %v12163_v27, %s13164_s17 }
0x1907   :  { %7014 = vrot.lane.b32.xlu1 %v12193_v47, %s13165_s18 }
0x1908   :  { %7016 = vrot.lane.b32.xlu0 %v12203_v35, %s13165_s18 }
0x190b   :  { %10569 = vrot.lane.b32.xlu1 %v12175_v30, %s13164_s17 }
0x190c   :  { %7105 = vrot.lane.b32.xlu0 %v12165_v23, %s13165_s18 }
0x190d   :  { %v6500_v57 = vpop.xlane.xlu0 %6499 }
0x190e   :  { %10833 = vrcp.f32 %v6500_v57  ;;  %v6497_v2 = vpop.xlane.xlu1 %6496 }
0x190f   :  { %10835 = vrcp.f32 %v6497_v2  ;;  %7107 = vrot.lane.b32.xlu1 %v12215_v14, %s13165_s18 }
0x1910   :  { %7196 = vrot.lane.b32.xlu0 %v12205_v11, %s13165_s18 }
0x1913   :  { %7198 = vrot.lane.b32.xlu1 %v12226_v56, %s13165_s18 }
0x1918   :  { %v10834_v47 = vpop.eup %10833 }
0x1919   :  { %v10836_v35 = vpop.eup %10835  ;;  %v6528_v23 = vmul.f32 %v10834_v47, %v12523_v31 }
0x191a   :  { %v6527_v43 = vmul.f32 %v10836_v35, %v12525_v32 }
0x191c   :  { %9724 = vmatprep.mubr.msk.f32.mxu0 %vm567_vm3, %v6527_v43 }
0x191d   :  { %9725 = vmatmul.mubr.msk.f32.vlgmr.msra.gmra.mrb[72].mxu0 %vm567_vm3, %v6528_v23 }
0x191e   :  { %10163 = vmatpush3.bf16.msra.mxu0 %v12484_v19 }
0x191f   :  { %10170 = vmatprep.subr.msk.bf16.mxu0 %vm11123_vm2, %v10168_v8 }
0x1942   :  { %v6506_v11 = vpop.xlane.xlu0 %6505 }
0x1943   :  { %10837 = vrcp.f32 %v6506_v11 }
0x1946   :  { %v6512_v56 = vpop.xlane.xlu0 %6511 }
0x194a   :  { %v6503_v14 = vpop.xlane.xlu1 %6502 }
0x194b   :  { %10839 = vrcp.f32 %v6503_v14 }
0x194c   :  { %10841 = vrcp.f32 %v6512_v56 }
0x194d   :  { %v10838_v32 = vpop.eup %10837 }
0x194e   :  { %v6509_v12 = vpop.xlane.xlu1 %6508  ;;  %v6530_v58 = vmul.f32 %v10838_v32, %v12531_v28 }
0x194f   :  { %10843 = vrcp.f32 %v6509_v12 }
0x1952   :  { %v6926_v28 = vpop.permute.xlu1 %6925 }
0x1955   :  { %v10840_v31 = vpop.eup %10839 }
0x1956   :  { %v6529_v62 = vmul.f32 %v10840_v31, %v10826_v6  ;;  %v10842_v44 = vpop.eup %10841  ;;  %v6924_v6 = vpop.permute.xlu0 %6923 }
0x1957   :  { %v6532_v42 = vmul.f32 %v10842_v44, %v12535_v38 }
0x1958   :  { %9731 = vmatprep.mubr.msk.f32.mxu1 %vm567_vm3, %v6529_v62 }
0x1959   :  { %v10844_v19 = vpop.eup %10843  ;;  %9732 = vmatmul.mubr.msk.f32.vlgmr.msra.gmra.mrb[88].mxu1 %vm567_vm3, %v6530_v58 }
0x195a   :  { %10167 = vmatpush3.bf16.msra.mxu1 %v12492_v34  ;;  %v6531_v63 = vmul.f32 %v10844_v19, %v12540_v61 }
0x195b   :  { %10176 = vmatprep.subr.msk.bf16.mxu1 %vm11123_vm2, %v10174_v16 }
0x195c   :  { %9738 = vmatprep.mubr.msk.f32.mxu0 %vm567_vm3, %v6531_v63 }
0x195d   :  { %9739 = vmatmul.mubr.msk.f32.vlgmr.msra.gmra.mrb[74].mxu0 %vm567_vm3, %v6532_v42 }
0x195e   :  { %10173 = vmatpush3.bf16.xpose.msk.msra.mxu0 %vm11123_vm2, %v10168_v8  ;;  %9752 = vmatprep.mubr.msk.f32.mxu0 %vm208_vm1, %v6924_v6 }
0x1965   :  { %9753 = vmatmul.mubr.msk.f32.vlgmr.msra.gmra.mrb[76].mxu0 %vm208_vm1, %v6926_v28 }
0x197b   :  { %v6518_v34 = vpop.xlane.xlu0 %6517 }
0x197c   :  { %10845 = vrcp.f32 %v6518_v34 }
0x197f   :  { %v10565_v61 = vpop.permute.xlu0 %10564 }
0x1980   :  { %v10567_v22 = vunpack.i.h.bf16 %v10565_v61  ;;  %v10566_v38 = vunpack.i.l.bf16 %v10565_v61 }
0x1982   :  { %v10180_v29 = vpack.c.bf16 %v10567_v22, %v10566_v38 }
0x1983   :  { %v7017_v4 = vpop.permute.xlu0 %7016  ;;  %v6515_v13 = vpop.xlane.xlu1 %6514 }
0x1984   :  { %10847 = vrcp.f32 %v6515_v13  ;;  %10182 = vmatprep.subr.msk.bf16.mxu0 %vm11123_vm2, %v10180_v29 }
0x1985   :  { %10185 = vmatpush3.bf16.xpose.msk.msra.mxu0 %vm11123_vm2, %v10180_v29 }
0x1986   :  { %v10846_v45 = vpop.eup %10845 }
0x1987   :  { %v7106_v60 = vpop.permute.xlu0 %7105  ;;  %v7015_v59 = vpop.permute.xlu1 %7014  ;;  %v6534_v1 = vmul.f32 %v10846_v45, %v12548_v50 }
0x1988   :  { %9766 = vmatprep.mubr.msk.f32.mxu0 %vm208_vm1, %v7106_v60 }
0x198b   :  { %v10570_v48 = vpop.permute.xlu1 %10569  ;;  %v7197_v23 = vpop.permute.xlu0 %7196 }
0x198c   :  { %v10572_v2 = vunpack.i.h.bf16 %v10570_v48  ;;  %v10571_v47 = vunpack.i.l.bf16 %v10570_v48 }
0x198e   :  { %v10848_v57 = vpop.eup %10847  ;;  %v10186_v43 = vpack.c.bf16 %v10572_v2, %v10571_v47 }
0x198f   :  { %v7108_v35 = vpop.permute.xlu1 %7107  ;;  %v6533_v46 = vmul.f32 %v10848_v57, %v12552_v53 }
0x1990   :  { %9767 = vmatmul.mubr.msk.f32.vlgmr.msra.gmra.mrb[78].mxu0 %vm208_vm1, %v7108_v35 }
0x1991   :  { %9745 = vmatprep.mubr.msk.f32.mxu1 %vm567_vm3, %v6533_v46 }
0x1992   :  { %9746 = vmatmul.mubr.msk.f32.vlgmr.msra.gmra.mrb[90].mxu1 %vm567_vm3, %v6534_v1 }
0x1993   :  { %10179 = vmatpush3.bf16.xpose.msk.msra.mxu1 %vm11123_vm2, %v10174_v16  ;;  %9759 = vmatprep.mubr.msk.f32.mxu1 %vm208_vm1, %v7015_v59  ;;  %v7199_v50 = vpop.permute.xlu1 %7198 }
0x1994   :  { %10188 = vmatprep.subr.msk.bf16.mxu1 %vm11123_vm2, %v10186_v43 }
0x199a   :  { %9760 = vmatmul.mubr.msk.f32.vlgmr.msra.gmra.mrb[92].mxu1 %vm208_vm1, %v7017_v4 }
0x199b   :  { %10191 = vmatpush3.bf16.xpose.msk.msra.mxu1 %vm11123_vm2, %v10186_v43  ;;  %9773 = vmatprep.mubr.msk.f32.mxu1 %vm208_vm1, %v7197_v23 }
0x19a2   :  { %9774 = vmatmul.mubr.msk.f32.vlgmr.msra.gmra.mrb[94].mxu1 %vm208_vm1, %v7199_v50 }
0x19f0   :  { %v12613_v53 = vpop.f32.mrb[72].mxu0 }
0x19f1   :  { %v12615_v8 = vpop.f32.mrb[73].mxu0 }
0x1a2c   :  { %v12617_v11 = vpop.f32.mrb[88].mxu1 }
0x1a2d   :  { %v12619_v14 = vpop.f32.mrb[89].mxu1 }
0x1a30   :  { %v12621_v56 = vpop.f32.mrb[74].mxu0 }
0x1a31   :  { %v12623_v12 = vpop.f32.mrb[75].mxu0 }
0x1a38   :  { %v9754_v32 = vpop.f32.mrb[76].mxu0 }
0x1a39   :  { %v7005_v40 = vpop.f32.mrb[77].mxu0  ;;  %v7290_v31 = vsel %vm567_vm3, %v9754_v32, -inf }
0x1a3a   :  { %7291 = vmax.xlane.f32.xlu1 %v7290_v31  ;;  %v7287_v24 = vsel %vm567_vm3, %v7005_v40, -inf }
0x1a3b   :  { %7288 = vmax.xlane.f32.xlu0 %v7287_v24 }
0x1a63   :  { %v9768_v26 = vpop.f32.mrb[78].mxu0 }
0x1a64   :  { %v7187_v62 = vpop.f32.mrb[79].mxu0  ;;  %v7302_v61 = vsel %vm567_vm3, %v9768_v26, -inf }
0x1a65   :  { %v12627_v58 = vpop.f32.mrb[90].mxu1  ;;  %v7299_v44 = vsel %vm567_vm3, %v7187_v62, -inf }
0x1a66   :  { %v12630_v19 = vpop.f32.mrb[91].mxu1  ;;  %7300 = vmax.xlane.f32.xlu1 %v7299_v44 }
0x1a6d   :  { %v9761_v16 = vpop.f32.mrb[92].mxu1 }
0x1a6e   :  { %v7096_v63 = vpop.f32.mrb[93].mxu1  ;;  %v7296_v6 = vsel %vm567_vm3, %v9761_v16, -inf }
0x1a6f   :  { %v7293_v42 = vsel %vm567_vm3, %v7096_v63, -inf }
0x1a70   :  { %7294 = vmax.xlane.f32.xlu0 %v7293_v42 }
0x1a74   :  { %7297 = vmax.xlane.f32.xlu0 %v7296_v6 }
0x1a75   :  { %v9775_v28 = vpop.f32.mrb[94].mxu1 }
0x1a76   :  { %v7278_v34 = vpop.f32.mrb[95].mxu1  ;;  %v7308_v38 = vsel %vm567_vm3, %v9775_v28, -inf }
0x1a77   :  { %v7305_v22 = vsel %vm567_vm3, %v7278_v34, -inf }
0x1a78   :  { %7303 = vmax.xlane.f32.xlu0 %v7302_v61  ;;  %7306 = vmax.xlane.f32.xlu1 %v7305_v22 }
0x1a7c   :  { %7309 = vmax.xlane.f32.xlu0 %v7308_v38 }
0x1a89   :  { %10574 = vrot.lane.b32.xlu1 %v12151_v25, %s13166_s19 }
0x1ac7   :  { %v7292_v29 = vpop.xlane.xlu1 %7291 }
0x1ac8   :  { %v7312_v4 = vsub.f32 %v9754_v32, %v7292_v29  ;;  %v7289_v13 = vpop.xlane.xlu0 %7288 }
0x1ac9   :  { %v7311_v60 = vsub.f32 %v7005_v40, %v7289_v13 }
0x1aca   :  { %v7321_v59 = vmul.f32 1.442695, %v7312_v4 }
0x1acb   :  { %v7319_v48 = vmul.f32 1.442695, %v7311_v60 }
0x1acc   :  { %10849 = vpow2.f32 %v7321_v59 }
0x1acd   :  { %10851 = vpow2.f32 %v7319_v48 }
0x1ad6   :  { %v12639_v45 = vpop.eup %10849 }
0x1ad7   :  { %v12641_v57 = vpop.eup %10851  ;;  %v7338_v2 = vsel %vm567_vm3, %v12639_v45, 0.0 }
0x1ad8   :  { %7339 = vadd.xlane.f32.xlu0 %v7338_v2  ;;  %v7335_v47 = vsel %vm567_vm3, %v12641_v57, 0.0 }
0x1ad9   :  { %7336 = vadd.xlane.f32.xlu1 %v7335_v47 }
0x1af3   :  { %v7301_v25 = vpop.xlane.xlu1 %7300 }
0x1af4   :  { %v7315_v35 = vsub.f32 %v7187_v62, %v7301_v25 }
0x1af6   :  { %v7327_v43 = vmul.f32 1.442695, %v7315_v35 }
0x1afd   :  { %v7295_v46 = vpop.xlane.xlu0 %7294 }
0x1afe   :  { %v7313_v1 = vsub.f32 %v7096_v63, %v7295_v46 }
0x1b00   :  { %v7323_v23 = vmul.f32 1.442695, %v7313_v1 }
0x1b01   :  { %v7298_v50 = vpop.xlane.xlu0 %7297 }
0x1b02   :  { %10853 = vpow2.f32 %v7323_v23  ;;  %v7314_v32 = vsub.f32 %v9761_v16, %v7298_v50 }
0x1b03   :  { %10855 = vpow2.f32 %v7327_v43 }
0x1b04   :  { %v7325_v40 = vmul.f32 1.442695, %v7314_v32 }
0x1b05   :  { %v7304_v31 = vpop.xlane.xlu0 %7303  ;;  %v7307_v24 = vpop.xlane.xlu1 %7306 }
0x1b06   :  { %10857 = vpow2.f32 %v7325_v40  ;;  %v7316_v44 = vsub.f32 %v9768_v26, %v7304_v31  ;;  %v7317_v6 = vsub.f32 %v7278_v34, %v7307_v24 }
0x1b08   :  { %v7329_v42 = vmul.f32 1.442695, %v7316_v44  ;;  %v7331_v4 = vmul.f32 1.442695, %v7317_v6 }
0x1b09   :  { %v7310_v61 = vpop.xlane.xlu0 %7309  ;;  %v10575_v22 = vpop.permute.xlu1 %10574 }
0x1b0a   :  { %10859 = vpow2.f32 %v7329_v42  ;;  %v7318_v38 = vsub.f32 %v9775_v28, %v7310_v61  ;;  %v10577_v62 = vunpack.i.h.bf16 %v10575_v22  ;;  %v10576_v29 = vunpack.i.l.bf16 %v10575_v22 }
0x1b0c   :  { %v10854_v63 = vpop.eup %10853  ;;  %v7333_v13 = vmul.f32 1.442695, %v7318_v38  ;;  %v10192_v60 = vpack.c.bf16 %v10577_v62, %v10576_v29 }
0x1b0d   :  { %v7341_v16 = vsel %vm567_vm3, %v10854_v63, 0.0  ;;  %v12648_v59 = vpop.eup %10855 }
0x1b0e   :  { %10861 = vpow2.f32 %v7333_v13  ;;  %7342 = vadd.xlane.f32.xlu1 %v7341_v16  ;;  %10193 = vmatprep.subr.bf16.mxu0 %v10192_v60  ;;  %v7347_v34 = vsel %vm567_vm3, %v12648_v59, 0.0 }
0x1b0f   :  { %10195 = vmatpush3.bf16.msra.mxu0 %v10192_v60  ;;  %10863 = vpow2.f32 %v7331_v4 }
0x1b10   :  { %v12650_v26 = vpop.eup %10857 }
0x1b11   :  { %v7344_v28 = vsel %vm567_vm3, %v12650_v26, 0.0 }
0x1b12   :  { %7345 = vadd.xlane.f32.xlu0 %v7344_v28  ;;  %7348 = vadd.xlane.f32.xlu1 %v7347_v34 }
0x1b14   :  { %v10860_v48 = vpop.eup %10859 }
0x1b15   :  { %v7350_v2 = vsel %vm567_vm3, %v10860_v48, 0.0 }
0x1b16   :  { %7351 = vadd.xlane.f32.xlu0 %v7350_v2 }
0x1b18   :  { %v12657_v47 = vpop.eup %10861 }
0x1b19   :  { %v7356_v25 = vsel %vm567_vm3, %v12657_v47, 0.0  ;;  %v12661_v35 = vpop.eup %10863 }
0x1b1a   :  { %7357 = vadd.xlane.f32.xlu0 %v7356_v25  ;;  %v7353_v46 = vsel %vm567_vm3, %v12661_v35, 0.0 }
0x1b1e   :  { %7354 = vadd.xlane.f32.xlu0 %v7353_v46 }
0x1b23   :  { %10584 = vrot.lane.b32.xlu1 %v12163_v27, %s13166_s19 }
0x1b27   :  { %10589 = vrot.lane.b32.xlu1 %v12175_v30, %s13166_s19 }
0x1b2b   :  { %6051 = vrot.lane.b32.xlu1 %v12497_v20, %s13167_s20 }
0x1b2f   :  { %6053 = vrot.lane.b32.xlu1 %v12495_v10, %s13167_s20 }
0x1b33   :  { %6893 = vrot.lane.b32.xlu1 %v12613_v53, %s13168_s21 }
0x1b34   :  { %10579 = vrot.lane.b32.xlu0 %v12159_v7, %s13166_s19 }
0x1b37   :  { %6057 = vrot.lane.b32.xlu1 %v12499_v21, %s13167_s20 }
0x1b38   :  { %6891 = vrot.lane.b32.xlu0 %v12615_v8, %s13168_s21 }
0x1b3b   :  { %6897 = vrot.lane.b32.xlu1 %v12617_v11, %s13168_s21 }
0x1b3c   :  { %6055 = vrot.lane.b32.xlu0 %v12501_v54, %s13167_s20 }
0x1b3f   :  { %6061 = vrot.lane.b32.xlu1 %v12503_v9, %s13167_s20 }
0x1b40   :  { %6895 = vrot.lane.b32.xlu0 %v12619_v14, %s13168_s21 }
0x1b44   :  { %6059 = vrot.lane.b32.xlu0 %v12505_v39, %s13167_s20 }
0x1b65   :  { %v7340_v7 = vpop.xlane.xlu0 %7339 }
0x1b66   :  { %10865 = vrcp.f32 %v7340_v7  ;;  %v7337_v27 = vpop.xlane.xlu1 %7336 }
0x1b67   :  { %10867 = vrcp.f32 %v7337_v27  ;;  %v8808_v27 = vld [vmem:[%s13136_s3 + $0x28] sm:$0xff] }
0x1b70   :  { %v10866_v30 = vpop.eup %10865 }
0x1b71   :  { %v10868_v10 = vpop.eup %10867  ;;  %v7368_v21 = vmul.f32 %v10866_v30, %v12639_v45 }
0x1b72   :  { %v7367_v20 = vmul.f32 %v10868_v10, %v12641_v57  ;;  %v8809_v10 = vld [vmem:[%s13136_s3 + $0x30] sm:$0xff] }
0x1b74   :  { %9780 = vmatprep.mubr.msk.f32.mxu0 %vm567_vm3, %v7367_v20  ;;  %v8810_v20 = vld [vmem:[%s13136_s3 + $0x38] sm:$0xff] }
0x1b75   :  { %9781 = vmatmul.mubr.msk.f32.vlgmr.msra.gmra.mrb[80].mxu0 %vm567_vm3, %v7368_v21  ;;  %v10212_v21 = vpack.c.bf16 %v8810_v20, %v8809_v10 }
0x1b9b   :  { %v7343_v54 = vpop.xlane.xlu1 %7342 }
0x1b9c   :  { %10869 = vrcp.f32 %v7343_v54 }
0x1b9f   :  { %v7346_v9 = vpop.xlane.xlu0 %7345  ;;  %v7349_v53 = vpop.xlane.xlu1 %7348 }
0x1ba0   :  { %10871 = vrcp.f32 %v7349_v53 }
0x1ba3   :  { %v7352_v39 = vpop.xlane.xlu0 %7351  ;;  %v10585_v8 = vpop.permute.xlu1 %10584 }
0x1ba4   :  { %10873 = vrcp.f32 %v7352_v39  ;;  %v10587_v11 = vunpack.i.h.bf16 %v10585_v8  ;;  %v10586_v14 = vunpack.i.l.bf16 %v10585_v8 }
0x1ba5   :  { %10875 = vrcp.f32 %v7346_v9 }
0x1ba6   :  { %v10870_v1 = vpop.eup %10869  ;;  %v10200_v43 = vpack.c.bf16 %v10587_v11, %v10586_v14 }
0x1ba7   :  { %v7358_v23 = vpop.xlane.xlu0 %7357  ;;  %v10590_v57 = vpop.permute.xlu1 %10589  ;;  %v7369_v50 = vmul.f32 %v10870_v1, %v10854_v63 }
0x1ba8   :  { %10201 = vmatprep.subr.bf16.mxu0 %v10200_v43  ;;  %v10592_v61 = vunpack.i.h.bf16 %v10590_v57  ;;  %v10591_v22 = vunpack.i.l.bf16 %v10590_v57 }
0x1ba9   :  { %9787 = vmatprep.mubr.msk.f32.mxu1 %vm567_vm3, %v7369_v50  ;;  %10203 = vmatpush3.bf16.msra.mxu0 %v10200_v43 }
0x1baa   :  { %v10872_v45 = vpop.eup %10871  ;;  %v10204_v60 = vpack.c.bf16 %v10592_v61, %v10591_v22 }
0x1bab   :  { %v7355_v32 = vpop.xlane.xlu0 %7354  ;;  %v6052_v40 = vpop.permute.xlu1 %6051  ;;  %v7371_v31 = vmul.f32 %v10872_v45, %v12648_v59 }
0x1bac   :  { %10877 = vrcp.f32 %v7355_v32  ;;  %6075 = vst.msk [vmem:[#allocation2] sm:$0xff] %vm1844_vm4, %v6052_v40 }
0x1bad   :  { %10879 = vrcp.f32 %v7358_v23  ;;  %9794 = vmatprep.mubr.msk.f32.mxu0 %vm567_vm3, %v7371_v31 }
0x1bae   :  { %v10874_v24 = vpop.eup %10873 }
0x1baf   :  { %v7372_v44 = vmul.f32 %v10874_v24, %v10860_v48  ;;  %v10580_v42 = vpop.permute.xlu0 %10579  ;;  %v6054_v6 = vpop.permute.xlu1 %6053 }
0x1bb0   :  { %v10582_v38 = vunpack.i.h.bf16 %v10580_v42  ;;  %v10581_v62 = vunpack.i.l.bf16 %v10580_v42  ;;  %6076 = vst.msk [vmem:[#allocation2 + $0x8] sm:$0xff] %vm1844_vm4, %v6054_v6  ;;  %v10876_v63 = vpop.eup %10875 }
0x1bb1   :  { %9795 = vmatmul.mubr.msk.f32.vlgmr.msra.gmra.mrb[82].mxu0 %vm567_vm3, %v7372_v44  ;;  %v7370_v59 = vmul.f32 %v10876_v63, %v12650_v26 }
0x1bb2   :  { %v10196_v29 = vpack.c.bf16 %v10582_v38, %v10581_v62 }
0x1bb3   :  { %v6892_v4 = vpop.permute.xlu0 %6891  ;;  %v6894_v13 = vpop.permute.xlu1 %6893 }
0x1bb4   :  { %6915 = vst.msk [vmem:[#allocation2] sm:$0xff] %vm2685_vm5, %v6892_v4  ;;  %6916 = vst.msk [vmem:[#allocation2 + $0x8] sm:$0xff] %vm2685_vm5, %v6894_v13  ;;  %10197 = vmatprep.subr.bf16.mxu1 %v10196_v29 }
0x1bb5   :  { %10199 = vmatpush3.bf16.msra.mxu1 %v10196_v29  ;;  %v8812_v29 = vld [vmem:[%s13137_s4 + $0x1] ss:$0 sm:$0xff] }
0x1bb6   :  { %v10878_v16 = vpop.eup %10877  ;;  %10205 = vmatprep.subr.bf16.mxu1 %v10204_v60 }
0x1bb7   :  { %v10880_v28 = vpop.eup %10879  ;;  %v6056_v34 = vpop.permute.xlu0 %6055  ;;  %v7373_v2 = vmul.f32 %v10878_v16, %v12661_v35 }
0x1bb8   :  { %v6058_v48 = vpop.permute.xlu1 %6057  ;;  %6077 = vst.msk [vmem:[#allocation2 + $0x10] sm:$0xff] %vm1844_vm4, %v6056_v34  ;;  %9788 = vmatmul.mubr.msk.f32.vlgmr.msra.gmra.mrb[96].mxu1 %vm567_vm3, %v7370_v59  ;;  %v7374_v25 = vmul.f32 %v10880_v28, %v12657_v47  ;;  %v8807_v47 = vld [vmem:[%s13136_s3 + $0x20] sm:$0xff] }
0x1bb9   :  { %6078 = vst.msk [vmem:[#allocation2 + $0x18] sm:$0xff] %vm1844_vm4, %v6058_v48  ;;  %10207 = vmatpush3.bf16.msra.mxu1 %v10204_v60  ;;  %9801 = vmatprep.mubr.msk.f32.mxu1 %vm567_vm3, %v7373_v2  ;;  %v10208_v30 = vpack.c.bf16 %v8808_v27, %v8807_v47 }
0x1bbb   :  { %v6896_v46 = vpop.permute.xlu0 %6895  ;;  %10209 = vmatprep.subr.bf16.mxu0 %v10208_v30 }
0x1bbc   :  { %v6898_v7 = vpop.permute.xlu1 %6897  ;;  %6917 = vst.msk [vmem:[#allocation2 + $0x10] sm:$0xff] %vm2685_vm5, %v6896_v46  ;;  %9802 = vmatmul.mubr.msk.f32.vlgmr.msra.gmra.mrb[98].mxu1 %vm567_vm3, %v7374_v25  ;;  %10211 = vmatpush3.bf16.msra.mxu0 %v10208_v30 }
0x1bbd   :  { %6918 = vst.msk [vmem:[#allocation2 + $0x18] sm:$0xff] %vm2685_vm5, %v6898_v7  ;;  %8167 = vmatprep.mubr.f32.mxu1 %v10959_v55  ;;  %10213 = vmatprep.subr.bf16.mxu0 %v10212_v21 }
0x1bbf   :  { %v6060_v26 = vpop.permute.xlu0 %6059 }
0x1bc0   :  { %v6062_v35 = vpop.permute.xlu1 %6061  ;;  %6079 = vst.msk [vmem:[#allocation2 + $0x20] sm:$0xff] %vm1844_vm4, %v6060_v26  ;;  %10215 = vmatpush3.bf16.msra.mxu0 %v10212_v21 }
0x1bc1   :  { %6080 = vst.msk [vmem:[#allocation2 + $0x28] sm:$0xff] %vm1844_vm4, %v6062_v35 }
0x1c48   :  { %v9782_v54 = vpop.f32.mrb[80].mxu0 }
0x1c49   :  { %7733 = vrot.lane.b32.xlu1 %v9782_v54, %s13169_s1  ;;  %v7453_v9 = vpop.f32.mrb[81].mxu0 }
0x1c4a   :  { %7731 = vrot.lane.b32.xlu0 %v7453_v9, %s13169_s1 }
0x1c4d   :  { %6901 = vrot.lane.b32.xlu1 %v12621_v56, %s13168_s21 }
0x1c4e   :  { %6899 = vrot.lane.b32.xlu0 %v12623_v12, %s13168_s21 }
0x1c84   :  { %v9796_v53 = vpop.f32.mrb[82].mxu0 }
0x1c85   :  { %v7627_v39 = vpop.f32.mrb[83].mxu0 }
0x1c8b   :  { %v9789_v8 = vpop.f32.mrb[96].mxu1 }
0x1c8c   :  { %v7540_v11 = vpop.f32.mrb[97].mxu1  ;;  %7737 = vrot.lane.b32.xlu1 %v9789_v8, %s13169_s1 }
0x1c8d   :  { %7735 = vrot.lane.b32.xlu0 %v7540_v11, %s13169_s1 }
0x1c8f   :  { %v9803_v14 = vpop.f32.mrb[98].mxu1 }
0x1c90   :  { %v7714_v1 = vpop.f32.mrb[99].mxu1  ;;  %7741 = vrot.lane.b32.xlu1 %v9796_v53, %s13169_s1 }
0x1c91   :  { %6063 = vrot.lane.b32.xlu0 %v12512_v3, %s13167_s20 }
0x1c94   :  { %6065 = vrot.lane.b32.xlu1 %v12510_v51, %s13167_s20 }
0x1c95   :  { %7739 = vrot.lane.b32.xlu0 %v7627_v39, %s13169_s1 }
0x1c98   :  { %6905 = vrot.lane.b32.xlu1 %v12627_v58, %s13168_s21 }
0x1c99   :  { %6903 = vrot.lane.b32.xlu0 %v12630_v19, %s13168_s21 }
0x1c9c   :  { %7745 = vrot.lane.b32.xlu1 %v9803_v14, %s13169_s1 }
0x1c9d   :  { %7743 = vrot.lane.b32.xlu0 %v7714_v1, %s13169_s1 }
0x1cbb   :  { %v7734_v56 = vpop.permute.xlu1 %7733 }
0x1cbc   :  { %7756 = vst.msk [vmem:[#allocation2 + $0x8] sm:$0xff] %vm3526_vm6, %v7734_v56  ;;  %v7732_v12 = vpop.permute.xlu0 %7731 }
0x1cbd   :  { %7755 = vst.msk [vmem:[#allocation2] sm:$0xff] %vm3526_vm6, %v7732_v12 }
0x1cbf   :  { %v6902_v3 = vpop.permute.xlu1 %6901 }
0x1cc0   :  { %6920 = vst.msk [vmem:[#allocation2 + $0x28] sm:$0xff] %vm2685_vm5, %v6902_v3  ;;  %v6900_v51 = vpop.permute.xlu0 %6899 }
0x1cc1   :  { %6919 = vst.msk [vmem:[#allocation2 + $0x20] sm:$0xff] %vm2685_vm5, %v6900_v51 }
0x1cc3   :  { %v7764_v19 = vld [vmem:[#allocation2 + $0x8] sm:$0xff] }
0x1cc4   :  { %v7763_v58 = vld [vmem:[#allocation2] sm:$0xff] }
0x1cc5   :  { %9812 = vmatprep.mubr.msk.f32.mxu0 %vm64_vm0, %v7763_v58 }
0x1cc6   :  { %9813 = vmatmul.mubr.msk.f32.vlgmr.msra.gmra.mrb[84].mxu0 %vm64_vm0, %v7764_v19  ;;  %v8826_v19 = vld [vmem:[%s13138_s5 + $0x48] sm:$0xff] }
0x1cfe   :  { %v7738_v43 = vpop.permute.xlu1 %7737 }
0x1cff   :  { %7758 = vst.msk [vmem:[#allocation2 + $0x18] sm:$0xff] %vm3526_vm6, %v7738_v43  ;;  %v7736_v23 = vpop.permute.xlu0 %7735  ;;  %v8828_v43 = vld [vmem:[%s13138_s5 + $0x58] sm:$0xff] }
0x1d00   :  { %7757 = vst.msk [vmem:[#allocation2 + $0x10] sm:$0xff] %vm3526_vm6, %v7736_v23  ;;  %v10216_v23 = vpack.c.bf16 %v8828_v43, %v8826_v19  ;;  %v8847_v19 = vld [vmem:[%s13140_s7 + $0x128] sm:$0xff]  ;;  %v8864_v43 = vld [vmem:[%s13140_s7 + $0x1b0] sm:$0xff] }
0x1d02   :  { %v7742_v57 = vpop.permute.xlu1 %7741  ;;  %10217 = vmatprep.subr.bf16.mxu1 %v10216_v23  ;;  %v8865_v23 = vld [vmem:[%s13140_s7 + $0x1b8] sm:$0xff] }
0x1d03   :  { %7760 = vst.msk [vmem:[#allocation2 + $0x28] sm:$0xff] %vm3526_vm6, %v7742_v57  ;;  %v6064_v50 = vpop.permute.xlu0 %6063  ;;  %v8825_v57 = vld [vmem:[%s13138_s5 + $0x40] sm:$0xff] }
0x1d04   :  { %6081 = vst.msk [vmem:[#allocation2 + $0x30] sm:$0xff] %vm1844_vm4, %v6064_v50  ;;  %v8827_v50 = vld [vmem:[%s13138_s5 + $0x50] sm:$0xff] }
0x1d06   :  { %v6066_v45 = vpop.permute.xlu1 %6065  ;;  %v7766_v31 = vld [vmem:[#allocation2 + $0x18] sm:$0xff] }
0x1d07   :  { %6082 = vst.msk [vmem:[#allocation2 + $0x38] sm:$0xff] %vm1844_vm4, %v6066_v45  ;;  %v7740_v32 = vpop.permute.xlu0 %7739  ;;  %v7765_v40 = vld [vmem:[#allocation2 + $0x10] sm:$0xff]  ;;  %v10218_v45 = vpack.c.bf16 %v8827_v50, %v8825_v57  ;;  %v10236_v50 = vpack.c.bf16 %v8865_v23, %v8864_v43 }
0x1d08   :  { %7759 = vst.msk [vmem:[#allocation2 + $0x20] sm:$0xff] %vm3526_vm6, %v7740_v32  ;;  %9815 = vmatprep.mubr.msk.f32.mxu0 %vm64_vm0, %v7765_v40  ;;  %v8830_v32 = vld [vmem:[%s13138_s5 + $0x68] sm:$0xff]  ;;  %v8832_v40 = vld [vmem:[%s13138_s5 + $0x78] sm:$0xff] }
0x1d09   :  { %9816 = vmatmul.mubr.msk.f32.gmra.mrb[86].mxu0 %vm64_vm0, %v7766_v31  ;;  %10219 = vmatpush1.bf16.msra.mxu1 %v10218_v45  ;;  %v8829_v31 = vld [vmem:[%s13138_s5 + $0x60] sm:$0xff]  ;;  %v8848_v45 = vld [vmem:[%s13140_s7 + $0x130] sm:$0xff] }
0x1d0a   :  { %v6906_v24 = vpop.permute.xlu1 %6905  ;;  %v7768_v22 = vld [vmem:[#allocation2 + $0x28] sm:$0xff] }
0x1d0b   :  { %6922 = vst.msk [vmem:[#allocation2 + $0x38] sm:$0xff] %vm2685_vm5, %v6906_v24  ;;  %v6904_v44 = vpop.permute.xlu0 %6903  ;;  %v10220_v24 = vpack.c.bf16 %v8832_v40, %v8830_v32  ;;  %v8849_v32 = vld [vmem:[%s13140_s7 + $0x138] sm:$0xff]  ;;  %v8866_v40 = vld [vmem:[%s13140_s7 + $0x1c0] sm:$0xff] }
0x1d0c   :  { %6921 = vst.msk [vmem:[#allocation2 + $0x30] sm:$0xff] %vm2685_vm5, %v6904_v44  ;;  %v8831_v44 = vld [vmem:[%s13138_s5 + $0x70] sm:$0xff] }
0x1d0d   :  { %10221 = vmatprep.subr.bf16.mxu1 %v10220_v24  ;;  %v10238_v24 = vpack.c.bf16 %v8849_v32, %v8848_v45 }
0x1d0e   :  { %v7746_v42 = vpop.permute.xlu1 %7745 }
0x1d0f   :  { %7762 = vst.msk [vmem:[#allocation2 + $0x38] sm:$0xff] %vm3526_vm6, %v7746_v42  ;;  %v7744_v6 = vpop.permute.xlu0 %7743  ;;  %v7767_v61 = vld [vmem:[#allocation2 + $0x20] sm:$0xff]  ;;  %v10222_v42 = vpack.c.bf16 %v8831_v44, %v8829_v31  ;;  %v8867_v31 = vld [vmem:[%s13140_s7 + $0x1c8] sm:$0xff] }
0x1d10   :  { %7761 = vst.msk [vmem:[#allocation2 + $0x30] sm:$0xff] %vm3526_vm6, %v7744_v6  ;;  %9818 = vmatprep.mubr.msk.f32.mxu0 %vm64_vm0, %v7767_v61  ;;  %v10240_v44 = vpack.c.bf16 %v8867_v31, %v8866_v40 }
0x1d11   :  { %9819 = vmatmul.mubr.msk.f32.gmra.mrb[88].mxu0 %vm64_vm0, %v7768_v22  ;;  %10223 = vmatpush1.bf16.msra.mxu1 %v10222_v42  ;;  %v8850_v42 = vld [vmem:[%s13140_s7 + $0x140] sm:$0xff] }
0x1d16   :  { %v7770_v62 = vld [vmem:[#allocation2 + $0x38] sm:$0xff] }
0x1d17   :  { %v7769_v38 = vld [vmem:[#allocation2 + $0x30] sm:$0xff] }
0x1d18   :  { %9821 = vmatprep.mubr.msk.f32.mxu0 %vm64_vm0, %v7769_v38 }
0x1d19   :  { %9822 = vmatmul.mubr.msk.f32.gmra.mrb[90].mxu0 %vm64_vm0, %v7770_v62 }
0x1d99   :  { %v9814_v63 = vpop.f32.mrb[84].mxu0 }
0x1d9a   :  { %v7880_v4 = vadd.f32 %v9814_v63, %v8812_v29  ;;  %v7874_v13 = vpop.f32.mrb[85].mxu0 }
0x1d9b   :  { %v7875_v60 = vadd.f32 %v8812_v29, %v7874_v13 }
0x1d9c   :  { %v7914_v16 = vadd.f32 %v7880_v4, %v12114_v15 }
0x1d9d   :  { %v7913_v59 = vadd.f32 %v7875_v60, %v12110_v18 }
0x1d9e   :  { %v7928_v28 = vsel %vm64_vm0, %v7914_v16, 0.0 }
0x1d9f   :  { %7929 = vadd.xlane.f32.xlu1 %v7928_v28  ;;  %v7925_v34 = vsel %vm64_vm0, %v7913_v59, 0.0 }
0x1da0   :  { %7926 = vadd.xlane.f32.xlu0 %v7925_v34 }
0x1ddc   :  { %v9817_v48 = vpop.f32.mrb[86].mxu0 }
0x1ddd   :  { %v7884_v2 = vpop.f32.mrb[87].mxu0  ;;  %v7890_v25 = vadd.f32 %v9817_v48, %v8812_v29 }
0x1dde   :  { %v7885_v46 = vadd.f32 %v8812_v29, %v7884_v2 }
0x1ddf   :  { %v7916_v26 = vadd.f32 %v7890_v25, %v12124_v17 }
0x1de0   :  { %v7915_v7 = vadd.f32 %v7885_v46, %v12119_v36 }
0x1de1   :  { %v7934_v30 = vsel %vm64_vm0, %v7916_v26, 0.0 }
0x1de2   :  { %v7931_v35 = vsel %vm64_vm0, %v7915_v7, 0.0 }
0x1de3   :  { %7932 = vadd.xlane.f32.xlu0 %v7931_v35 }
0x1de4   :  { %v9820_v15 = vpop.f32.mrb[88].mxu0 }
0x1de5   :  { %v7900_v47 = vadd.f32 %v9820_v15, %v8812_v29  ;;  %v7894_v18 = vpop.f32.mrb[89].mxu0 }
0x1de6   :  { %v7895_v27 = vadd.f32 %v8812_v29, %v7894_v18 }
0x1de7   :  { %v7918_v10 = vadd.f32 %v7900_v47, %v12134_v49  ;;  %7935 = vadd.xlane.f32.xlu0 %v7934_v30 }
0x1de8   :  { %v7917_v20 = vadd.f32 %v7895_v27, %v12129_v0 }
0x1de9   :  { %v7940_v21 = vsel %vm64_vm0, %v7918_v10, 0.0 }
0x1dea   :  { %v7937_v36 = vsel %vm64_vm0, %v7917_v20, 0.0 }
0x1deb   :  { %7938 = vadd.xlane.f32.xlu1 %v7937_v36  ;;  %7941 = vadd.xlane.f32.xlu0 %v7940_v21 }
0x1dec   :  { %v9823_v17 = vpop.f32.mrb[90].mxu0 }
0x1ded   :  { %v7910_v54 = vadd.f32 %v9823_v17, %v8812_v29  ;;  %v7904_v9 = vpop.f32.mrb[91].mxu0  ;;  %v8858_v17 = vld [vmem:[%s13140_s7 + $0x180] sm:$0xff] }
0x1dee   :  { %v7905_v53 = vadd.f32 %v8812_v29, %v7904_v9  ;;  %v8842_v9 = vld [vmem:[%s13140_s7 + $0x100] sm:$0xff] }
0x1def   :  { %v7920_v39 = vadd.f32 %v7910_v54, %v12144_v5  ;;  %v8859_v54 = vld [vmem:[%s13140_s7 + $0x188] sm:$0xff] }
0x1df0   :  { %v7919_v8 = vadd.f32 %v7905_v53, %v12139_v41  ;;  %v10224_v53 = vpack.c.bf16 %v8859_v54, %v8858_v17 }
0x1df1   :  { %v7946_v11 = vsel %vm64_vm0, %v7920_v39, 0.0 }
0x1df2   :  { %7947 = vadd.xlane.f32.xlu0 %v7946_v11  ;;  %v7943_v49 = vsel %vm64_vm0, %v7919_v8, 0.0  ;;  %v8861_v11 = vld [vmem:[%s13140_s7 + $0x198] sm:$0xff]  ;;  %10225 = vmatprep.subr.bf16.mxu0 %v10224_v53 }
0x1df3   :  { %7944 = vadd.xlane.f32.xlu1 %v7943_v49 }
0x1e2c   :  { %v7930_v0 = vpop.xlane.xlu1 %7929 }
0x1e2d   :  { %v7950_v14 = vmul.f32 0.03125, %v7930_v0  ;;  %v7927_v1 = vpop.xlane.xlu0 %7926 }
0x1e2e   :  { %v7949_v56 = vmul.f32 0.03125, %v7927_v1  ;;  %v8845_v1 = vld [vmem:[%s13140_s7 + $0x118] sm:$0xff] }
0x1e2f   :  { %v12789_v12 = vsub.f32 %v7914_v16, %v7950_v14  ;;  %v8844_v14 = vld [vmem:[%s13140_s7 + $0x110] sm:$0xff] }
0x1e30   :  { %v12791_v3 = vsub.f32 %v7913_v59, %v7949_v56  ;;  %v8862_v56 = vld [vmem:[%s13140_s7 + $0x1a0] sm:$0xff] }
0x1e31   :  { %v7966_v51 = vmul.f32 %v12789_v12, %v12789_v12 }
0x1e32   :  { %v7965_v41 = vmul.f32 %v12791_v3, %v12791_v3 }
0x1e33   :  { %v7976_v5 = vsel %vm64_vm0, %v7966_v51, 0.0  ;;  %v8863_v51 = vld [vmem:[%s13140_s7 + $0x1a8] sm:$0xff] }
0x1e34   :  { %7977 = vadd.xlane.f32.xlu0 %v7976_v5  ;;  %v7973_v58 = vsel %vm64_vm0, %v7965_v41, 0.0  ;;  %v10230_v41 = vpack.c.bf16 %v8845_v1, %v8844_v14  ;;  %v10232_v5 = vpack.c.bf16 %v8863_v51, %v8862_v56 }
0x1e35   :  { %7974 = vadd.xlane.f32.xlu1 %v7973_v58  ;;  %v8846_v58 = vld [vmem:[%s13140_s7 + $0x120] sm:$0xff] }
0x1e36   :  { %v10234_v57 = vpack.c.bf16 %v8847_v19, %v8846_v58 }
0x1e70   :  { %v7933_v6 = vpop.xlane.xlu0 %7932 }
0x1e71   :  { %v7951_v61 = vmul.f32 0.03125, %v7933_v6  ;;  %v8851_v6 = vld [vmem:[%s13140_s7 + $0x148] sm:$0xff] }
0x1e73   :  { %v12823_v22 = vsub.f32 %v7915_v7, %v7951_v61  ;;  %v8868_v61 = vld [vmem:[%s13140_s7 + $0x1d0] sm:$0xff] }
0x1e74   :  { %v7936_v38 = vpop.xlane.xlu0 %7935 }
0x1e75   :  { %v7952_v62 = vmul.f32 0.03125, %v7936_v38  ;;  %v7967_v29 = vmul.f32 %v12823_v22, %v12823_v22  ;;  %v8869_v38 = vld [vmem:[%s13140_s7 + $0x1d8] sm:$0xff] }
0x1e77   :  { %v12827_v63 = vsub.f32 %v7916_v26, %v7952_v62  ;;  %v7979_v4 = vsel %vm64_vm0, %v7967_v29, 0.0  ;;  %v10242_v62 = vpack.c.bf16 %v8851_v6, %v8850_v42  ;;  %v10244_v29 = vpack.c.bf16 %v8869_v38, %v8868_v61 }
0x1e78   :  { %v7939_v13 = vpop.xlane.xlu1 %7938  ;;  %7980 = vadd.xlane.f32.xlu1 %v7979_v4  ;;  %v7942_v60 = vpop.xlane.xlu0 %7941  ;;  %v8852_v4 = vld [vmem:[%s13140_s7 + $0x150] sm:$0xff] }
0x1e79   :  { %v7953_v16 = vmul.f32 0.03125, %v7939_v13  ;;  %v7954_v59 = vmul.f32 0.03125, %v7942_v60  ;;  %v7968_v28 = vmul.f32 %v12827_v63, %v12827_v63  ;;  %v8853_v13 = vld [vmem:[%s13140_s7 + $0x158] sm:$0xff] }
0x1e7b   :  { %v12832_v34 = vsub.f32 %v7917_v20, %v7953_v16  ;;  %v12834_v48 = vsub.f32 %v7918_v10, %v7954_v59  ;;  %v7982_v2 = vsel %vm64_vm0, %v7968_v28, 0.0  ;;  %v8870_v16 = vld [vmem:[%s13140_s7 + $0x1e0] sm:$0xff]  ;;  %v8871_v59 = vld [vmem:[%s13140_s7 + $0x1e8] sm:$0xff] }
0x1e7c   :  { %7983 = vadd.xlane.f32.xlu0 %v7982_v2 }
0x1e7d   :  { %v7969_v25 = vmul.f32 %v12832_v34, %v12832_v34  ;;  %v7970_v46 = vmul.f32 %v12834_v48, %v12834_v48 }
0x1e7f   :  { %v7948_v7 = vpop.xlane.xlu0 %7947  ;;  %v7985_v26 = vsel %vm64_vm0, %v7969_v25, 0.0  ;;  %v7988_v35 = vsel %vm64_vm0, %v7970_v46, 0.0  ;;  %v10246_v46 = vpack.c.bf16 %v8853_v13, %v8852_v4 }
0x1e80   :  { %v7956_v15 = vmul.f32 0.03125, %v7948_v7  ;;  %v7945_v47 = vpop.xlane.xlu1 %7944  ;;  %7986 = vadd.xlane.f32.xlu1 %v7985_v26  ;;  %7989 = vadd.xlane.f32.xlu0 %v7988_v35  ;;  %v10248_v26 = vpack.c.bf16 %v8871_v59, %v8870_v16 }
0x1e81   :  { %v7955_v18 = vmul.f32 0.03125, %v7945_v47 }
0x1e82   :  { %v12843_v27 = vsub.f32 %v7920_v39, %v7956_v15  ;;  %v8843_v39 = vld [vmem:[%s13140_s7 + $0x108] sm:$0xff] }
0x1e83   :  { %v12845_v30 = vsub.f32 %v7919_v8, %v7955_v18  ;;  %v8860_v8 = vld [vmem:[%s13140_s7 + $0x190] sm:$0xff]  ;;  %v10226_v49 = vpack.c.bf16 %v8843_v39, %v8842_v9  ;;  %v12934_v18 = vld [vmem:[%s13142_s9 + $0x1] ss:$0 sm:$0xff] }
0x1e84   :  { %v7972_v10 = vmul.f32 %v12843_v27, %v12843_v27  ;;  %v10228_v0 = vpack.c.bf16 %v8861_v11, %v8860_v8 }
0x1e85   :  { %v7971_v20 = vmul.f32 %v12845_v30, %v12845_v30  ;;  %10227 = vmatpush3.bf16.msra.mxu0 %v10226_v49 }
0x1e86   :  { %v7994_v21 = vsel %vm64_vm0, %v7972_v10, 0.0  ;;  %10229 = vmatprep.subr.bf16.mxu0 %v10228_v0 }
0x1e87   :  { %7995 = vadd.xlane.f32.xlu0 %v7994_v21  ;;  %v7991_v36 = vsel %vm64_vm0, %v7971_v20, 0.0  ;;  %v12941_v21 = vld [vmem:[%s13143_s10 + $0x1] ss:$0 sm:$0xff] }
0x1e88   :  { %7992 = vadd.xlane.f32.xlu1 %v7991_v36 }
0x1e89   :  { %10231 = vmatpush3.bf16.msra.mxu0 %v10230_v41 }
0x1e8a   :  { %10233 = vmatprep.subr.bf16.mxu0 %v10232_v5 }
0x1e8d   :  { %10235 = vmatpush3.bf16.msra.mxu0 %v10234_v57 }
0x1e8e   :  { %10237 = vmatprep.subr.bf16.mxu0 %v10236_v50 }
0x1e91   :  { %10239 = vmatpush3.bf16.msra.mxu0 %v10238_v24 }
0x1e92   :  { %10241 = vmatprep.subr.bf16.mxu0 %v10240_v44 }
0x1e95   :  { %10243 = vmatpush3.bf16.msra.mxu0 %v10242_v62 }
0x1e96   :  { %10245 = vmatprep.subr.bf16.mxu0 %v10244_v29 }
0x1e99   :  { %10247 = vmatpush3.bf16.msra.mxu0 %v10246_v46 }
0x1e9a   :  { %10249 = vmatprep.subr.bf16.mxu0 %v10248_v26  ;;  %v8856_v26 = vld [vmem:[%s13140_s7 + $0x170] sm:$0xff] }
0x1ec1   :  { %v7978_v60 = vpop.xlane.xlu0 %7977 }
0x1ec2   :  { %v7998_v28 = vmul.f32 0.03125, %v7978_v60  ;;  %v7975_v2 = vpop.xlane.xlu1 %7974 }
0x1ec3   :  { %v7997_v25 = vmul.f32 0.03125, %v7975_v2  ;;  %v8872_v2 = vld [vmem:[%s13140_s7 + $0x1f0] sm:$0xff] }
0x1ec4   :  { %v8006_v7 = vadd.f32 1e-05, %v7998_v28  ;;  %v8854_v28 = vld [vmem:[%s13140_s7 + $0x160] sm:$0xff] }
0x1ec5   :  { %v8005_v35 = vadd.f32 1e-05, %v7997_v25  ;;  %v8873_v25 = vld [vmem:[%s13140_s7 + $0x1f8] sm:$0xff] }
0x1ec6   :  { %10881 = vrsqrt.f32 %v8006_v7  ;;  %v10252_v7 = vpack.c.bf16 %v8873_v25, %v8872_v2 }
0x1ec7   :  { %10883 = vrsqrt.f32 %v8005_v35 }
0x1ed0   :  { %v10882_v15 = vpop.eup %10881 }
0x1ed1   :  { %v10884_v47 = vpop.eup %10883  ;;  %v8022_v20 = vmul.f32 %v10882_v15, %v12789_v12  ;;  %v8833_v15 = vld [vmem:[%s13139_s6 + $0x2] sm:$0x3] }
0x1ed2   :  { %v8021_v10 = vmul.f32 %v10884_v47, %v12791_v3  ;;  %v8072_v47 = vrot.slane %v8833_v15, %v3838_v37 }
0x1ed3   :  { %v8036_v54 = vmul.f32 %v12934_v18, %v8022_v20 }
0x1ed4   :  { %v8035_v36 = vmul.f32 %v12934_v18, %v8021_v10 }
0x1ed5   :  { %v12952_v3 = vadd.f32 %v12941_v21, %v8036_v54 }
0x1ed6   :  { %v12945_v17 = vadd.f32 %v12941_v21, %v8035_v36 }
0x1ed8   :  { %8834 = vmatmul.mubr.msk.f32.vlgmr.msra.gmra.mrb[100].mxu1 %vm64_vm0, %v12945_v17 }
0x1ed9   :  { %8173 = vmatprep.mubr.f32.mxu1 %v10959_v55 }
0x1edc   :  { %8835 = vmatmul.mubr.msk.f32.gmra.mrb[102].mxu1 %vm64_vm0, %v12952_v3 }
0x1edd   :  { %8179 = vmatprep.mubr.f32.mxu1 %v10959_v55 }
0x1f05   :  { %v7981_v12 = vpop.xlane.xlu1 %7980 }
0x1f06   :  { %v7999_v9 = vmul.f32 0.03125, %v7981_v12 }
0x1f08   :  { %v8007_v53 = vadd.f32 1e-05, %v7999_v9 }
0x1f09   :  { %v7984_v39 = vpop.xlane.xlu0 %7983 }
0x1f0a   :  { %10885 = vrsqrt.f32 %v8007_v53  ;;  %v8000_v8 = vmul.f32 0.03125, %v7984_v39 }
0x1f0c   :  { %v8008_v11 = vadd.f32 1e-05, %v8000_v8 }
0x1f0d   :  { %v7987_v49 = vpop.xlane.xlu1 %7986  ;;  %v7990_v0 = vpop.xlane.xlu0 %7989 }
0x1f0e   :  { %10887 = vrsqrt.f32 %v8008_v11  ;;  %v8001_v14 = vmul.f32 0.03125, %v7987_v49  ;;  %v8002_v1 = vmul.f32 0.03125, %v7990_v0 }
0x1f10   :  { %v8009_v56 = vadd.f32 1e-05, %v8001_v14  ;;  %v8010_v51 = vadd.f32 1e-05, %v8002_v1 }
0x1f12   :  { %10889 = vrsqrt.f32 %v8009_v56 }
0x1f13   :  { %10891 = vrsqrt.f32 %v8010_v51 }
0x1f14   :  { %v10886_v41 = vpop.eup %10885  ;;  %v7996_v5 = vpop.xlane.xlu0 %7995 }
0x1f15   :  { %v8004_v58 = vmul.f32 0.03125, %v7996_v5  ;;  %v7993_v19 = vpop.xlane.xlu1 %7992  ;;  %v8023_v43 = vmul.f32 %v10886_v41, %v12823_v22 }
0x1f16   :  { %v8003_v23 = vmul.f32 0.03125, %v7993_v19 }
0x1f17   :  { %v8012_v57 = vadd.f32 1e-05, %v8004_v58  ;;  %v8037_v50 = vmul.f32 %v12934_v18, %v8023_v43 }
0x1f18   :  { %v10888_v45 = vpop.eup %10887  ;;  %v8011_v32 = vadd.f32 1e-05, %v8003_v23 }
0x1f19   :  { %10893 = vrsqrt.f32 %v8012_v57  ;;  %v12960_v40 = vadd.f32 %v12941_v21, %v8037_v50  ;;  %v8024_v31 = vmul.f32 %v10888_v45, %v12827_v63 }
0x1f1a   :  { %10895 = vrsqrt.f32 %v8011_v32 }
0x1f1b   :  { %8836 = vmatmul.mubr.msk.f32.gmra.mrb[104].mxu1 %vm64_vm0, %v12960_v40  ;;  %v8038_v24 = vmul.f32 %v12934_v18, %v8024_v31 }
0x1f1c   :  { %v10890_v44 = vpop.eup %10889  ;;  %8185 = vmatprep.mubr.f32.mxu1 %v10959_v55 }
0x1f1d   :  { %v10892_v22 = vpop.eup %10891  ;;  %v12968_v42 = vadd.f32 %v12941_v21, %v8038_v24  ;;  %v8025_v6 = vmul.f32 %v10890_v44, %v12832_v34 }
0x1f1e   :  { %v8026_v61 = vmul.f32 %v10892_v22, %v12834_v48 }
0x1f1f   :  { %8837 = vmatmul.mubr.msk.f32.gmra.mrb[106].mxu1 %vm64_vm0, %v12968_v42  ;;  %v8039_v63 = vmul.f32 %v12934_v18, %v8025_v6 }
0x1f20   :  { %8191 = vmatprep.mubr.f32.mxu1 %v10959_v55  ;;  %v8040_v62 = vmul.f32 %v12934_v18, %v8026_v61 }
0x1f21   :  { %v12977_v38 = vadd.f32 %v12941_v21, %v8039_v63 }
0x1f22   :  { %v12984_v34 = vadd.f32 %v12941_v21, %v8040_v62 }
0x1f23   :  { %v10894_v29 = vpop.eup %10893  ;;  %8838 = vmatmul.mubr.msk.f32.gmra.mrb[108].mxu1 %vm64_vm0, %v12977_v38 }
0x1f24   :  { %v10896_v4 = vpop.eup %10895  ;;  %8197 = vmatprep.mubr.f32.mxu1 %v10959_v55  ;;  %v8028_v13 = vmul.f32 %v10894_v29, %v12843_v27  ;;  %v8855_v27 = vld [vmem:[%s13140_s7 + $0x168] sm:$0xff] }
0x1f25   :  { %v8027_v48 = vmul.f32 %v10896_v4, %v12845_v30  ;;  %v10250_v30 = vpack.c.bf16 %v8855_v27, %v8854_v28 }
0x1f26   :  { %v8042_v59 = vmul.f32 %v12934_v18, %v8028_v13 }
0x1f27   :  { %8839 = vmatmul.mubr.msk.f32.gmra.mrb[110].mxu1 %vm64_vm0, %v12984_v34  ;;  %v8041_v60 = vmul.f32 %v12934_v18, %v8027_v48  ;;  %10251 = vmatpush3.bf16.msra.mxu0 %v10250_v30  ;;  %v8076_v18 = vrot.slane %v8833_v15, %v3842_v52 }
0x1f28   :  { %8203 = vmatprep.mubr.f32.mxu1 %v10959_v55  ;;  %v13012_v46 = vadd.f32 %v12941_v21, %v8042_v59  ;;  %10253 = vmatprep.subr.bf16.mxu0 %v10252_v7  ;;  %v8875_v7 = vld [vmem:[%s13141_s8 + $0x1] ss:$0 sm:$0xff] }
0x1f29   :  { %v12993_v16 = vadd.f32 %v12941_v21, %v8041_v60 }
0x1f2b   :  { %8840 = vmatmul.mubr.msk.f32.gmra.mrb[112].mxu1 %vm64_vm0, %v12993_v16 }
0x1f2c   :  { %8209 = vmatprep.mubr.f32.mxu1 %v10959_v55  ;;  %v8857_v55 = vld [vmem:[%s13140_s7 + $0x178] sm:$0xff] }
0x1f2d   :  { %v10254_v35 = vpack.c.bf16 %v8857_v55, %v8856_v26 }
0x1f2f   :  { %8841 = vmatmul.mubr.msk.f32.gmra.mrb[114].mxu1 %vm64_vm0, %v13012_v46  ;;  %10255 = vmatpush3.bf16.msra.mxu0 %v10254_v35 }
0x1fab   :  { %v8169_v10 = vpop.f32.mrb[100].mxu1 }
0x1fac   :  { %v8170_v20 = vadd.f32 %v8169_v10, %v8072_v47  ;;  %v8171_v21 = vpop.f32.mrb[101].mxu1 }
0x1fad   :  { %v8172_v36 = vadd.f32 %v8171_v21, %v8076_v18 }
0x1fae   :  { %v8216_v9 = vmax.f32 %v8170_v20, 0.0 }
0x1faf   :  { %v8217_v54 = vmax.f32 %v8172_v36, 0.0  ;;  %v8175_v12 = vpop.f32.mrb[102].mxu1 }
0x1fb0   :  { %v8176_v53 = vadd.f32 %v8175_v12, %v8072_v47  ;;  %v8177_v39 = vpop.f32.mrb[103].mxu1 }
0x1fb1   :  { %v8178_v8 = vadd.f32 %v8177_v39, %v8076_v18  ;;  %8337 = vmatprep.mubr.f32.mxu0 %v8217_v54 }
0x1fb2   :  { %8338 = vmatmul.mubr.f32.vlgmr.msra.gmra.mrb[92].mxu0 %v8216_v9  ;;  %v8218_v49 = vmax.f32 %v8176_v53, 0.0 }
0x1fb3   :  { %v8219_v11 = vmax.f32 %v8178_v8, 0.0 }
0x1fb5   :  { %8342 = vmatprep.mubr.f32.mxu0 %v8219_v11 }
0x1fb6   :  { %8343 = vmatmul.mubr.f32.gmra.mrb[94].mxu0 %v8218_v49 }
0x1fee   :  { %v8181_v37 = vpop.f32.mrb[104].mxu1 }
0x1fef   :  { %v8182_v0 = vadd.f32 %v8181_v37, %v8072_v47  ;;  %v8183_v33 = vpop.f32.mrb[105].mxu1 }
0x1ff0   :  { %v8184_v52 = vadd.f32 %v8183_v33, %v8076_v18 }
0x1ff1   :  { %v8220_v56 = vmax.f32 %v8182_v0, 0.0 }
0x1ff2   :  { %v8221_v14 = vmax.f32 %v8184_v52, 0.0  ;;  %v8187_v1 = vpop.f32.mrb[106].mxu1 }
0x1ff3   :  { %v8188_v51 = vadd.f32 %v8187_v1, %v8072_v47  ;;  %v8189_v41 = vpop.f32.mrb[107].mxu1 }
0x1ff4   :  { %v8190_v5 = vadd.f32 %v8189_v41, %v8076_v18  ;;  %8347 = vmatprep.mubr.f32.mxu0 %v8221_v14 }
0x1ff5   :  { %8348 = vmatmul.mubr.f32.gmra.mrb[96].mxu0 %v8220_v56  ;;  %v8222_v43 = vmax.f32 %v8188_v51, 0.0 }
0x1ff6   :  { %v8223_v58 = vmax.f32 %v8190_v5, 0.0  ;;  %v8193_v19 = vpop.f32.mrb[108].mxu1 }
0x1ff7   :  { %v8194_v23 = vadd.f32 %v8193_v19, %v8072_v47  ;;  %v8195_v57 = vpop.f32.mrb[109].mxu1 }
0x1ff8   :  { %v8196_v50 = vadd.f32 %v8195_v57, %v8076_v18  ;;  %8352 = vmatprep.mubr.f32.mxu0 %v8223_v58 }
0x1ff9   :  { %8353 = vmatmul.mubr.f32.gmra.mrb[98].mxu0 %v8222_v43  ;;  %v8224_v31 = vmax.f32 %v8194_v23, 0.0 }
0x1ffa   :  { %v8225_v45 = vmax.f32 %v8196_v50, 0.0  ;;  %v8199_v32 = vpop.f32.mrb[110].mxu1 }
0x1ffb   :  { %v8200_v24 = vadd.f32 %v8199_v32, %v8072_v47  ;;  %v8201_v44 = vpop.f32.mrb[111].mxu1 }
0x1ffc   :  { %v8202_v22 = vadd.f32 %v8201_v44, %v8076_v18  ;;  %8357 = vmatprep.mubr.f32.mxu0 %v8225_v45 }
0x1ffd   :  { %8358 = vmatmul.mubr.f32.gmra.mrb[100].mxu0 %v8224_v31  ;;  %v8226_v63 = vmax.f32 %v8200_v24, 0.0 }
0x1ffe   :  { %v8227_v6 = vmax.f32 %v8202_v22, 0.0  ;;  %v8205_v61 = vpop.f32.mrb[112].mxu1 }
0x1fff   :  { %v8206_v62 = vadd.f32 %v8205_v61, %v8072_v47  ;;  %v8207_v29 = vpop.f32.mrb[113].mxu1 }
0x2000   :  { %v8208_v4 = vadd.f32 %v8207_v29, %v8076_v18  ;;  %8362 = vmatprep.mubr.f32.mxu0 %v8227_v6 }
0x2001   :  { %8363 = vmatmul.mubr.f32.gmra.mrb[102].mxu0 %v8226_v63  ;;  %v8228_v60 = vmax.f32 %v8206_v62, 0.0 }
0x2002   :  { %v8229_v48 = vmax.f32 %v8208_v4, 0.0  ;;  %v8211_v13 = vpop.f32.mrb[114].mxu1 }
0x2003   :  { %v8212_v59 = vadd.f32 %v8211_v13, %v8072_v47  ;;  %v8213_v28 = vpop.f32.mrb[115].mxu1 }
0x2004   :  { %v8214_v27 = vadd.f32 %v8213_v28, %v8076_v18  ;;  %8367 = vmatprep.mubr.f32.mxu0 %v8229_v48 }
0x2005   :  { %8368 = vmatmul.mubr.f32.gmra.mrb[104].mxu0 %v8228_v60  ;;  %v8230_v2 = vmax.f32 %v8212_v59, 0.0 }
0x2006   :  { %v8231_v30 = vmax.f32 %v8214_v27, 0.0 }
0x2008   :  { %8372 = vmatprep.mubr.f32.mxu0 %v8231_v30 }
0x2009   :  { %8373 = vmatmul.mubr.f32.gmra.mrb[106].mxu0 %v8230_v2 }
0x2085   :  { %v9272_v25 = vpop.f32.mrb[92].mxu0 }
0x2086   :  { %v9273_v26 = vpop.f32.mrb[93].mxu0 }
0x2087   :  { %v9274_v55 = vadd.f32 %v9273_v26, %v9272_v25 }
0x2089   :  { %v8340_v35 = vadd.f32 %v9274_v55, %v8875_v7  ;;  %v9275_v15 = vpop.f32.mrb[94].mxu0 }
0x208a   :  { %v9276_v10 = vpop.f32.mrb[95].mxu0 }
0x208b   :  { %v9277_v20 = vadd.f32 %v9276_v10, %v9275_v15  ;;  %v8378_v47 = vadd.f32 %v8340_v35, %v12945_v17 }
0x208d   :  { %v8345_v18 = vadd.f32 %v9277_v20, %v8875_v7  ;;  %v8390_v21 = vsel %vm64_vm0, %v8378_v47, 0.0 }
0x208e   :  { %8391 = vadd.xlane.f32.xlu1 %v8390_v21 }
0x208f   :  { %v8379_v36 = vadd.f32 %v8345_v18, %v12952_v3 }
0x2091   :  { %v8393_v54 = vsel %vm64_vm0, %v8379_v36, 0.0 }
0x2092   :  { %8394 = vadd.xlane.f32.xlu0 %v8393_v54 }
0x20c8   :  { %v9278_v12 = vpop.f32.mrb[96].mxu0 }
0x20c9   :  { %v9279_v9 = vpop.f32.mrb[97].mxu0 }
0x20ca   :  { %v9280_v53 = vadd.f32 %v9279_v9, %v9278_v12 }
0x20cc   :  { %v8350_v39 = vadd.f32 %v9280_v53, %v8875_v7  ;;  %v9281_v8 = vpop.f32.mrb[98].mxu0 }
0x20cd   :  { %v9282_v11 = vpop.f32.mrb[99].mxu0 }
0x20ce   :  { %v9283_v49 = vadd.f32 %v9282_v11, %v9281_v8  ;;  %v8380_v37 = vadd.f32 %v8350_v39, %v12960_v40 }
0x20d0   :  { %v8355_v0 = vadd.f32 %v9283_v49, %v8875_v7  ;;  %v9284_v17 = vpop.f32.mrb[100].mxu0  ;;  %v8396_v33 = vsel %vm64_vm0, %v8380_v37, 0.0 }
0x20d1   :  { %8397 = vadd.xlane.f32.xlu1 %v8396_v33  ;;  %v9285_v52 = vpop.f32.mrb[101].mxu0 }
0x20d2   :  { %v9286_v14 = vadd.f32 %v9285_v52, %v9284_v17  ;;  %v8381_v3 = vadd.f32 %v8355_v0, %v12968_v42 }
0x20d4   :  { %v8360_v1 = vadd.f32 %v9286_v14, %v8875_v7  ;;  %v9287_v56 = vpop.f32.mrb[102].mxu0  ;;  %v8399_v51 = vsel %vm64_vm0, %v8381_v3, 0.0 }
0x20d5   :  { %8400 = vadd.xlane.f32.xlu0 %v8399_v51  ;;  %v9288_v41 = vpop.f32.mrb[103].mxu0 }
0x20d6   :  { %v9289_v5 = vadd.f32 %v9288_v41, %v9287_v56  ;;  %v8382_v58 = vadd.f32 %v8360_v1, %v12977_v38 }
0x20d8   :  { %v8365_v19 = vadd.f32 %v9289_v5, %v8875_v7  ;;  %v9290_v40 = vpop.f32.mrb[104].mxu0  ;;  %v8402_v43 = vsel %vm64_vm0, %v8382_v58, 0.0 }
0x20d9   :  { %8403 = vadd.xlane.f32.xlu1 %v8402_v43  ;;  %v9291_v23 = vpop.f32.mrb[105].mxu0 }
0x20da   :  { %v9292_v57 = vadd.f32 %v9291_v23, %v9290_v40  ;;  %v8383_v50 = vadd.f32 %v8365_v19, %v12984_v34  ;;  %v13088_v40 = vld [vmem:[%s13145_s12 + $0x1] ss:$0 sm:$0xff] }
0x20dc   :  { %v8370_v45 = vadd.f32 %v9292_v57, %v8875_v7  ;;  %v9293_v42 = vpop.f32.mrb[106].mxu0  ;;  %v8405_v32 = vsel %vm64_vm0, %v8383_v50, 0.0 }
0x20dd   :  { %8406 = vadd.xlane.f32.xlu0 %v8405_v32  ;;  %v9294_v31 = vpop.f32.mrb[107].mxu0 }
0x20de   :  { %v9295_v24 = vadd.f32 %v9294_v31, %v9293_v42  ;;  %v8384_v44 = vadd.f32 %v8370_v45, %v12993_v16 }
0x20e0   :  { %v8375_v22 = vadd.f32 %v9295_v24, %v8875_v7  ;;  %v8408_v38 = vsel %vm64_vm0, %v8384_v44, 0.0 }
0x20e1   :  { %8409 = vadd.xlane.f32.xlu1 %v8408_v38 }
0x20e2   :  { %v8385_v6 = vadd.f32 %v8375_v22, %v13012_v46 }
0x20e4   :  { %v8411_v61 = vsel %vm64_vm0, %v8385_v6, 0.0 }
0x20e5   :  { %8412 = vadd.xlane.f32.xlu0 %v8411_v61 }
0x211b   :  { %v8392_v63 = vpop.xlane.xlu1 %8391 }
0x211c   :  { %v8414_v34 = vmul.f32 0.03125, %v8392_v63 }
0x211e   :  { %v8422_v62 = vsub.f32 %v8378_v47, %v8414_v34 }
0x211f   :  { %v8395_v29 = vpop.xlane.xlu0 %8394 }
0x2120   :  { %v8415_v4 = vmul.f32 0.03125, %v8395_v29  ;;  %v8430_v48 = vmul.f32 %v8422_v62, %v8422_v62 }
0x2122   :  { %v8423_v13 = vsub.f32 %v8379_v36, %v8415_v4  ;;  %v8438_v60 = vsel %vm64_vm0, %v8430_v48, 0.0 }
0x2123   :  { %8439 = vadd.xlane.f32.xlu1 %v8438_v60 }
0x2124   :  { %v8431_v16 = vmul.f32 %v8423_v13, %v8423_v13 }
0x2126   :  { %v8441_v59 = vsel %vm64_vm0, %v8431_v16, 0.0 }
0x2127   :  { %8442 = vadd.xlane.f32.xlu0 %v8441_v59 }
0x215e   :  { %v8398_v28 = vpop.xlane.xlu1 %8397 }
0x215f   :  { %v8416_v27 = vmul.f32 0.03125, %v8398_v28 }
0x2161   :  { %v13050_v46 = vsub.f32 %v8380_v37, %v8416_v27 }
0x2162   :  { %v8401_v30 = vpop.xlane.xlu0 %8400 }
0x2163   :  { %v8417_v2 = vmul.f32 0.03125, %v8401_v30  ;;  %v8432_v25 = vmul.f32 %v13050_v46, %v13050_v46 }
0x2165   :  { %v13054_v7 = vsub.f32 %v8381_v3, %v8417_v2  ;;  %v8444_v26 = vsel %vm64_vm0, %v8432_v25, 0.0 }
0x2166   :  { %v8404_v55 = vpop.xlane.xlu1 %8403  ;;  %8445 = vadd.xlane.f32.xlu1 %v8444_v26 }
0x2167   :  { %v8418_v35 = vmul.f32 0.03125, %v8404_v55  ;;  %v8433_v15 = vmul.f32 %v13054_v7, %v13054_v7 }
0x2169   :  { %v13059_v10 = vsub.f32 %v8382_v58, %v8418_v35  ;;  %v8447_v20 = vsel %vm64_vm0, %v8433_v15, 0.0  ;;  %v13083_v58 = vld [vmem:[%s13144_s11 + $0x1] ss:$0 sm:$0xff]  ;;  %s10960_s11 = smov [#allocation3]  }
0x216a   :  { %8448 = vadd.xlane.f32.xlu0 %v8447_v20  ;;  %v8407_v47 = vpop.xlane.xlu0 %8406  ;;  %s8559_s12 = sshll.u32 %s10960_s11, 4  ;;  %s8560_s12 = int_to_ptr.vmem [resolvable:$true] %s8559_s12 }
0x216b   :  { %v8419_v18 = vmul.f32 0.03125, %v8407_v47  ;;  %v8434_v21 = vmul.f32 %v13059_v10, %v13059_v10  ;;  %s10921_s27 = scalar_lea.vmem %s8560_s12, 1024  ;;  %p10926_p1 = scmp.lt.s32.totalorder %s8560_s12, %s8560_s12 }
0x216c   :  { %p10922_p0 = scmp.ne.s32.totalorder %s8560_s12, %s10921_s27  ;;  %p10927_p2 = scmp.lt.s32.totalorder %s10921_s27, %s10921_s27 }
0x216d   :  { %v13064_v36 = vsub.f32 %v8383_v50, %v8419_v18  ;;  %v8450_v54 = vsel %vm64_vm0, %v8434_v21, 0.0 }
0x216e   :  { %8451 = vadd.xlane.f32.xlu1 %v8450_v54  ;;  %v8410_v12 = vpop.xlane.xlu1 %8409  ;;  %p10928_p3 = por %p10927_p2, %p10926_p1 }
0x216f   :  { %v8420_v9 = vmul.f32 0.03125, %v8410_v12  ;;  %v8435_v53 = vmul.f32 %v13064_v36, %v13064_v36 }
0x2170   :  { %p10929_p4 = pnand %p10928_p3, %p10922_p0 }
0x2171   :  { %v13069_v39 = vsub.f32 %v8384_v44, %v8420_v9  ;;  %v8453_v8 = vsel %vm64_vm0, %v8435_v53, 0.0 }
0x2172   :  { %8454 = vadd.xlane.f32.xlu0 %v8453_v8  ;;  %v8413_v11 = vpop.xlane.xlu0 %8412 }
0x2173   :  { %v8421_v49 = vmul.f32 0.03125, %v8413_v11  ;;  %v8436_v37 = vmul.f32 %v13069_v39, %v13069_v39 }
0x2175   :  { %v13074_v0 = vsub.f32 %v8385_v6, %v8421_v49  ;;  %v8456_v17 = vsel %vm64_vm0, %v8436_v37, 0.0 }
0x2176   :  { %8457 = vadd.xlane.f32.xlu1 %v8456_v17 }
0x2177   :  { %v8437_v33 = vmul.f32 %v13074_v0, %v13074_v0 }
0x2179   :  { %v8459_v52 = vsel %vm64_vm0, %v8437_v33, 0.0 }
0x217a   :  { %8460 = vadd.xlane.f32.xlu0 %v8459_v52 }
0x21b0   :  { %v8440_v14 = vpop.xlane.xlu1 %8439 }
0x21b1   :  { %v8462_v3 = vmul.f32 0.03125, %v8440_v14 }
0x21b3   :  { %v8470_v1 = vadd.f32 1e-05, %v8462_v3 }
0x21b4   :  { %v8443_v56 = vpop.xlane.xlu0 %8442 }
0x21b5   :  { %10897 = vrsqrt.f32 %v8470_v1  ;;  %v8463_v51 = vmul.f32 0.03125, %v8443_v56 }
0x21b7   :  { %v8471_v41 = vadd.f32 1e-05, %v8463_v51 }
0x21b9   :  { %10899 = vrsqrt.f32 %v8471_v41 }
0x21bf   :  { %v10898_v5 = vpop.eup %10897 }
0x21c0   :  { %v8486_v19 = vmul.f32 %v10898_v5, %v8422_v62 }
0x21c2   :  { %v8500_v43 = vmul.f32 %v13083_v58, %v8486_v19 }
0x21c3   :  { %v10900_v23 = vpop.eup %10899 }
0x21c4   :  { %v8514_v57 = vadd.f32 %v13088_v40, %v8500_v43  ;;  %v8487_v50 = vmul.f32 %v10900_v23, %v8423_v13 }
0x21c6   :  { %vm8522_vm7 = vcmp.gt.f32.partialorder %v8514_v57, 0.0  ;;  %v8530_v45 = vmul.f32 0.01, %v8514_v57  ;;  %v8501_v42 = vmul.f32 %v13083_v58, %v8487_v50 }
0x21c8   :  { %v8538_v32 = vsel %vm8522_vm7, %v8514_v57, %v8530_v45  ;;  %v8515_v31 = vadd.f32 %v13088_v40, %v8501_v42 }
0x21c9   :  { %8546 = vst.msk [vmem:[#allocation3] sm:$0xff] %vm64_vm0, %v8538_v32 }
0x21ca   :  { %vm8523_vm8 = vcmp.gt.f32.partialorder %v8515_v31, 0.0  ;;  %v8531_v24 = vmul.f32 0.01, %v8515_v31 }
0x21cc   :  { %v8539_v44 = vsel %vm8523_vm8, %v8515_v31, %v8531_v24 }
0x21cd   :  { %8547 = vst.msk [vmem:[#allocation3 + $0x8] sm:$0xff] %vm64_vm0, %v8539_v44 }
0x21f3   :  { %v8446_v22 = vpop.xlane.xlu1 %8445 }
0x21f4   :  { %v8464_v38 = vmul.f32 0.03125, %v8446_v22 }
0x21f6   :  { %v8472_v6 = vadd.f32 1e-05, %v8464_v38 }
0x21f7   :  { %v8449_v61 = vpop.xlane.xlu0 %8448 }
0x21f8   :  { %10901 = vrsqrt.f32 %v8472_v6  ;;  %v8465_v63 = vmul.f32 0.03125, %v8449_v61 }
0x21fa   :  { %v8473_v34 = vadd.f32 1e-05, %v8465_v63 }
0x21fb   :  { %v8452_v62 = vpop.xlane.xlu1 %8451 }
0x21fc   :  { %10903 = vrsqrt.f32 %v8473_v34  ;;  %v8466_v29 = vmul.f32 0.03125, %v8452_v62 }
0x21fe   :  { %v8474_v4 = vadd.f32 1e-05, %v8466_v29 }
0x21ff   :  { %v8455_v48 = vpop.xlane.xlu0 %8454 }
0x2200   :  { %10905 = vrsqrt.f32 %v8474_v4  ;;  %v8467_v13 = vmul.f32 0.03125, %v8455_v48 }
0x2202   :  { %v10902_v60 = vpop.eup %10901  ;;  %v8475_v16 = vadd.f32 1e-05, %v8467_v13 }
0x2203   :  { %v8488_v59 = vmul.f32 %v10902_v60, %v13050_v46  ;;  %v8458_v28 = vpop.xlane.xlu1 %8457 }
0x2204   :  { %10907 = vrsqrt.f32 %v8475_v16  ;;  %v8468_v27 = vmul.f32 0.03125, %v8458_v28 }
0x2205   :  { %v8502_v30 = vmul.f32 %v13083_v58, %v8488_v59 }
0x2206   :  { %v10904_v2 = vpop.eup %10903  ;;  %v8476_v25 = vadd.f32 1e-05, %v8468_v27 }
0x2207   :  { %v8516_v26 = vadd.f32 %v13088_v40, %v8502_v30  ;;  %v8489_v55 = vmul.f32 %v10904_v2, %v13054_v7  ;;  %v8461_v35 = vpop.xlane.xlu0 %8460 }
0x2208   :  { %10909 = vrsqrt.f32 %v8476_v25  ;;  %v8469_v15 = vmul.f32 0.03125, %v8461_v35 }
0x2209   :  { %vm8524_vm9 = vcmp.gt.f32.partialorder %v8516_v26, 0.0  ;;  %v8532_v20 = vmul.f32 0.01, %v8516_v26  ;;  %v8503_v47 = vmul.f32 %v13083_v58, %v8489_v55 }
0x220a   :  { %v10906_v18 = vpop.eup %10905  ;;  %v8477_v46 = vadd.f32 1e-05, %v8469_v15 }
0x220b   :  { %v8540_v21 = vsel %vm8524_vm9, %v8516_v26, %v8532_v20  ;;  %v8517_v54 = vadd.f32 %v13088_v40, %v8503_v47  ;;  %v8490_v12 = vmul.f32 %v10906_v18, %v13059_v10 }
0x220c   :  { %8548 = vst.msk [vmem:[#allocation3 + $0x10] sm:$0xff] %vm64_vm0, %v8540_v21  ;;  %10911 = vrsqrt.f32 %v8477_v46 }
0x220d   :  { %vm8525_vm10 = vcmp.gt.f32.partialorder %v8517_v54, 0.0  ;;  %v8533_v9 = vmul.f32 0.01, %v8517_v54  ;;  %v8504_v7 = vmul.f32 %v13083_v58, %v8490_v12 }
0x220e   :  { %v10908_v53 = vpop.eup %10907 }
0x220f   :  { %v8541_v8 = vsel %vm8525_vm10, %v8517_v54, %v8533_v9  ;;  %v8518_v11 = vadd.f32 %v13088_v40, %v8504_v7  ;;  %v8491_v49 = vmul.f32 %v10908_v53, %v13064_v36 }
0x2210   :  { %8549 = vst.msk [vmem:[#allocation3 + $0x18] sm:$0xff] %vm64_vm0, %v8541_v8 }
0x2211   :  { %vm8526_vm11 = vcmp.gt.f32.partialorder %v8518_v11, 0.0  ;;  %v8534_v37 = vmul.f32 0.01, %v8518_v11  ;;  %v8505_v17 = vmul.f32 %v13083_v58, %v8491_v49 }
0x2212   :  { %v10910_v10 = vpop.eup %10909 }
0x2213   :  { %v8542_v33 = vsel %vm8526_vm11, %v8518_v11, %v8534_v37  ;;  %v8519_v52 = vadd.f32 %v13088_v40, %v8505_v17  ;;  %v8492_v14 = vmul.f32 %v10910_v10, %v13069_v39 }
0x2214   :  { %8550 = vst.msk [vmem:[#allocation3 + $0x20] sm:$0xff] %vm64_vm0, %v8542_v33 }
0x2215   :  { %vm8527_vm12 = vcmp.gt.f32.partialorder %v8519_v52, 0.0  ;;  %v8535_v3 = vmul.f32 0.01, %v8519_v52  ;;  %v8506_v1 = vmul.f32 %v13083_v58, %v8492_v14 }
0x2216   :  { %v10912_v56 = vpop.eup %10911 }
0x2217   :  { %v8543_v36 = vsel %vm8527_vm12, %v8519_v52, %v8535_v3  ;;  %v8520_v51 = vadd.f32 %v13088_v40, %v8506_v1  ;;  %v8493_v41 = vmul.f32 %v10912_v56, %v13074_v0 }
0x2218   :  { %8551 = vst.msk [vmem:[#allocation3 + $0x28] sm:$0xff] %vm64_vm0, %v8543_v36 }
0x2219   :  { %vm8528_vm13 = vcmp.gt.f32.partialorder %v8520_v51, 0.0  ;;  %v8536_v5 = vmul.f32 0.01, %v8520_v51  ;;  %v8507_v19 = vmul.f32 %v13083_v58, %v8493_v41 }
0x221b   :  { %v8544_v43 = vsel %vm8528_vm13, %v8520_v51, %v8536_v5  ;;  %v8521_v39 = vadd.f32 %v13088_v40, %v8507_v19 }
0x221c   :  { %8552 = vst.msk [vmem:[#allocation3 + $0x30] sm:$0xff] %vm64_vm0, %v8544_v43 }
0x221d   :  { %vm8529_vm14 = vcmp.gt.f32.partialorder %v8521_v39, 0.0  ;;  %v8537_v23 = vmul.f32 0.01, %v8521_v39 }
0x221f   :  { %v8545_v57 = vsel %vm8529_vm14, %v8521_v39, %v8537_v23 }
0x2220   :  { %8553 = vst.msk [vmem:[#allocation3 + $0x38] sm:$0xff] %vm64_vm0, %v8545_v57 }
0x2221   :  { %10932 = shalt.err (!%p10929_p4)
}
0x2222   :  { %s10933_s14 = scalar_lea.hbm %s13146_s13, 1024 }
0x2223   :  { %p10934_p5 = scmp.ne.s32.totalorder %s13146_s13, %s10933_s14  ;;  %p10937_p6 = scmp.lt.u32.totalorder %s10933_s14, %s13146_s13 }
0x2225   :  { %p10939_p7 = pnand %p10937_p6, %p10934_p5 }
0x2227   :  { %10942 = shalt.err (!%p10939_p7)
}
0x2228   :  { %s10961_s10 = smov 128  }
0x2229   :  { %8565 = dma.vmem_to_hbm [thread:$0]  %s8560_s12, 1024, %s13146_s13, [#allocation4], %s10961_s10, %s10961_s10, %s13167_s20  }
0x222a   :  { %10943 = dma.done.wait [#allocation4], 1024  }
0x222b   :  { %10944 = vsyncadd [#allocation4], 4294966272 }
0x222c   :  { %8569 = vsyncpa [#allocation4], 1 }

</bundles_post_ra>
